<compile_context>
chip_gen: v6e
topology: v6e:2x2x1
jax: 0.10.0
libtpu: 0.0.40
codegen_flags: <defaults>
</compile_context>

<pallas_src>
import functools

import jax
import jax.numpy as jnp
from jax.experimental import pallas as pl
from jax.experimental.pallas import tpu as pltpu


# ----------------------------- config (small) ------------------------------
BATCH      = 2
IMG        = 16
PATCH      = 4
IN_CH      = 3
EMBED      = 32
HEADS      = 4
HEAD_DIM   = EMBED // HEADS               # 8
DEPTH      = 2
OUT_DIM    = 10
ALPHA      = 1.0
HIDDEN     = 4 * EMBED                    # 128
N_PATCHES  = (IMG // PATCH) ** 2          # 16
SEQ        = N_PATCHES + 1                # 17 (class token appended last)
SEQ_PAD    = 24                           # pad per-batch sequence to 8-multiple
PATCH_FEAT = IN_CH * PATCH * PATCH        # 48
LN_EPS     = 1e-5

# ---- bf16 weight-slab layout (width 128 lanes; row offsets all %16 == 0) ----
W_PATCH      = 0                                        # (48, 32)
W_BLOCK_BASE = W_PATCH + PATCH_FEAT                     # 48
W_Q, W_K, W_V, W_MHR, W_MLP1, W_MLP2 = 0, 32, 64, 96, 128, 160
W_BLOCK_ROWS = 160 + HIDDEN                             # 288 per block
W_HEAD       = W_BLOCK_BASE + DEPTH * W_BLOCK_ROWS      # 624, (32, 128)
W_ROWS       = W_HEAD + EMBED                           # 656

# ---- f32 LN/bias slab layout (one (1, <=128) parameter vector per row) ----
P_LN1_G, P_LN1_B, P_BQ, P_BK, P_BV = 0, 1, 2, 3, 4
P_MHR_LN_G, P_MHR_LN_B, P_MHR_B    = 5, 6, 7
P_LN2_G, P_LN2_B, P_MLP_B1, P_MLP_B2 = 8, 9, 10, 11
P_BLOCK_ROWS = 12
P_FINAL  = DEPTH * P_BLOCK_ROWS                         # 24
P_LN_G, P_LN_B, P_HEAD_B = P_FINAL, P_FINAL + 1, P_FINAL + 2
P_ROWS   = 32


# ------------------------------ kernel math ---------------------------------
def _gelu(x):
    # exact (erf-based) GELU, matching torch.nn.GELU() default
    return 0.5 * x * (1.0 + jax.lax.erf(x * (1.0 / jnp.sqrt(2.0).astype(x.dtype))))


def _layernorm(x, g, b, eps=LN_EPS):
    mu = jnp.mean(x, axis=-1, keepdims=True)
    var = jnp.mean((x - mu) ** 2, axis=-1, keepdims=True)
    return (x - mu) * jax.lax.rsqrt(var + eps) * g + b


def _vir_kernel(patches_ref, add_ref, mask_ref, w_ref, p_ref, out_ref, *, nb):
    """One grid step processes `nb` batches, fully VMEM-resident."""
    f32, bf16 = jnp.float32, jnp.bfloat16
    rows = nb * SEQ_PAD

    def wblk(r0, nrow, ncol):                 # bf16 weight block
        return w_ref[r0:r0 + nrow, 0:ncol]

    def prow(r, ncol=EMBED):                  # f32 (1, ncol) parameter row
        return p_ref[r:r + 1, 0:ncol]

    # per-head column masks (VPU-only, computed once per invocation)
    lane = jax.lax.broadcasted_iota(jnp.int32, (1, EMBED), 1)
    head_masks = [
        jnp.logical_and(lane >= h * HEAD_DIM, lane < (h + 1) * HEAD_DIM).astype(f32)
        for h in range(HEADS)
    ]

    # block-diagonal causal*decay mask with 1/sqrt(head_dim) folded in;
    # zeros across batches and across padded rows/cols.
    mask = mask_ref[...]                      # (rows, rows) f32

    # patch embed; class-token / pad rows come entirely from the additive slab
    x = jnp.dot(patches_ref[...].astype(bf16), wblk(W_PATCH, PATCH_FEAT, EMBED),
                preferred_element_type=f32) + add_ref[...]          # (rows, E)

    for d in range(DEPTH):                    # static unroll over blocks
        pb = d * P_BLOCK_ROWS
        wb = W_BLOCK_BASE + d * W_BLOCK_ROWS

        # ---- multi-head retention branch ----
        h1 = _layernorm(x, prow(pb + P_LN1_G), prow(pb + P_LN1_B)).astype(bf16)
        q = jnp.dot(h1, wblk(wb + W_Q, EMBED, EMBED),
                    preferred_element_type=f32) + prow(pb + P_BQ)
        k = jnp.dot(h1, wblk(wb + W_K, EMBED, EMBED),
                    preferred_element_type=f32) + prow(pb + P_BK)
        v = jnp.dot(h1, wblk(wb + W_V, EMBED, EMBED),
                    preferred_element_type=f32) + prow(pb + P_BV)
        kb = k.astype(bf16)

        ret = jnp.zeros((rows, EMBED), f32)
        for h in range(HEADS):                # static unroll; no lane slicing
            m_h = head_masks[h]
            qh = (q * m_h).astype(bf16)       # zeroed cols contribute 0 to dot
            vh = (v * m_h).astype(bf16)       # zeroed cols land output in head h
            s = jax.lax.dot_general(qh, kb, (((1,), (1,)), ((), ())),
                                    preferred_element_type=f32)     # (rows, rows)
            s = (s * mask).astype(bf16)
            ret = ret + jnp.dot(s, vh, preferred_element_type=f32)

        ret = _gelu(_layernorm(ret, prow(pb + P_MHR_LN_G), prow(pb + P_MHR_LN_B)))
        ret = jnp.dot(ret.astype(bf16), wblk(wb + W_MHR, EMBED, EMBED),
                      preferred_element_type=f32) + prow(pb + P_MHR_B)
        x = ret + x

        # ---- MLP branch ----
        h2 = _layernorm(x, prow(pb + P_LN2_G), prow(pb + P_LN2_B)).astype(bf16)
        h2 = jnp.dot(h2, wblk(wb + W_MLP1, EMBED, HIDDEN),
                     preferred_element_type=f32) + prow(pb + P_MLP_B1, HIDDEN)
        h2 = _gelu(h2).astype(bf16)
        h2 = jnp.dot(h2, wblk(wb + W_MLP2, HIDDEN, EMBED),
                     preferred_element_type=f32) + prow(pb + P_MLP_B2)
        x = h2 + x

    # ---- classification head on the class token (row SEQ-1 of each batch) ----
    cls_rows = [x[j * SEQ_PAD + SEQ - 1: j * SEQ_PAD + SEQ, :] for j in range(nb)]
    cls_rows.append(jnp.zeros((8 - nb, EMBED), f32))       # pad to 8 rows
    cls = jnp.concatenate(cls_rows, axis=0)                 # (8, E)
    cls = _layernorm(cls, prow(P_LN_G), prow(P_LN_B)).astype(bf16)
    out = jnp.dot(cls, wblk(W_HEAD, EMBED, 128),
                  preferred_element_type=f32) + prow(P_HEAD_B, 128)  # (8, 128)
    out_ref[...] = out.astype(out_ref.dtype)                # lane-dense store


# ---------------------------- parameter init --------------------------------
def init_params(key):
    def nrm(k, shape, scale=0.02):
        return (scale * jax.random.normal(k, shape)).astype(jnp.float32)

    keys = iter(jax.random.split(key, 64))
    p = {}
    # patch embed: conv(3, E, k=p, s=p) == linear over flattened (c, ph, pw)
    p["patch_w"] = nrm(next(keys), (PATCH_FEAT, EMBED))
    p["patch_b"] = jnp.zeros((EMBED,), jnp.float32)
    p["pos_embed"]   = jax.random.normal(next(keys), (SEQ, EMBED), dtype=jnp.float32)
    p["class_token"] = jax.random.normal(next(keys), (EMBED,), dtype=jnp.float32)

    blocks = []
    for _ in range(DEPTH):
        b = {}
        b["ln1_g"] = jnp.ones((EMBED,), jnp.float32)
        b["ln1_b"] = jnp.zeros((EMBED,), jnp.float32)
        # per-head qkv projections (x @ W layout), later fused block-diagonally
        b["wq"] = nrm(next(keys), (HEADS, HEAD_DIM, HEAD_DIM))
        b["wk"] = nrm(next(keys), (HEADS, HEAD_DIM, HEAD_DIM))
        b["wv"] = nrm(next(keys), (HEADS, HEAD_DIM, HEAD_DIM))
        b["bq"] = jnp.zeros((HEADS, HEAD_DIM), jnp.float32)
        b["bk"] = jnp.zeros((HEADS, HEAD_DIM), jnp.float32)
        b["bv"] = jnp.zeros((HEADS, HEAD_DIM), jnp.float32)
        b["mhr_ln_g"] = jnp.ones((EMBED,), jnp.float32)
        b["mhr_ln_b"] = jnp.zeros((EMBED,), jnp.float32)
        b["mhr_w"] = nrm(next(keys), (EMBED, EMBED))
        b["mhr_b"] = jnp.zeros((EMBED,), jnp.float32)
        b["ln2_g"] = jnp.ones((EMBED,), jnp.float32)
        b["ln2_b"] = jnp.zeros((EMBED,), jnp.float32)
        b["mlp_w1"] = nrm(next(keys), (EMBED, HIDDEN))
        b["mlp_b1"] = jnp.zeros((HIDDEN,), jnp.float32)
        b["mlp_w2"] = nrm(next(keys), (HIDDEN, EMBED))
        b["mlp_b2"] = jnp.zeros((EMBED,), jnp.float32)
        blocks.append(b)
    p["blocks"] = blocks

    p["ln_g"] = jnp.ones((EMBED,), jnp.float32)
    p["ln_b"] = jnp.zeros((EMBED,), jnp.float32)
    p["head_w"] = nrm(next(keys), (EMBED, OUT_DIM))
    p["head_b"] = jnp.zeros((OUT_DIM,), jnp.float32)
    return p


def _block_diag(per_head):
    """(H, hd, hd) per-head weights -> (E, E) block-diagonal weight."""
    H, hd, _ = per_head.shape
    out = jnp.zeros((H * hd, H * hd), per_head.dtype)
    for h in range(H):
        out = out.at[h * hd:(h + 1) * hd, h * hd:(h + 1) * hd].set(per_head[h])
    return out


def pack_params(p):
    """Host-side re-layout into: bf16 weight slab, f32 LN/bias slab, add slab."""
    # ---- bf16 weight slab ----
    w = jnp.zeros((W_ROWS, 128), jnp.float32)
    w = w.at[W_PATCH:W_PATCH + PATCH_FEAT, :EMBED].set(p["patch_w"])
    for d, b in enumerate(p["blocks"]):
        base = W_BLOCK_BASE + d * W_BLOCK_ROWS
        w = w.at[base + W_Q:base + W_Q + EMBED, :EMBED].set(_block_diag(b["wq"]))
        w = w.at[base + W_K:base + W_K + EMBED, :EMBED].set(_block_diag(b["wk"]))
        w = w.at[base + W_V:base + W_V + EMBED, :EMBED].set(_block_diag(b["wv"]))
        w = w.at[base + W_MHR:base + W_MHR + EMBED, :EMBED].set(b["mhr_w"])
        w = w.at[base + W_MLP1:base + W_MLP1 + EMBED, :HIDDEN].set(b["mlp_w1"])
        w = w.at[base + W_MLP2:base + W_MLP2 + HIDDEN, :EMBED].set(b["mlp_w2"])
    w = w.at[W_HEAD:W_HEAD + EMBED, :OUT_DIM].set(p["head_w"])
    w_slab = w.astype(jnp.bfloat16)

    # ---- f32 LN / bias slab (one parameter vector per row) ----
    ps = jnp.zeros((P_ROWS, 128), jnp.float32)
    for d, b in enumerate(p["blocks"]):
        base = d * P_BLOCK_ROWS
        ps = ps.at[base + P_LN1_G, :EMBED].set(b["ln1_g"])
        ps = ps.at[base + P_LN1_B, :EMBED].set(b["ln1_b"])
        ps = ps.at[base + P_BQ, :EMBED].set(b["bq"].reshape(-1))
        ps = ps.at[base + P_BK, :EMBED].set(b["bk"].reshape(-1))
        ps = ps.at[base + P_BV, :EMBED].set(b["bv"].reshape(-1))
        ps = ps.at[base + P_MHR_LN_G, :EMBED].set(b["mhr_ln_g"])
        ps = ps.at[base + P_MHR_LN_B, :EMBED].set(b["mhr_ln_b"])
        ps = ps.at[base + P_MHR_B, :EMBED].set(b["mhr_b"])
        ps = ps.at[base + P_LN2_G, :EMBED].set(b["ln2_g"])
        ps = ps.at[base + P_LN2_B, :EMBED].set(b["ln2_b"])
        ps = ps.at[base + P_MLP_B1, :HIDDEN].set(b["mlp_b1"])
        ps = ps.at[base + P_MLP_B2, :EMBED].set(b["mlp_b2"])
    ps = ps.at[P_LN_G, :EMBED].set(p["ln_g"])
    ps = ps.at[P_LN_B, :EMBED].set(p["ln_b"])
    ps = ps.at[P_HEAD_B, :OUT_DIM].set(p["head_b"])

    # ---- additive slab: pos+patch_bias for patch rows, class token, 0 padding ----
    per_batch = jnp.zeros((SEQ_PAD, EMBED), jnp.float32)
    per_batch = per_batch.at[:N_PATCHES].set(
        p["pos_embed"][:N_PATCHES] + p["patch_b"][None, :])
    per_batch = per_batch.at[N_PATCHES].set(p["class_token"])
    add_slab = jnp.tile(per_batch, (BATCH, 1))              # (B*SEQ_PAD, E)

    return {"w_slab": w_slab, "p_slab": ps, "add_slab": add_slab}


def make_group_mask(nb):
    """Block-diagonal retention mask for nb fused batches of SEQ_PAD rows:
    causal * alpha^(i-j) / sqrt(head_dim); zeros across batches & padded rows."""
    n = nb * SEQ_PAD
    idx = jnp.arange(n)
    b = idx // SEQ_PAD
    s = idx % SEQ_PAD
    same_b = b[:, None] == b[None, :]
    real = s < SEQ
    causal = s[:, None] >= s[None, :]
    valid = same_b & real[:, None] & real[None, :] & causal
    diff = (s[:, None] - s[None, :]).astype(jnp.float32)
    decay = jnp.power(jnp.float32(ALPHA), jnp.where(valid, diff, 0.0))  # NaN-safe
    return jnp.where(valid, decay, 0.0) * jnp.float32(1.0 / (HEAD_DIM ** 0.5))


def _detect_num_groups(batch):
    """Split the batch across the 2 TensorCores only on v7x; single-TC chips
    (v5e / v6e) keep one grid step to avoid per-step overhead."""
    try:
        kind = jax.devices()[0].device_kind.lower()
    except Exception:
        return 1
    if ("v7" in kind or "tpu7" in kind) and batch % 2 == 0:
        return 2
    return 1


# ------------------------------- forward ------------------------------------
def vir_forward(packed, x_img, group_mask, *, n_groups):
    B = x_img.shape[0]
    nb = B // n_groups
    rows = nb * SEQ_PAD

    # patchify + pad each batch's sequence to SEQ_PAD rows (layout glue only)
    patches = (x_img.reshape(B, IN_CH, IMG // PATCH, PATCH, IMG // PATCH, PATCH)
                    .transpose(0, 2, 4, 1, 3, 5)
                    .reshape(B, N_PATCHES, PATCH_FEAT))
    patches = jnp.pad(patches, ((0, 0), (0, SEQ_PAD - N_PATCHES), (0, 0)))
    patches = patches.reshape(B * SEQ_PAD, PATCH_FEAT)       # f32

    kernel = functools.partial(_vir_kernel, nb=nb)
    out = pl.pallas_call(
        kernel,
        grid=(n_groups,),
        in_specs=[
            pl.BlockSpec((rows, PATCH_FEAT), lambda i: (i, 0)),   # patches
            pl.BlockSpec((rows, EMBED),      lambda i: (i, 0)),   # additive slab
            pl.BlockSpec((rows, rows),       lambda i: (0, 0)),   # retention mask
            pl.BlockSpec((W_ROWS, 128),      lambda i: (0, 0)),   # bf16 weights
            pl.BlockSpec((P_ROWS, 128),      lambda i: (0, 0)),   # f32 LN/bias
        ],
        out_specs=pl.BlockSpec((8, 128), lambda i: (i, 0)),
        out_shape=jax.ShapeDtypeStruct((n_groups * 8, 128), jnp.float32),
        compiler_params=pltpu.CompilerParams(
            dimension_semantics=("parallel",)),
    )(patches, packed["add_slab"], group_mask, packed["w_slab"], packed["p_slab"])

    # lane-dense (8,128) block per group -> (B, OUT_DIM) logits
    out = out.reshape(n_groups, 8, 128)[:, :nb, :OUT_DIM].reshape(B, OUT_DIM)
    return out


# --------------------------------- main --------------------------------------
if __name__ == "__main__":
    key = jax.random.PRNGKey(0)
    k_params, k_input = jax.random.split(key)

    params = init_params(k_params)
    packed = pack_params(params)
    x_img = jax.random.normal(k_input, (BATCH, IN_CH, IMG, IMG), dtype=jnp.float32)

    n_groups = _detect_num_groups(BATCH)
    nb = BATCH // n_groups
    group_mask = make_group_mask(nb)

    fwd = jax.jit(functools.partial(vir_forward, n_groups=n_groups))
    out = fwd(packed, x_img, group_mask)
    jax.block_until_ready(out)

    assert out.shape == (BATCH, OUT_DIM)
    assert bool(jnp.all(jnp.isfinite(out)))
    print("KERNEL_OK")
</pallas_src>

<mosaic_0001>
module attributes {stable_mosaic.version = 11 : i64} {
  func.func @_vir_kernel(%arg0: i32, %arg1: memref<48x48xf32, #tpu.memory_space<vmem>>, %arg2: memref<48x32xf32, #tpu.memory_space<vmem>>, %arg3: memref<48x48xf32, #tpu.memory_space<vmem>>, %arg4: memref<656x128xbf16, #tpu.memory_space<vmem>>, %arg5: memref<32x128xf32, #tpu.memory_space<vmem>>, %arg6: memref<8x128xf32, #tpu.memory_space<vmem>>) attributes {dimension_semantics = [#tpu.dimension_semantics<parallel>], iteration_bounds = array<i64: 1>, scalar_prefetch = 0 : i64, scratch_operands = 0 : i64, tpu.core_type = #tpu.core_type<tc>, window_params = [{transform_indices = @transform_0, window_bounds = array<i64: 48, 48>}, {transform_indices = @transform_1, window_bounds = array<i64: 48, 32>}, {pipeline_mode = #tpu.pipeline_mode<synchronous>, transform_indices = @transform_2, window_bounds = array<i64: 48, 48>}, {pipeline_mode = #tpu.pipeline_mode<synchronous>, transform_indices = @transform_3, window_bounds = array<i64: 656, 128>}, {pipeline_mode = #tpu.pipeline_mode<synchronous>, transform_indices = @transform_4, window_bounds = array<i64: 32, 128>}, {transform_indices = @transform_5, window_bounds = array<i64: 8, 128>}]} {
    %0 = tpu.iota {dimensions = array<i32: 1>} : vector<1x32xi32>
    %c0_i32 = arith.constant 0 : i32
    %1 = vector.broadcast %c0_i32 : i32 to vector<1x32xi32>
    %2 = arith.cmpi sge, %0, %1 : vector<1x32xi32>
    %c8_i32 = arith.constant 8 : i32
    %3 = vector.broadcast %c8_i32 : i32 to vector<1x32xi32>
    %4 = arith.cmpi slt, %0, %3 : vector<1x32xi32>
    %5 = arith.andi %2, %4 : vector<1x32xi1>
    %6 = arith.extui %5 : vector<1x32xi1> to vector<1x32xi32>
    %7 = arith.sitofp %6 : vector<1x32xi32> to vector<1x32xf32>
    %c8_i32_0 = arith.constant 8 : i32
    %8 = vector.broadcast %c8_i32_0 : i32 to vector<1x32xi32>
    %9 = arith.cmpi sge, %0, %8 : vector<1x32xi32>
    %c16_i32 = arith.constant 16 : i32
    %10 = vector.broadcast %c16_i32 : i32 to vector<1x32xi32>
    %11 = arith.cmpi slt, %0, %10 : vector<1x32xi32>
    %12 = arith.andi %9, %11 : vector<1x32xi1>
    %13 = arith.extui %12 : vector<1x32xi1> to vector<1x32xi32>
    %14 = arith.sitofp %13 : vector<1x32xi32> to vector<1x32xf32>
    %c16_i32_1 = arith.constant 16 : i32
    %15 = vector.broadcast %c16_i32_1 : i32 to vector<1x32xi32>
    %16 = arith.cmpi sge, %0, %15 : vector<1x32xi32>
    %c24_i32 = arith.constant 24 : i32
    %17 = vector.broadcast %c24_i32 : i32 to vector<1x32xi32>
    %18 = arith.cmpi slt, %0, %17 : vector<1x32xi32>
    %19 = arith.andi %16, %18 : vector<1x32xi1>
    %20 = arith.extui %19 : vector<1x32xi1> to vector<1x32xi32>
    %21 = arith.sitofp %20 : vector<1x32xi32> to vector<1x32xf32>
    %c24_i32_2 = arith.constant 24 : i32
    %22 = vector.broadcast %c24_i32_2 : i32 to vector<1x32xi32>
    %23 = arith.cmpi sge, %0, %22 : vector<1x32xi32>
    %c32_i32 = arith.constant 32 : i32
    %24 = vector.broadcast %c32_i32 : i32 to vector<1x32xi32>
    %25 = arith.cmpi slt, %0, %24 : vector<1x32xi32>
    %26 = arith.andi %23, %25 : vector<1x32xi1>
    %27 = arith.extui %26 : vector<1x32xi1> to vector<1x32xi32>
    %28 = arith.sitofp %27 : vector<1x32xi32> to vector<1x32xf32>
    %c0 = arith.constant 0 : index
    %c0_3 = arith.constant 0 : index
    %29 = vector.load %arg3[%c0, %c0_3] : memref<48x48xf32, #tpu.memory_space<vmem>>, vector<48x48xf32>
    %c0_4 = arith.constant 0 : index
    %c0_5 = arith.constant 0 : index
    %30 = vector.load %arg1[%c0_4, %c0_5] : memref<48x48xf32, #tpu.memory_space<vmem>>, vector<48x48xf32>
    %31 = arith.truncf %30 : vector<48x48xf32> to vector<48x48xbf16>
    %c0_6 = arith.constant 0 : index
    %c0_7 = arith.constant 0 : index
    %32 = vector.load %arg4[%c0_6, %c0_7] : memref<656x128xbf16, #tpu.memory_space<vmem>>, vector<48x32xbf16>
    %cst = arith.constant dense<0.000000e+00> : vector<48x32xf32>
    %33 = tpu.matmul %31, %32, %cst {dimension_numbers = #tpu.dot_dimension_numbers<[1], [0], [0], [1], [0, 0, 1, 1], [], []>} : vector<48x48xbf16>, vector<48x32xbf16>, vector<48x32xf32> -> vector<48x32xf32>
    %c0_8 = arith.constant 0 : index
    %c0_9 = arith.constant 0 : index
    %34 = vector.load %arg2[%c0_8, %c0_9] : memref<48x32xf32, #tpu.memory_space<vmem>>, vector<48x32xf32>
    %35 = arith.addf %33, %34 : vector<48x32xf32>
    %c0_10 = arith.constant 0 : index
    %c0_11 = arith.constant 0 : index
    %36 = vector.load %arg5[%c0_10, %c0_11] : memref<32x128xf32, #tpu.memory_space<vmem>>, vector<1x32xf32>
    %c1 = arith.constant 1 : index
    %c0_12 = arith.constant 0 : index
    %37 = vector.load %arg5[%c1, %c0_12] : memref<32x128xf32, #tpu.memory_space<vmem>>, vector<1x32xf32>
    %cst_13 = arith.constant dense<0.000000e+00> : vector<48xf32>
    %38 = vector.multi_reduction <add>, %35, %cst_13 [1] : vector<48x32xf32> to vector<48xf32>
    %39 = vector.shape_cast %38 : vector<48xf32> to vector<48x1xf32>
    %cst_14 = arith.constant 3.200000e+01 : f32
    %40 = vector.broadcast %cst_14 : f32 to vector<48x1xf32>
    %41 = arith.divf %39, %40 : vector<48x1xf32>
    %42 = vector.broadcast %41 : vector<48x1xf32> to vector<48x32xf32>
    %43 = arith.subf %35, %42 : vector<48x32xf32>
    %44 = arith.mulf %43, %43 : vector<48x32xf32>
    %cst_15 = arith.constant dense<0.000000e+00> : vector<48xf32>
    %45 = vector.multi_reduction <add>, %44, %cst_15 [1] : vector<48x32xf32> to vector<48xf32>
    %46 = vector.shape_cast %45 : vector<48xf32> to vector<48x1xf32>
    %cst_16 = arith.constant 3.200000e+01 : f32
    %47 = vector.broadcast %cst_16 : f32 to vector<48x1xf32>
    %48 = arith.divf %46, %47 : vector<48x1xf32>
    %49 = vector.broadcast %41 : vector<48x1xf32> to vector<48x32xf32>
    %50 = arith.subf %35, %49 : vector<48x32xf32>
    %cst_17 = arith.constant 9.99999974E-6 : f32
    %51 = vector.broadcast %cst_17 : f32 to vector<48x1xf32>
    %52 = arith.addf %48, %51 : vector<48x1xf32>
    %53 = math.rsqrt %52 : vector<48x1xf32>
    %54 = vector.broadcast %53 : vector<48x1xf32> to vector<48x32xf32>
    %55 = arith.mulf %50, %54 : vector<48x32xf32>
    %56 = vector.broadcast %36 : vector<1x32xf32> to vector<48x32xf32>
    %57 = arith.mulf %55, %56 : vector<48x32xf32>
    %58 = vector.broadcast %37 : vector<1x32xf32> to vector<48x32xf32>
    %59 = arith.addf %57, %58 : vector<48x32xf32>
    %60 = arith.truncf %59 : vector<48x32xf32> to vector<48x32xbf16>
    %c48 = arith.constant 48 : index
    %c0_18 = arith.constant 0 : index
    %61 = vector.load %arg4[%c48, %c0_18] : memref<656x128xbf16, #tpu.memory_space<vmem>>, vector<32x32xbf16>
    %cst_19 = arith.constant dense<0.000000e+00> : vector<48x32xf32>
    %62 = tpu.matmul %60, %61, %cst_19 {dimension_numbers = #tpu.dot_dimension_numbers<[1], [0], [0], [1], [0, 0, 1, 1], [], []>} : vector<48x32xbf16>, vector<32x32xbf16>, vector<48x32xf32> -> vector<48x32xf32>
    %c2 = arith.constant 2 : index
    %c0_20 = arith.constant 0 : index
    %63 = vector.load %arg5[%c2, %c0_20] : memref<32x128xf32, #tpu.memory_space<vmem>>, vector<1x32xf32>
    %64 = vector.broadcast %63 : vector<1x32xf32> to vector<48x32xf32>
    %65 = arith.addf %62, %64 : vector<48x32xf32>
    %c80 = arith.constant 80 : index
    %c0_21 = arith.constant 0 : index
    %66 = vector.load %arg4[%c80, %c0_21] : memref<656x128xbf16, #tpu.memory_space<vmem>>, vector<32x32xbf16>
    %cst_22 = arith.constant dense<0.000000e+00> : vector<48x32xf32>
    %67 = tpu.matmul %60, %66, %cst_22 {dimension_numbers = #tpu.dot_dimension_numbers<[1], [0], [0], [1], [0, 0, 1, 1], [], []>} : vector<48x32xbf16>, vector<32x32xbf16>, vector<48x32xf32> -> vector<48x32xf32>
    %c3 = arith.constant 3 : index
    %c0_23 = arith.constant 0 : index
    %68 = vector.load %arg5[%c3, %c0_23] : memref<32x128xf32, #tpu.memory_space<vmem>>, vector<1x32xf32>
    %69 = vector.broadcast %68 : vector<1x32xf32> to vector<48x32xf32>
    %70 = arith.addf %67, %69 : vector<48x32xf32>
    %c112 = arith.constant 112 : index
    %c0_24 = arith.constant 0 : index
    %71 = vector.load %arg4[%c112, %c0_24] : memref<656x128xbf16, #tpu.memory_space<vmem>>, vector<32x32xbf16>
    %cst_25 = arith.constant dense<0.000000e+00> : vector<48x32xf32>
    %72 = tpu.matmul %60, %71, %cst_25 {dimension_numbers = #tpu.dot_dimension_numbers<[1], [0], [0], [1], [0, 0, 1, 1], [], []>} : vector<48x32xbf16>, vector<32x32xbf16>, vector<48x32xf32> -> vector<48x32xf32>
    %c4 = arith.constant 4 : index
    %c0_26 = arith.constant 0 : index
    %73 = vector.load %arg5[%c4, %c0_26] : memref<32x128xf32, #tpu.memory_space<vmem>>, vector<1x32xf32>
    %74 = vector.broadcast %73 : vector<1x32xf32> to vector<48x32xf32>
    %75 = arith.addf %72, %74 : vector<48x32xf32>
    %76 = arith.truncf %70 : vector<48x32xf32> to vector<48x32xbf16>
    %cst_27 = arith.constant 0.000000e+00 : f32
    %77 = vector.broadcast %cst_27 : f32 to vector<48x32xf32>
    %78 = vector.broadcast %7 : vector<1x32xf32> to vector<48x32xf32>
    %79 = arith.mulf %65, %78 : vector<48x32xf32>
    %80 = arith.truncf %79 : vector<48x32xf32> to vector<48x32xbf16>
    %81 = vector.broadcast %7 : vector<1x32xf32> to vector<48x32xf32>
    %82 = arith.mulf %75, %81 : vector<48x32xf32>
    %83 = arith.truncf %82 : vector<48x32xf32> to vector<48x32xbf16>
    %cst_28 = arith.constant dense<0.000000e+00> : vector<48x48xf32>
    %84 = tpu.matmul %80, %76, %cst_28 {dimension_numbers = #tpu.dot_dimension_numbers<[1], [1], [0], [0], [0, 0, 1, 0], [], []>} : vector<48x32xbf16>, vector<48x32xbf16>, vector<48x48xf32> -> vector<48x48xf32>
    %85 = arith.mulf %84, %29 : vector<48x48xf32>
    %86 = arith.truncf %85 : vector<48x48xf32> to vector<48x48xbf16>
    %cst_29 = arith.constant dense<0.000000e+00> : vector<48x32xf32>
    %87 = tpu.matmul %86, %83, %cst_29 {dimension_numbers = #tpu.dot_dimension_numbers<[1], [0], [0], [1], [0, 0, 1, 1], [], []>} : vector<48x48xbf16>, vector<48x32xbf16>, vector<48x32xf32> -> vector<48x32xf32>
    %88 = arith.addf %77, %87 : vector<48x32xf32>
    %89 = vector.broadcast %14 : vector<1x32xf32> to vector<48x32xf32>
    %90 = arith.mulf %65, %89 : vector<48x32xf32>
    %91 = arith.truncf %90 : vector<48x32xf32> to vector<48x32xbf16>
    %92 = vector.broadcast %14 : vector<1x32xf32> to vector<48x32xf32>
    %93 = arith.mulf %75, %92 : vector<48x32xf32>
    %94 = arith.truncf %93 : vector<48x32xf32> to vector<48x32xbf16>
    %cst_30 = arith.constant dense<0.000000e+00> : vector<48x48xf32>
    %95 = tpu.matmul %91, %76, %cst_30 {dimension_numbers = #tpu.dot_dimension_numbers<[1], [1], [0], [0], [0, 0, 1, 0], [], []>} : vector<48x32xbf16>, vector<48x32xbf16>, vector<48x48xf32> -> vector<48x48xf32>
    %96 = arith.mulf %95, %29 : vector<48x48xf32>
    %97 = arith.truncf %96 : vector<48x48xf32> to vector<48x48xbf16>
    %cst_31 = arith.constant dense<0.000000e+00> : vector<48x32xf32>
    %98 = tpu.matmul %97, %94, %cst_31 {dimension_numbers = #tpu.dot_dimension_numbers<[1], [0], [0], [1], [0, 0, 1, 1], [], []>} : vector<48x48xbf16>, vector<48x32xbf16>, vector<48x32xf32> -> vector<48x32xf32>
    %99 = arith.addf %88, %98 : vector<48x32xf32>
    %100 = vector.broadcast %21 : vector<1x32xf32> to vector<48x32xf32>
    %101 = arith.mulf %65, %100 : vector<48x32xf32>
    %102 = arith.truncf %101 : vector<48x32xf32> to vector<48x32xbf16>
    %103 = vector.broadcast %21 : vector<1x32xf32> to vector<48x32xf32>
    %104 = arith.mulf %75, %103 : vector<48x32xf32>
    %105 = arith.truncf %104 : vector<48x32xf32> to vector<48x32xbf16>
    %cst_32 = arith.constant dense<0.000000e+00> : vector<48x48xf32>
    %106 = tpu.matmul %102, %76, %cst_32 {dimension_numbers = #tpu.dot_dimension_numbers<[1], [1], [0], [0], [0, 0, 1, 0], [], []>} : vector<48x32xbf16>, vector<48x32xbf16>, vector<48x48xf32> -> vector<48x48xf32>
    %107 = arith.mulf %106, %29 : vector<48x48xf32>
    %108 = arith.truncf %107 : vector<48x48xf32> to vector<48x48xbf16>
    %cst_33 = arith.constant dense<0.000000e+00> : vector<48x32xf32>
    %109 = tpu.matmul %108, %105, %cst_33 {dimension_numbers = #tpu.dot_dimension_numbers<[1], [0], [0], [1], [0, 0, 1, 1], [], []>} : vector<48x48xbf16>, vector<48x32xbf16>, vector<48x32xf32> -> vector<48x32xf32>
    %110 = arith.addf %99, %109 : vector<48x32xf32>
    %111 = vector.broadcast %28 : vector<1x32xf32> to vector<48x32xf32>
    %112 = arith.mulf %65, %111 : vector<48x32xf32>
    %113 = arith.truncf %112 : vector<48x32xf32> to vector<48x32xbf16>
    %114 = vector.broadcast %28 : vector<1x32xf32> to vector<48x32xf32>
    %115 = arith.mulf %75, %114 : vector<48x32xf32>
    %116 = arith.truncf %115 : vector<48x32xf32> to vector<48x32xbf16>
    %cst_34 = arith.constant dense<0.000000e+00> : vector<48x48xf32>
    %117 = tpu.matmul %113, %76, %cst_34 {dimension_numbers = #tpu.dot_dimension_numbers<[1], [1], [0], [0], [0, 0, 1, 0], [], []>} : vector<48x32xbf16>, vector<48x32xbf16>, vector<48x48xf32> -> vector<48x48xf32>
    %118 = arith.mulf %117, %29 : vector<48x48xf32>
    %119 = arith.truncf %118 : vector<48x48xf32> to vector<48x48xbf16>
    %cst_35 = arith.constant dense<0.000000e+00> : vector<48x32xf32>
    %120 = tpu.matmul %119, %116, %cst_35 {dimension_numbers = #tpu.dot_dimension_numbers<[1], [0], [0], [1], [0, 0, 1, 1], [], []>} : vector<48x48xbf16>, vector<48x32xbf16>, vector<48x32xf32> -> vector<48x32xf32>
    %121 = arith.addf %110, %120 : vector<48x32xf32>
    %c5 = arith.constant 5 : index
    %c0_36 = arith.constant 0 : index
    %122 = vector.load %arg5[%c5, %c0_36] : memref<32x128xf32, #tpu.memory_space<vmem>>, vector<1x32xf32>
    %c6 = arith.constant 6 : index
    %c0_37 = arith.constant 0 : index
    %123 = vector.load %arg5[%c6, %c0_37] : memref<32x128xf32, #tpu.memory_space<vmem>>, vector<1x32xf32>
    %cst_38 = arith.constant dense<0.000000e+00> : vector<48xf32>
    %124 = vector.multi_reduction <add>, %121, %cst_38 [1] : vector<48x32xf32> to vector<48xf32>
    %125 = vector.shape_cast %124 : vector<48xf32> to vector<48x1xf32>
    %cst_39 = arith.constant 3.200000e+01 : f32
    %126 = vector.broadcast %cst_39 : f32 to vector<48x1xf32>
    %127 = arith.divf %125, %126 : vector<48x1xf32>
    %128 = vector.broadcast %127 : vector<48x1xf32> to vector<48x32xf32>
    %129 = arith.subf %121, %128 : vector<48x32xf32>
    %130 = arith.mulf %129, %129 : vector<48x32xf32>
    %cst_40 = arith.constant dense<0.000000e+00> : vector<48xf32>
    %131 = vector.multi_reduction <add>, %130, %cst_40 [1] : vector<48x32xf32> to vector<48xf32>
    %132 = vector.shape_cast %131 : vector<48xf32> to vector<48x1xf32>
    %cst_41 = arith.constant 3.200000e+01 : f32
    %133 = vector.broadcast %cst_41 : f32 to vector<48x1xf32>
    %134 = arith.divf %132, %133 : vector<48x1xf32>
    %135 = vector.broadcast %127 : vector<48x1xf32> to vector<48x32xf32>
    %136 = arith.subf %121, %135 : vector<48x32xf32>
    %cst_42 = arith.constant 9.99999974E-6 : f32
    %137 = vector.broadcast %cst_42 : f32 to vector<48x1xf32>
    %138 = arith.addf %134, %137 : vector<48x1xf32>
    %139 = math.rsqrt %138 : vector<48x1xf32>
    %140 = vector.broadcast %139 : vector<48x1xf32> to vector<48x32xf32>
    %141 = arith.mulf %136, %140 : vector<48x32xf32>
    %142 = vector.broadcast %122 : vector<1x32xf32> to vector<48x32xf32>
    %143 = arith.mulf %141, %142 : vector<48x32xf32>
    %144 = vector.broadcast %123 : vector<1x32xf32> to vector<48x32xf32>
    %145 = arith.addf %143, %144 : vector<48x32xf32>
    %cst_43 = arith.constant 5.000000e-01 : f32
    %146 = vector.broadcast %cst_43 : f32 to vector<48x32xf32>
    %147 = arith.mulf %146, %145 : vector<48x32xf32>
    %cst_44 = arith.constant 2.000000e+00 : f32
    %148 = math.sqrt %cst_44 : f32
    %cst_45 = arith.constant 1.000000e+00 : f32
    %149 = arith.divf %cst_45, %148 : f32
    %150 = vector.broadcast %149 : f32 to vector<48x32xf32>
    %151 = arith.mulf %145, %150 : vector<48x32xf32>
    %152 = math.erf %151 : vector<48x32xf32>
    %cst_46 = arith.constant 1.000000e+00 : f32
    %153 = vector.broadcast %cst_46 : f32 to vector<48x32xf32>
    %154 = arith.addf %153, %152 : vector<48x32xf32>
    %155 = arith.mulf %147, %154 : vector<48x32xf32>
    %156 = arith.truncf %155 : vector<48x32xf32> to vector<48x32xbf16>
    %c144 = arith.constant 144 : index
    %c0_47 = arith.constant 0 : index
    %157 = vector.load %arg4[%c144, %c0_47] : memref<656x128xbf16, #tpu.memory_space<vmem>>, vector<32x32xbf16>
    %cst_48 = arith.constant dense<0.000000e+00> : vector<48x32xf32>
    %158 = tpu.matmul %156, %157, %cst_48 {dimension_numbers = #tpu.dot_dimension_numbers<[1], [0], [0], [1], [0, 0, 1, 1], [], []>} : vector<48x32xbf16>, vector<32x32xbf16>, vector<48x32xf32> -> vector<48x32xf32>
    %c7 = arith.constant 7 : index
    %c0_49 = arith.constant 0 : index
    %159 = vector.load %arg5[%c7, %c0_49] : memref<32x128xf32, #tpu.memory_space<vmem>>, vector<1x32xf32>
    %160 = vector.broadcast %159 : vector<1x32xf32> to vector<48x32xf32>
    %161 = arith.addf %158, %160 : vector<48x32xf32>
    %162 = arith.addf %161, %35 : vector<48x32xf32>
    %c8 = arith.constant 8 : index
    %c0_50 = arith.constant 0 : index
    %163 = vector.load %arg5[%c8, %c0_50] : memref<32x128xf32, #tpu.memory_space<vmem>>, vector<1x32xf32>
    %c9 = arith.constant 9 : index
    %c0_51 = arith.constant 0 : index
    %164 = vector.load %arg5[%c9, %c0_51] : memref<32x128xf32, #tpu.memory_space<vmem>>, vector<1x32xf32>
    %cst_52 = arith.constant dense<0.000000e+00> : vector<48xf32>
    %165 = vector.multi_reduction <add>, %162, %cst_52 [1] : vector<48x32xf32> to vector<48xf32>
    %166 = vector.shape_cast %165 : vector<48xf32> to vector<48x1xf32>
    %cst_53 = arith.constant 3.200000e+01 : f32
    %167 = vector.broadcast %cst_53 : f32 to vector<48x1xf32>
    %168 = arith.divf %166, %167 : vector<48x1xf32>
    %169 = vector.broadcast %168 : vector<48x1xf32> to vector<48x32xf32>
    %170 = arith.subf %162, %169 : vector<48x32xf32>
    %171 = arith.mulf %170, %170 : vector<48x32xf32>
    %cst_54 = arith.constant dense<0.000000e+00> : vector<48xf32>
    %172 = vector.multi_reduction <add>, %171, %cst_54 [1] : vector<48x32xf32> to vector<48xf32>
    %173 = vector.shape_cast %172 : vector<48xf32> to vector<48x1xf32>
    %cst_55 = arith.constant 3.200000e+01 : f32
    %174 = vector.broadcast %cst_55 : f32 to vector<48x1xf32>
    %175 = arith.divf %173, %174 : vector<48x1xf32>
    %176 = vector.broadcast %168 : vector<48x1xf32> to vector<48x32xf32>
    %177 = arith.subf %162, %176 : vector<48x32xf32>
    %cst_56 = arith.constant 9.99999974E-6 : f32
    %178 = vector.broadcast %cst_56 : f32 to vector<48x1xf32>
    %179 = arith.addf %175, %178 : vector<48x1xf32>
    %180 = math.rsqrt %179 : vector<48x1xf32>
    %181 = vector.broadcast %180 : vector<48x1xf32> to vector<48x32xf32>
    %182 = arith.mulf %177, %181 : vector<48x32xf32>
    %183 = vector.broadcast %163 : vector<1x32xf32> to vector<48x32xf32>
    %184 = arith.mulf %182, %183 : vector<48x32xf32>
    %185 = vector.broadcast %164 : vector<1x32xf32> to vector<48x32xf32>
    %186 = arith.addf %184, %185 : vector<48x32xf32>
    %187 = arith.truncf %186 : vector<48x32xf32> to vector<48x32xbf16>
    %c176 = arith.constant 176 : index
    %c0_57 = arith.constant 0 : index
    %188 = vector.load %arg4[%c176, %c0_57] : memref<656x128xbf16, #tpu.memory_space<vmem>>, vector<32x128xbf16>
    %cst_58 = arith.constant dense<0.000000e+00> : vector<48x128xf32>
    %189 = tpu.matmul %187, %188, %cst_58 {dimension_numbers = #tpu.dot_dimension_numbers<[1], [0], [0], [1], [0, 0, 1, 1], [], []>} : vector<48x32xbf16>, vector<32x128xbf16>, vector<48x128xf32> -> vector<48x128xf32>
    %c10 = arith.constant 10 : index
    %c0_59 = arith.constant 0 : index
    %190 = vector.load %arg5[%c10, %c0_59] : memref<32x128xf32, #tpu.memory_space<vmem>>, vector<1x128xf32>
    %191 = vector.broadcast %190 : vector<1x128xf32> to vector<48x128xf32>
    %192 = arith.addf %189, %191 : vector<48x128xf32>
    %cst_60 = arith.constant 5.000000e-01 : f32
    %193 = vector.broadcast %cst_60 : f32 to vector<48x128xf32>
    %194 = arith.mulf %193, %192 : vector<48x128xf32>
    %cst_61 = arith.constant 2.000000e+00 : f32
    %195 = math.sqrt %cst_61 : f32
    %cst_62 = arith.constant 1.000000e+00 : f32
    %196 = arith.divf %cst_62, %195 : f32
    %197 = vector.broadcast %196 : f32 to vector<48x128xf32>
    %198 = arith.mulf %192, %197 : vector<48x128xf32>
    %199 = math.erf %198 : vector<48x128xf32>
    %cst_63 = arith.constant 1.000000e+00 : f32
    %200 = vector.broadcast %cst_63 : f32 to vector<48x128xf32>
    %201 = arith.addf %200, %199 : vector<48x128xf32>
    %202 = arith.mulf %194, %201 : vector<48x128xf32>
    %203 = arith.truncf %202 : vector<48x128xf32> to vector<48x128xbf16>
    %c208 = arith.constant 208 : index
    %c0_64 = arith.constant 0 : index
    %204 = vector.load %arg4[%c208, %c0_64] : memref<656x128xbf16, #tpu.memory_space<vmem>>, vector<128x32xbf16>
    %cst_65 = arith.constant dense<0.000000e+00> : vector<48x32xf32>
    %205 = tpu.matmul %203, %204, %cst_65 {dimension_numbers = #tpu.dot_dimension_numbers<[1], [0], [0], [1], [0, 0, 1, 1], [], []>} : vector<48x128xbf16>, vector<128x32xbf16>, vector<48x32xf32> -> vector<48x32xf32>
    %c11 = arith.constant 11 : index
    %c0_66 = arith.constant 0 : index
    %206 = vector.load %arg5[%c11, %c0_66] : memref<32x128xf32, #tpu.memory_space<vmem>>, vector<1x32xf32>
    %207 = vector.broadcast %206 : vector<1x32xf32> to vector<48x32xf32>
    %208 = arith.addf %205, %207 : vector<48x32xf32>
    %209 = arith.addf %208, %162 : vector<48x32xf32>
    %c12 = arith.constant 12 : index
    %c0_67 = arith.constant 0 : index
    %210 = vector.load %arg5[%c12, %c0_67] : memref<32x128xf32, #tpu.memory_space<vmem>>, vector<1x32xf32>
    %c13 = arith.constant 13 : index
    %c0_68 = arith.constant 0 : index
    %211 = vector.load %arg5[%c13, %c0_68] : memref<32x128xf32, #tpu.memory_space<vmem>>, vector<1x32xf32>
    %cst_69 = arith.constant dense<0.000000e+00> : vector<48xf32>
    %212 = vector.multi_reduction <add>, %209, %cst_69 [1] : vector<48x32xf32> to vector<48xf32>
    %213 = vector.shape_cast %212 : vector<48xf32> to vector<48x1xf32>
    %cst_70 = arith.constant 3.200000e+01 : f32
    %214 = vector.broadcast %cst_70 : f32 to vector<48x1xf32>
    %215 = arith.divf %213, %214 : vector<48x1xf32>
    %216 = vector.broadcast %215 : vector<48x1xf32> to vector<48x32xf32>
    %217 = arith.subf %209, %216 : vector<48x32xf32>
    %218 = arith.mulf %217, %217 : vector<48x32xf32>
    %cst_71 = arith.constant dense<0.000000e+00> : vector<48xf32>
    %219 = vector.multi_reduction <add>, %218, %cst_71 [1] : vector<48x32xf32> to vector<48xf32>
    %220 = vector.shape_cast %219 : vector<48xf32> to vector<48x1xf32>
    %cst_72 = arith.constant 3.200000e+01 : f32
    %221 = vector.broadcast %cst_72 : f32 to vector<48x1xf32>
    %222 = arith.divf %220, %221 : vector<48x1xf32>
    %223 = vector.broadcast %215 : vector<48x1xf32> to vector<48x32xf32>
    %224 = arith.subf %209, %223 : vector<48x32xf32>
    %cst_73 = arith.constant 9.99999974E-6 : f32
    %225 = vector.broadcast %cst_73 : f32 to vector<48x1xf32>
    %226 = arith.addf %222, %225 : vector<48x1xf32>
    %227 = math.rsqrt %226 : vector<48x1xf32>
    %228 = vector.broadcast %227 : vector<48x1xf32> to vector<48x32xf32>
    %229 = arith.mulf %224, %228 : vector<48x32xf32>
    %230 = vector.broadcast %210 : vector<1x32xf32> to vector<48x32xf32>
    %231 = arith.mulf %229, %230 : vector<48x32xf32>
    %232 = vector.broadcast %211 : vector<1x32xf32> to vector<48x32xf32>
    %233 = arith.addf %231, %232 : vector<48x32xf32>
    %234 = arith.truncf %233 : vector<48x32xf32> to vector<48x32xbf16>
    %c336 = arith.constant 336 : index
    %c0_74 = arith.constant 0 : index
    %235 = vector.load %arg4[%c336, %c0_74] : memref<656x128xbf16, #tpu.memory_space<vmem>>, vector<32x32xbf16>
    %cst_75 = arith.constant dense<0.000000e+00> : vector<48x32xf32>
    %236 = tpu.matmul %234, %235, %cst_75 {dimension_numbers = #tpu.dot_dimension_numbers<[1], [0], [0], [1], [0, 0, 1, 1], [], []>} : vector<48x32xbf16>, vector<32x32xbf16>, vector<48x32xf32> -> vector<48x32xf32>
    %c14 = arith.constant 14 : index
    %c0_76 = arith.constant 0 : index
    %237 = vector.load %arg5[%c14, %c0_76] : memref<32x128xf32, #tpu.memory_space<vmem>>, vector<1x32xf32>
    %238 = vector.broadcast %237 : vector<1x32xf32> to vector<48x32xf32>
    %239 = arith.addf %236, %238 : vector<48x32xf32>
    %c368 = arith.constant 368 : index
    %c0_77 = arith.constant 0 : index
    %240 = vector.load %arg4[%c368, %c0_77] : memref<656x128xbf16, #tpu.memory_space<vmem>>, vector<32x32xbf16>
    %cst_78 = arith.constant dense<0.000000e+00> : vector<48x32xf32>
    %241 = tpu.matmul %234, %240, %cst_78 {dimension_numbers = #tpu.dot_dimension_numbers<[1], [0], [0], [1], [0, 0, 1, 1], [], []>} : vector<48x32xbf16>, vector<32x32xbf16>, vector<48x32xf32> -> vector<48x32xf32>
    %c15 = arith.constant 15 : index
    %c0_79 = arith.constant 0 : index
    %242 = vector.load %arg5[%c15, %c0_79] : memref<32x128xf32, #tpu.memory_space<vmem>>, vector<1x32xf32>
    %243 = vector.broadcast %242 : vector<1x32xf32> to vector<48x32xf32>
    %244 = arith.addf %241, %243 : vector<48x32xf32>
    %c400 = arith.constant 400 : index
    %c0_80 = arith.constant 0 : index
    %245 = vector.load %arg4[%c400, %c0_80] : memref<656x128xbf16, #tpu.memory_space<vmem>>, vector<32x32xbf16>
    %cst_81 = arith.constant dense<0.000000e+00> : vector<48x32xf32>
    %246 = tpu.matmul %234, %245, %cst_81 {dimension_numbers = #tpu.dot_dimension_numbers<[1], [0], [0], [1], [0, 0, 1, 1], [], []>} : vector<48x32xbf16>, vector<32x32xbf16>, vector<48x32xf32> -> vector<48x32xf32>
    %c16 = arith.constant 16 : index
    %c0_82 = arith.constant 0 : index
    %247 = vector.load %arg5[%c16, %c0_82] : memref<32x128xf32, #tpu.memory_space<vmem>>, vector<1x32xf32>
    %248 = vector.broadcast %247 : vector<1x32xf32> to vector<48x32xf32>
    %249 = arith.addf %246, %248 : vector<48x32xf32>
    %250 = arith.truncf %244 : vector<48x32xf32> to vector<48x32xbf16>
    %cst_83 = arith.constant 0.000000e+00 : f32
    %251 = vector.broadcast %cst_83 : f32 to vector<48x32xf32>
    %252 = vector.broadcast %7 : vector<1x32xf32> to vector<48x32xf32>
    %253 = arith.mulf %239, %252 : vector<48x32xf32>
    %254 = arith.truncf %253 : vector<48x32xf32> to vector<48x32xbf16>
    %255 = vector.broadcast %7 : vector<1x32xf32> to vector<48x32xf32>
    %256 = arith.mulf %249, %255 : vector<48x32xf32>
    %257 = arith.truncf %256 : vector<48x32xf32> to vector<48x32xbf16>
    %cst_84 = arith.constant dense<0.000000e+00> : vector<48x48xf32>
    %258 = tpu.matmul %254, %250, %cst_84 {dimension_numbers = #tpu.dot_dimension_numbers<[1], [1], [0], [0], [0, 0, 1, 0], [], []>} : vector<48x32xbf16>, vector<48x32xbf16>, vector<48x48xf32> -> vector<48x48xf32>
    %259 = arith.mulf %258, %29 : vector<48x48xf32>
    %260 = arith.truncf %259 : vector<48x48xf32> to vector<48x48xbf16>
    %cst_85 = arith.constant dense<0.000000e+00> : vector<48x32xf32>
    %261 = tpu.matmul %260, %257, %cst_85 {dimension_numbers = #tpu.dot_dimension_numbers<[1], [0], [0], [1], [0, 0, 1, 1], [], []>} : vector<48x48xbf16>, vector<48x32xbf16>, vector<48x32xf32> -> vector<48x32xf32>
    %262 = arith.addf %251, %261 : vector<48x32xf32>
    %263 = vector.broadcast %14 : vector<1x32xf32> to vector<48x32xf32>
    %264 = arith.mulf %239, %263 : vector<48x32xf32>
    %265 = arith.truncf %264 : vector<48x32xf32> to vector<48x32xbf16>
    %266 = vector.broadcast %14 : vector<1x32xf32> to vector<48x32xf32>
    %267 = arith.mulf %249, %266 : vector<48x32xf32>
    %268 = arith.truncf %267 : vector<48x32xf32> to vector<48x32xbf16>
    %cst_86 = arith.constant dense<0.000000e+00> : vector<48x48xf32>
    %269 = tpu.matmul %265, %250, %cst_86 {dimension_numbers = #tpu.dot_dimension_numbers<[1], [1], [0], [0], [0, 0, 1, 0], [], []>} : vector<48x32xbf16>, vector<48x32xbf16>, vector<48x48xf32> -> vector<48x48xf32>
    %270 = arith.mulf %269, %29 : vector<48x48xf32>
    %271 = arith.truncf %270 : vector<48x48xf32> to vector<48x48xbf16>
    %cst_87 = arith.constant dense<0.000000e+00> : vector<48x32xf32>
    %272 = tpu.matmul %271, %268, %cst_87 {dimension_numbers = #tpu.dot_dimension_numbers<[1], [0], [0], [1], [0, 0, 1, 1], [], []>} : vector<48x48xbf16>, vector<48x32xbf16>, vector<48x32xf32> -> vector<48x32xf32>
    %273 = arith.addf %262, %272 : vector<48x32xf32>
    %274 = vector.broadcast %21 : vector<1x32xf32> to vector<48x32xf32>
    %275 = arith.mulf %239, %274 : vector<48x32xf32>
    %276 = arith.truncf %275 : vector<48x32xf32> to vector<48x32xbf16>
    %277 = vector.broadcast %21 : vector<1x32xf32> to vector<48x32xf32>
    %278 = arith.mulf %249, %277 : vector<48x32xf32>
    %279 = arith.truncf %278 : vector<48x32xf32> to vector<48x32xbf16>
    %cst_88 = arith.constant dense<0.000000e+00> : vector<48x48xf32>
    %280 = tpu.matmul %276, %250, %cst_88 {dimension_numbers = #tpu.dot_dimension_numbers<[1], [1], [0], [0], [0, 0, 1, 0], [], []>} : vector<48x32xbf16>, vector<48x32xbf16>, vector<48x48xf32> -> vector<48x48xf32>
    %281 = arith.mulf %280, %29 : vector<48x48xf32>
    %282 = arith.truncf %281 : vector<48x48xf32> to vector<48x48xbf16>
    %cst_89 = arith.constant dense<0.000000e+00> : vector<48x32xf32>
    %283 = tpu.matmul %282, %279, %cst_89 {dimension_numbers = #tpu.dot_dimension_numbers<[1], [0], [0], [1], [0, 0, 1, 1], [], []>} : vector<48x48xbf16>, vector<48x32xbf16>, vector<48x32xf32> -> vector<48x32xf32>
    %284 = arith.addf %273, %283 : vector<48x32xf32>
    %285 = vector.broadcast %28 : vector<1x32xf32> to vector<48x32xf32>
    %286 = arith.mulf %239, %285 : vector<48x32xf32>
    %287 = arith.truncf %286 : vector<48x32xf32> to vector<48x32xbf16>
    %288 = vector.broadcast %28 : vector<1x32xf32> to vector<48x32xf32>
    %289 = arith.mulf %249, %288 : vector<48x32xf32>
    %290 = arith.truncf %289 : vector<48x32xf32> to vector<48x32xbf16>
    %cst_90 = arith.constant dense<0.000000e+00> : vector<48x48xf32>
    %291 = tpu.matmul %287, %250, %cst_90 {dimension_numbers = #tpu.dot_dimension_numbers<[1], [1], [0], [0], [0, 0, 1, 0], [], []>} : vector<48x32xbf16>, vector<48x32xbf16>, vector<48x48xf32> -> vector<48x48xf32>
    %292 = arith.mulf %291, %29 : vector<48x48xf32>
    %293 = arith.truncf %292 : vector<48x48xf32> to vector<48x48xbf16>
    %cst_91 = arith.constant dense<0.000000e+00> : vector<48x32xf32>
    %294 = tpu.matmul %293, %290, %cst_91 {dimension_numbers = #tpu.dot_dimension_numbers<[1], [0], [0], [1], [0, 0, 1, 1], [], []>} : vector<48x48xbf16>, vector<48x32xbf16>, vector<48x32xf32> -> vector<48x32xf32>
    %295 = arith.addf %284, %294 : vector<48x32xf32>
    %c17 = arith.constant 17 : index
    %c0_92 = arith.constant 0 : index
    %296 = vector.load %arg5[%c17, %c0_92] : memref<32x128xf32, #tpu.memory_space<vmem>>, vector<1x32xf32>
    %c18 = arith.constant 18 : index
    %c0_93 = arith.constant 0 : index
    %297 = vector.load %arg5[%c18, %c0_93] : memref<32x128xf32, #tpu.memory_space<vmem>>, vector<1x32xf32>
    %cst_94 = arith.constant dense<0.000000e+00> : vector<48xf32>
    %298 = vector.multi_reduction <add>, %295, %cst_94 [1] : vector<48x32xf32> to vector<48xf32>
    %299 = vector.shape_cast %298 : vector<48xf32> to vector<48x1xf32>
    %cst_95 = arith.constant 3.200000e+01 : f32
    %300 = vector.broadcast %cst_95 : f32 to vector<48x1xf32>
    %301 = arith.divf %299, %300 : vector<48x1xf32>
    %302 = vector.broadcast %301 : vector<48x1xf32> to vector<48x32xf32>
    %303 = arith.subf %295, %302 : vector<48x32xf32>
    %304 = arith.mulf %303, %303 : vector<48x32xf32>
    %cst_96 = arith.constant dense<0.000000e+00> : vector<48xf32>
    %305 = vector.multi_reduction <add>, %304, %cst_96 [1] : vector<48x32xf32> to vector<48xf32>
    %306 = vector.shape_cast %305 : vector<48xf32> to vector<48x1xf32>
    %cst_97 = arith.constant 3.200000e+01 : f32
    %307 = vector.broadcast %cst_97 : f32 to vector<48x1xf32>
    %308 = arith.divf %306, %307 : vector<48x1xf32>
    %309 = vector.broadcast %301 : vector<48x1xf32> to vector<48x32xf32>
    %310 = arith.subf %295, %309 : vector<48x32xf32>
    %cst_98 = arith.constant 9.99999974E-6 : f32
    %311 = vector.broadcast %cst_98 : f32 to vector<48x1xf32>
    %312 = arith.addf %308, %311 : vector<48x1xf32>
    %313 = math.rsqrt %312 : vector<48x1xf32>
    %314 = vector.broadcast %313 : vector<48x1xf32> to vector<48x32xf32>
    %315 = arith.mulf %310, %314 : vector<48x32xf32>
    %316 = vector.broadcast %296 : vector<1x32xf32> to vector<48x32xf32>
    %317 = arith.mulf %315, %316 : vector<48x32xf32>
    %318 = vector.broadcast %297 : vector<1x32xf32> to vector<48x32xf32>
    %319 = arith.addf %317, %318 : vector<48x32xf32>
    %cst_99 = arith.constant 5.000000e-01 : f32
    %320 = vector.broadcast %cst_99 : f32 to vector<48x32xf32>
    %321 = arith.mulf %320, %319 : vector<48x32xf32>
    %cst_100 = arith.constant 2.000000e+00 : f32
    %322 = math.sqrt %cst_100 : f32
    %cst_101 = arith.constant 1.000000e+00 : f32
    %323 = arith.divf %cst_101, %322 : f32
    %324 = vector.broadcast %323 : f32 to vector<48x32xf32>
    %325 = arith.mulf %319, %324 : vector<48x32xf32>
    %326 = math.erf %325 : vector<48x32xf32>
    %cst_102 = arith.constant 1.000000e+00 : f32
    %327 = vector.broadcast %cst_102 : f32 to vector<48x32xf32>
    %328 = arith.addf %327, %326 : vector<48x32xf32>
    %329 = arith.mulf %321, %328 : vector<48x32xf32>
    %330 = arith.truncf %329 : vector<48x32xf32> to vector<48x32xbf16>
    %c432 = arith.constant 432 : index
    %c0_103 = arith.constant 0 : index
    %331 = vector.load %arg4[%c432, %c0_103] : memref<656x128xbf16, #tpu.memory_space<vmem>>, vector<32x32xbf16>
    %cst_104 = arith.constant dense<0.000000e+00> : vector<48x32xf32>
    %332 = tpu.matmul %330, %331, %cst_104 {dimension_numbers = #tpu.dot_dimension_numbers<[1], [0], [0], [1], [0, 0, 1, 1], [], []>} : vector<48x32xbf16>, vector<32x32xbf16>, vector<48x32xf32> -> vector<48x32xf32>
    %c19 = arith.constant 19 : index
    %c0_105 = arith.constant 0 : index
    %333 = vector.load %arg5[%c19, %c0_105] : memref<32x128xf32, #tpu.memory_space<vmem>>, vector<1x32xf32>
    %334 = vector.broadcast %333 : vector<1x32xf32> to vector<48x32xf32>
    %335 = arith.addf %332, %334 : vector<48x32xf32>
    %336 = arith.addf %335, %209 : vector<48x32xf32>
    %c20 = arith.constant 20 : index
    %c0_106 = arith.constant 0 : index
    %337 = vector.load %arg5[%c20, %c0_106] : memref<32x128xf32, #tpu.memory_space<vmem>>, vector<1x32xf32>
    %c21 = arith.constant 21 : index
    %c0_107 = arith.constant 0 : index
    %338 = vector.load %arg5[%c21, %c0_107] : memref<32x128xf32, #tpu.memory_space<vmem>>, vector<1x32xf32>
    %cst_108 = arith.constant dense<0.000000e+00> : vector<48xf32>
    %339 = vector.multi_reduction <add>, %336, %cst_108 [1] : vector<48x32xf32> to vector<48xf32>
    %340 = vector.shape_cast %339 : vector<48xf32> to vector<48x1xf32>
    %cst_109 = arith.constant 3.200000e+01 : f32
    %341 = vector.broadcast %cst_109 : f32 to vector<48x1xf32>
    %342 = arith.divf %340, %341 : vector<48x1xf32>
    %343 = vector.broadcast %342 : vector<48x1xf32> to vector<48x32xf32>
    %344 = arith.subf %336, %343 : vector<48x32xf32>
    %345 = arith.mulf %344, %344 : vector<48x32xf32>
    %cst_110 = arith.constant dense<0.000000e+00> : vector<48xf32>
    %346 = vector.multi_reduction <add>, %345, %cst_110 [1] : vector<48x32xf32> to vector<48xf32>
    %347 = vector.shape_cast %346 : vector<48xf32> to vector<48x1xf32>
    %cst_111 = arith.constant 3.200000e+01 : f32
    %348 = vector.broadcast %cst_111 : f32 to vector<48x1xf32>
    %349 = arith.divf %347, %348 : vector<48x1xf32>
    %350 = vector.broadcast %342 : vector<48x1xf32> to vector<48x32xf32>
    %351 = arith.subf %336, %350 : vector<48x32xf32>
    %cst_112 = arith.constant 9.99999974E-6 : f32
    %352 = vector.broadcast %cst_112 : f32 to vector<48x1xf32>
    %353 = arith.addf %349, %352 : vector<48x1xf32>
    %354 = math.rsqrt %353 : vector<48x1xf32>
    %355 = vector.broadcast %354 : vector<48x1xf32> to vector<48x32xf32>
    %356 = arith.mulf %351, %355 : vector<48x32xf32>
    %357 = vector.broadcast %337 : vector<1x32xf32> to vector<48x32xf32>
    %358 = arith.mulf %356, %357 : vector<48x32xf32>
    %359 = vector.broadcast %338 : vector<1x32xf32> to vector<48x32xf32>
    %360 = arith.addf %358, %359 : vector<48x32xf32>
    %361 = arith.truncf %360 : vector<48x32xf32> to vector<48x32xbf16>
    %c464 = arith.constant 464 : index
    %c0_113 = arith.constant 0 : index
    %362 = vector.load %arg4[%c464, %c0_113] : memref<656x128xbf16, #tpu.memory_space<vmem>>, vector<32x128xbf16>
    %cst_114 = arith.constant dense<0.000000e+00> : vector<48x128xf32>
    %363 = tpu.matmul %361, %362, %cst_114 {dimension_numbers = #tpu.dot_dimension_numbers<[1], [0], [0], [1], [0, 0, 1, 1], [], []>} : vector<48x32xbf16>, vector<32x128xbf16>, vector<48x128xf32> -> vector<48x128xf32>
    %c22 = arith.constant 22 : index
    %c0_115 = arith.constant 0 : index
    %364 = vector.load %arg5[%c22, %c0_115] : memref<32x128xf32, #tpu.memory_space<vmem>>, vector<1x128xf32>
    %365 = vector.broadcast %364 : vector<1x128xf32> to vector<48x128xf32>
    %366 = arith.addf %363, %365 : vector<48x128xf32>
    %cst_116 = arith.constant 5.000000e-01 : f32
    %367 = vector.broadcast %cst_116 : f32 to vector<48x128xf32>
    %368 = arith.mulf %367, %366 : vector<48x128xf32>
    %cst_117 = arith.constant 2.000000e+00 : f32
    %369 = math.sqrt %cst_117 : f32
    %cst_118 = arith.constant 1.000000e+00 : f32
    %370 = arith.divf %cst_118, %369 : f32
    %371 = vector.broadcast %370 : f32 to vector<48x128xf32>
    %372 = arith.mulf %366, %371 : vector<48x128xf32>
    %373 = math.erf %372 : vector<48x128xf32>
    %cst_119 = arith.constant 1.000000e+00 : f32
    %374 = vector.broadcast %cst_119 : f32 to vector<48x128xf32>
    %375 = arith.addf %374, %373 : vector<48x128xf32>
    %376 = arith.mulf %368, %375 : vector<48x128xf32>
    %377 = arith.truncf %376 : vector<48x128xf32> to vector<48x128xbf16>
    %c496 = arith.constant 496 : index
    %c0_120 = arith.constant 0 : index
    %378 = vector.load %arg4[%c496, %c0_120] : memref<656x128xbf16, #tpu.memory_space<vmem>>, vector<128x32xbf16>
    %cst_121 = arith.constant dense<0.000000e+00> : vector<48x32xf32>
    %379 = tpu.matmul %377, %378, %cst_121 {dimension_numbers = #tpu.dot_dimension_numbers<[1], [0], [0], [1], [0, 0, 1, 1], [], []>} : vector<48x128xbf16>, vector<128x32xbf16>, vector<48x32xf32> -> vector<48x32xf32>
    %c23 = arith.constant 23 : index
    %c0_122 = arith.constant 0 : index
    %380 = vector.load %arg5[%c23, %c0_122] : memref<32x128xf32, #tpu.memory_space<vmem>>, vector<1x32xf32>
    %381 = vector.broadcast %380 : vector<1x32xf32> to vector<48x32xf32>
    %382 = arith.addf %379, %381 : vector<48x32xf32>
    %383 = arith.addf %382, %336 : vector<48x32xf32>
    %384 = vector.extract_strided_slice %383 {offsets = [16, 0], sizes = [1, 32], strides = [1, 1]} : vector<48x32xf32> to vector<1x32xf32>
    %385 = vector.extract_strided_slice %383 {offsets = [40, 0], sizes = [1, 32], strides = [1, 1]} : vector<48x32xf32> to vector<1x32xf32>
    %cst_123 = arith.constant 0.000000e+00 : f32
    %386 = vector.broadcast %cst_123 : f32 to vector<6x32xf32>
    %387 = tpu.concatenate %384, %385, %386 in 0 : vector<1x32xf32>, vector<1x32xf32>, vector<6x32xf32> -> vector<8x32xf32>
    %c24 = arith.constant 24 : index
    %c0_124 = arith.constant 0 : index
    %388 = vector.load %arg5[%c24, %c0_124] : memref<32x128xf32, #tpu.memory_space<vmem>>, vector<1x32xf32>
    %c25 = arith.constant 25 : index
    %c0_125 = arith.constant 0 : index
    %389 = vector.load %arg5[%c25, %c0_125] : memref<32x128xf32, #tpu.memory_space<vmem>>, vector<1x32xf32>
    %cst_126 = arith.constant dense<0.000000e+00> : vector<8xf32>
    %390 = vector.multi_reduction <add>, %387, %cst_126 [1] : vector<8x32xf32> to vector<8xf32>
    %391 = vector.shape_cast %390 : vector<8xf32> to vector<8x1xf32>
    %cst_127 = arith.constant 3.200000e+01 : f32
    %392 = vector.broadcast %cst_127 : f32 to vector<8x1xf32>
    %393 = arith.divf %391, %392 : vector<8x1xf32>
    %394 = vector.broadcast %393 : vector<8x1xf32> to vector<8x32xf32>
    %395 = arith.subf %387, %394 : vector<8x32xf32>
    %396 = arith.mulf %395, %395 : vector<8x32xf32>
    %cst_128 = arith.constant dense<0.000000e+00> : vector<8xf32>
    %397 = vector.multi_reduction <add>, %396, %cst_128 [1] : vector<8x32xf32> to vector<8xf32>
    %398 = vector.shape_cast %397 : vector<8xf32> to vector<8x1xf32>
    %cst_129 = arith.constant 3.200000e+01 : f32
    %399 = vector.broadcast %cst_129 : f32 to vector<8x1xf32>
    %400 = arith.divf %398, %399 : vector<8x1xf32>
    %401 = vector.broadcast %393 : vector<8x1xf32> to vector<8x32xf32>
    %402 = arith.subf %387, %401 : vector<8x32xf32>
    %cst_130 = arith.constant 9.99999974E-6 : f32
    %403 = vector.broadcast %cst_130 : f32 to vector<8x1xf32>
    %404 = arith.addf %400, %403 : vector<8x1xf32>
    %405 = math.rsqrt %404 : vector<8x1xf32>
    %406 = vector.broadcast %405 : vector<8x1xf32> to vector<8x32xf32>
    %407 = arith.mulf %402, %406 : vector<8x32xf32>
    %408 = vector.broadcast %388 : vector<1x32xf32> to vector<8x32xf32>
    %409 = arith.mulf %407, %408 : vector<8x32xf32>
    %410 = vector.broadcast %389 : vector<1x32xf32> to vector<8x32xf32>
    %411 = arith.addf %409, %410 : vector<8x32xf32>
    %412 = arith.truncf %411 : vector<8x32xf32> to vector<8x32xbf16>
    %c624 = arith.constant 624 : index
    %c0_131 = arith.constant 0 : index
    %413 = vector.load %arg4[%c624, %c0_131] : memref<656x128xbf16, #tpu.memory_space<vmem>>, vector<32x128xbf16>
    %cst_132 = arith.constant dense<0.000000e+00> : vector<8x128xf32>
    %414 = tpu.matmul %412, %413, %cst_132 {dimension_numbers = #tpu.dot_dimension_numbers<[1], [0], [0], [1], [0, 0, 1, 1], [], []>} : vector<8x32xbf16>, vector<32x128xbf16>, vector<8x128xf32> -> vector<8x128xf32>
    %c26 = arith.constant 26 : index
    %c0_133 = arith.constant 0 : index
    %415 = vector.load %arg5[%c26, %c0_133] : memref<32x128xf32, #tpu.memory_space<vmem>>, vector<1x128xf32>
    %416 = vector.broadcast %415 : vector<1x128xf32> to vector<8x128xf32>
    %417 = arith.addf %414, %416 : vector<8x128xf32>
    %c0_134 = arith.constant 0 : index
    %c0_135 = arith.constant 0 : index
    %418 = vector.load %arg6[%c0_134, %c0_135] : memref<8x128xf32, #tpu.memory_space<vmem>>, vector<8x128xf32>
    tpu.vector_store %arg6[%c0_134, %c0_135], %417 {strides = array<i32>} : memref<8x128xf32, #tpu.memory_space<vmem>>, vector<8x128xf32>,
    return
  }
  func.func @transform_0(%arg0: i32) -> (i32, i32) {
    %c0_i32 = arith.constant 0 : i32
    %c0_i32_0 = arith.constant 0 : i32
    return %arg0, %c0_i32 : i32, i32
  }
  func.func @transform_1(%arg0: i32) -> (i32, i32) {
    %c0_i32 = arith.constant 0 : i32
    %c0_i32_0 = arith.constant 0 : i32
    return %arg0, %c0_i32 : i32, i32
  }
  func.func @transform_2(%arg0: i32) -> (i32, i32) {
    %c0_i32 = arith.constant 0 : i32
    %c0_i32_0 = arith.constant 0 : i32
    %c0_i32_1 = arith.constant 0 : i32
    return %c0_i32, %c0_i32_0 : i32, i32
  }
  func.func @transform_3(%arg0: i32) -> (i32, i32) {
    %c0_i32 = arith.constant 0 : i32
    %c0_i32_0 = arith.constant 0 : i32
    %c0_i32_1 = arith.constant 0 : i32
    return %c0_i32, %c0_i32_0 : i32, i32
  }
  func.func @transform_4(%arg0: i32) -> (i32, i32) {
    %c0_i32 = arith.constant 0 : i32
    %c0_i32_0 = arith.constant 0 : i32
    %c0_i32_1 = arith.constant 0 : i32
    return %c0_i32, %c0_i32_0 : i32, i32
  }
  func.func @transform_5(%arg0: i32) -> (i32, i32) {
    %c0_i32 = arith.constant 0 : i32
    %c0_i32_0 = arith.constant 0 : i32
    return %arg0, %c0_i32 : i32, i32
  }
}

</mosaic_0001>

<bundles_post_ra>
// kernel: vir_forward.1
= control target key start
LH: loop header
LB: loop body
LE: loop exit
PB: predicated region body
PF: predicated region fallthrough
CT: control target
= control target key end

     0   :  { %v6098_v0 = vmov 0.0   ;;  %vm4464_vm0 = vmmov 0   ;;  %vm88_vm1 = vcmask 392192   ;;  %vm157_vm2 = vcmask 261120   ;;  %s6092_s3 = inlined_call_operand.vmem [shape: bf16[656,128], index: 3, kind: input, shape index: {}]   ;;  %s6093_s0 = inlined_call_operand.vmem [shape: f32[48,48], index: 0, kind: input, shape index: {}]   ;;  %s6094_s1 = inlined_call_operand.vmem [shape: f32[48,32], index: 1, kind: input, shape index: {}]   ;;  %s6095_s4 = inlined_call_operand.vmem [shape: f32[32,128], index: 4, kind: input, shape index: {}]   ;;  %s6096_s2 = inlined_call_operand.vmem [shape: f32[48,48], index: 2, kind: input, shape index: {}]   ;;  %s6097_s5 = inlined_call_operand.vmem [shape: f32[8,128], index: 5, kind: output, shape index: {}]  }
   0x1   :  { %3756 = vmatprep.subr.bf16.mxu0 %v6098_v0  ;;  %v4294_v1 = vld [vmem:[%s6092_s3 + $0x10] sm:$0xff]   ;;  %4286 = vmatprep.subr.bf16.mxu1 %v6098_v0  ;;  %v4295_v2 = vld [vmem:[%s6092_s3 + $0x8] sm:$0xff]   ;;  %v4296_v3 = vld [vmem:[%s6092_s3] sm:$0xff]   ;;  %vm3326_vm13 = vcmask 1040384   ;;  %vm3328_vm14 = vcmask 1041408  }
   0x2   :  { %3762 = vmatprep.mubr.msk.bf16.mxu0 %vm4464_vm0, %v6098_v0  ;;  %3770 = vmatprep.mubr.msk.bf16.mxu1 %vm4464_vm0, %v6098_v0  ;;  %v49_v4 = vld [vmem:[%s6093_s0] sm:$0xff]  ;;  %v50_v5 = vld [vmem:[%s6093_s0 + $0x8] sm:$0xff]  ;;  %v51_v10 = vld [vmem:[%s6093_s0 + $0x10] sm:$0xff] }
   0x3   :  { %3757 = vmatpush3.bf16.msra.mxu0 %v4294_v1  ;;  %4289 = vmatpush3.bf16.msra.mxu1 %v4294_v1  ;;  %v53_v6 = vld [vmem:[%s6093_s0 + $0x20] sm:$0xff]  ;;  %v54_v7 = vld [vmem:[%s6093_s0 + $0x28] sm:$0xff]  ;;  %v55_v8 = vpack.c.bf16 %v50_v5, %v49_v4  ;;  %v52_v11 = vld [vmem:[%s6093_s0 + $0x18] sm:$0xff] }
   0x4   :  { %3758 = vmatprep.subr.bf16.mxu0 %v6098_v0  ;;  %4287 = vmatprep.subr.bf16.mxu1 %v6098_v0  ;;  %v57_v9 = vpack.c.bf16 %v54_v7, %v53_v6  ;;  %v56_v12 = vpack.c.bf16 %v52_v11, %v51_v10  ;;  %v64_v13 = vld [vmem:[%s6094_s1] sm:$0xff]  ;;  %v65_v18 = vld [vmem:[%s6094_s1 + $0x8] sm:$0xff]  ;;  %v66_v27 = vld [vmem:[%s6094_s1 + $0x10] sm:$0xff] }
   0x5   :  { %v68_v19 = vld [vmem:[%s6094_s1 + $0x20] sm:$0xff]  ;;  %v67_v34 = vld [vmem:[%s6094_s1 + $0x18] sm:$0xff]  ;;  %v69_v35 = vld [vmem:[%s6094_s1 + $0x28] sm:$0xff] }
   0x6   :  { %v4297_v10 = vld [vmem:[%s6092_s3 + $0x20] sm:$0xff]  }
   0x7   :  { %3759 = vmatpush3.bf16.msra.mxu0 %v4295_v2  ;;  %4290 = vmatpush3.bf16.msra.mxu1 %v4295_v2  ;;  %v4298_v11 = vld [vmem:[%s6092_s3 + $0x40] sm:$0xff]  }
   0x8   :  { %3760 = vmatprep.subr.bf16.mxu0 %v6098_v0  ;;  %4288 = vmatprep.subr.bf16.mxu1 %v6098_v0 }
   0xb   :  { %3761 = vmatpush3.bf16.msra.mxu0 %v4296_v3  ;;  %4291 = vmatpush3.bf16.msra.mxu1 %v4296_v3 }
   0xc   :  { %3774 = vmatprep.subr.bf16.mxu1 %v6098_v0  ;;  %3806 = vmatprep.subr.bf16.mxu0 %v6098_v0 }
   0xe   :  { %3763 = vmatmul.mubr.msk.bf16.vlgmr.msra.gmra.mxu0 %vm88_vm1, %v55_v8  ;;  %3771 = vmatmul.mubr.msk.bf16.vlgmr.msra.gmra.mxu1 %vm88_vm1, %v57_v9 }
   0xf   :  { %3766 = vmatprep.mubr.msk.bf16.mxu0 %vm4464_vm0, %v6098_v0  ;;  %3778 = vmatprep.mubr.msk.bf16.mxu1 %vm4464_vm0, %v6098_v0 }
  0x10   :  { %3775 = vmatpush3.bf16.msra.mxu1 %v4297_v10  ;;  %3807 = vmatpush3.bf16.msra.mxu0 %v4298_v11  ;;  %v4692_v10 = vld [vmem:[%s6095_s4 + $0x4] ss:$0 sm:$0xff] }
  0x11   :  { %3776 = vmatprep.subr.bf16.mxu1 %v6098_v0  ;;  %3808 = vmatprep.subr.bf16.mxu0 %v6098_v0 }
  0x16   :  { %3767 = vmatmul.mubr.msk.bf16.gmra.mxu0 %vm88_vm1, %v56_v12  ;;  %v4299_v12 = vld [vmem:[%s6092_s3 + $0x18] sm:$0xff]  }
  0x17   :  { %3810 = vmatprep.mubr.msk.bf16.mxu0 %vm4464_vm0, %v6098_v0  ;;  %3777 = vmatpush3.bf16.msra.mxu1 %v4299_v12 }
  0x18   :  { %3790 = vmatprep.subr.bf16.mxu1 %v6098_v0 }
  0xce   :  { %v132_v14 = vpop.f32.mrf.mxu0  ;;  %v148_v15 = vpop.f32.mrf.mxu1 }
  0xcf   :  { %v4546_v16 = vadd.f32 %v132_v14, %v64_v13  ;;  %v4558_v25 = vadd.f32 %v148_v15, %v68_v19  ;;  %v4300_v13 = vld [vmem:[%s6092_s3 + $0x38] sm:$0xff]  }
  0xd0   :  { %v3764_v17 = vpop.f32.mrf.mxu0  ;;  %v3772_v20 = vpop.f32.mrf.mxu1  ;;  %3809 = vmatpush3.bf16.msra.mxu0 %v4300_v13 }
  0xd1   :  { %v158_v21 = vsel %vm157_vm2, %v4546_v16, 0.0  ;;  %v170_v32 = vsel %vm157_vm2, %v4558_v25, 0.0  ;;  %3840 = vmatprep.subr.bf16.mxu0 %v6098_v0 }
  0xd2   :  { %159 = vadd.xlane.f32.xlu0 %v158_v21  ;;  %v135_v22 = vpop.f32.mrf.mxu0  ;;  %v151_v23 = vpop.f32.mrf.mxu1 }
  0xd3   :  { %v4556_v24 = vadd.f32 %v135_v22, %v65_v18  ;;  %v4579_v39 = vadd.f32 %v151_v23, %v69_v35 }
  0xd4   :  { %v3765_v26 = vpop.f32.mrf.mxu0  ;;  %v3773_v28 = vpop.f32.mrf.mxu1 }
  0xd5   :  { %v161_v29 = vsel %vm157_vm2, %v4556_v24, 0.0  ;;  %v173_v42 = vsel %vm157_vm2, %v4579_v39, 0.0 }
  0xd6   :  { %162 = vadd.xlane.f32.xlu0 %v161_v29  ;;  %v140_v30 = vpop.f32.mrf.mxu0 }
  0xd7   :  { %v4565_v31 = vadd.f32 %v140_v30, %v66_v27 }
  0xd8   :  { %v3768_v33 = vpop.f32.mrf.mxu0 }
  0xd9   :  { %v164_v36 = vsel %vm157_vm2, %v4565_v31, 0.0 }
  0xda   :  { %171 = vadd.xlane.f32.xlu0 %v170_v32  ;;  %165 = vadd.xlane.f32.xlu1 %v164_v36  ;;  %v143_v37 = vpop.f32.mrf.mxu0 }
  0xdb   :  { %v4577_v38 = vadd.f32 %v143_v37, %v67_v34 }
  0xdc   :  { %v3769_v40 = vpop.f32.mrf.mxu0 }
  0xdd   :  { %v167_v41 = vsel %vm157_vm2, %v4577_v38, 0.0  ;;  %v3435_v40 = vld [vmem:[%s6095_s4] ss:$0 sm:$0xff] }
  0xde   :  { %168 = vadd.xlane.f32.xlu1 %v167_v41 }
  0xe2   :  { %174 = vadd.xlane.f32.xlu1 %v173_v42 }
 0x15b   :  { %v160_v43 = vpop.xlane.xlu0 %159 }
 0x15c   :  { %v177_v44 = vmul.f32 0.03125, %v160_v43 }
 0x15e   :  { %v4586_v45 = vsub.f32 %v4546_v16, %v177_v44  ;;  %v3436_v44 = vld [vmem:[%s6095_s4 + $0x1] ss:$0 sm:$0xff] }
 0x15f   :  { %v163_v46 = vpop.xlane.xlu0 %162 }
 0x160   :  { %v178_v47 = vmul.f32 0.03125, %v163_v46  ;;  %v189_v48 = vmul.f32 %v4586_v45, %v4586_v45 }
 0x162   :  { %v4591_v49 = vsub.f32 %v4556_v24, %v178_v47  ;;  %v195_v50 = vsel %vm157_vm2, %v189_v48, 0.0 }
 0x163   :  { %196 = vadd.xlane.f32.xlu0 %v195_v50  ;;  %v172_v51 = vpop.xlane.xlu0 %171  ;;  %v166_v52 = vpop.xlane.xlu1 %165 }
 0x164   :  { %v181_v53 = vmul.f32 0.03125, %v172_v51  ;;  %v179_v54 = vmul.f32 0.03125, %v166_v52  ;;  %v190_v55 = vmul.f32 %v4591_v49, %v4591_v49 }
 0x166   :  { %v4597_v56 = vsub.f32 %v4558_v25, %v181_v53  ;;  %v4600_v57 = vsub.f32 %v4565_v31, %v179_v54  ;;  %v198_v58 = vsel %vm157_vm2, %v190_v55, 0.0  ;;  %v4302_v55 = vld [vmem:[%s6092_s3 + $0x28] sm:$0xff]  }
 0x167   :  { %199 = vadd.xlane.f32.xlu1 %v198_v58  ;;  %v169_v59 = vpop.xlane.xlu1 %168 }
 0x168   :  { %v180_v60 = vmul.f32 0.03125, %v169_v59  ;;  %v191_v61 = vmul.f32 %v4600_v57, %v4600_v57  ;;  %v193_v1 = vmul.f32 %v4597_v56, %v4597_v56 }
 0x16a   :  { %v4606_v62 = vsub.f32 %v4577_v38, %v180_v60  ;;  %v201_v63 = vsel %vm157_vm2, %v191_v61, 0.0  ;;  %v207_v6 = vsel %vm157_vm2, %v193_v1, 0.0 }
 0x16b   :  { %202 = vadd.xlane.f32.xlu0 %v201_v63  ;;  %v175_v2 = vpop.xlane.xlu1 %174 }
 0x16c   :  { %v182_v3 = vmul.f32 0.03125, %v175_v2  ;;  %v192_v4 = vmul.f32 %v4606_v62, %v4606_v62 }
 0x16e   :  { %v4614_v5 = vsub.f32 %v4579_v39, %v182_v3  ;;  %v204_v7 = vsel %vm157_vm2, %v192_v4, 0.0 }
 0x16f   :  { %208 = vadd.xlane.f32.xlu0 %v207_v6  ;;  %205 = vadd.xlane.f32.xlu1 %v204_v7 }
 0x170   :  { %v194_v8 = vmul.f32 %v4614_v5, %v4614_v5 }
 0x172   :  { %v210_v9 = vsel %vm157_vm2, %v194_v8, 0.0  ;;  %v4687_v8 = vld [vmem:[%s6095_s4 + $0x2] ss:$0 sm:$0xff] }
 0x173   :  { %211 = vadd.xlane.f32.xlu1 %v210_v9 }
 0x1ec   :  { %v197_v14 = vpop.xlane.xlu0 %196 }
 0x1ed   :  { %v213_v15 = vmul.f32 0.03125, %v197_v14 }
 0x1ef   :  { %v219_v17 = vadd.f32 1e-05, %v213_v15 }
 0x1f0   :  { %v200_v18 = vpop.xlane.xlu1 %199 }
 0x1f1   :  { %4335 = vrsqrt.f32 %v219_v17  ;;  %v214_v19 = vmul.f32 0.03125, %v200_v18 }
 0x1f3   :  { %v220_v20 = vadd.f32 1e-05, %v214_v19 }
 0x1f4   :  { %v203_v21 = vpop.xlane.xlu0 %202 }
 0x1f5   :  { %4337 = vrsqrt.f32 %v220_v20  ;;  %v215_v22 = vmul.f32 0.03125, %v203_v21 }
 0x1f7   :  { %v221_v23 = vadd.f32 1e-05, %v215_v22 }
 0x1f8   :  { %v209_v26 = vpop.xlane.xlu0 %208  ;;  %v206_v27 = vpop.xlane.xlu1 %205 }
 0x1f9   :  { %4339 = vrsqrt.f32 %v221_v23  ;;  %v217_v28 = vmul.f32 0.03125, %v209_v26  ;;  %v216_v29 = vmul.f32 0.03125, %v206_v27 }
 0x1fb   :  { %v222_v30 = vadd.f32 1e-05, %v216_v29  ;;  %v223_v32 = vadd.f32 1e-05, %v217_v28 }
 0x1fc   :  { %v212_v33 = vpop.xlane.xlu1 %211 }
 0x1fd   :  { %v218_v34 = vmul.f32 0.03125, %v212_v33  ;;  %4341 = vrsqrt.f32 %v222_v30 }
 0x1fe   :  { %v4336_v35 = vpop.eup %4335  ;;  %4343 = vrsqrt.f32 %v223_v32 }
 0x1ff   :  { %v231_v36 = vmul.f32 %v4336_v35, %v4586_v45  ;;  %v224_v37 = vadd.f32 1e-05, %v218_v34  ;;  %v4301_v45 = vld [vmem:[%s6092_s3 + $0x30] sm:$0xff]  }
 0x201   :  { %4345 = vrsqrt.f32 %v224_v37  ;;  %v241_v43 = vmul.f32 %v3435_v40, %v231_v36 }
 0x202   :  { %v4338_v41 = vpop.eup %4337 }
 0x203   :  { %v232_v42 = vmul.f32 %v4338_v41, %v4591_v49  ;;  %v251_v48 = vadd.f32 %v3436_v44, %v241_v43 }
 0x205   :  { %v242_v46 = vmul.f32 %v3435_v40, %v232_v42 }
 0x206   :  { %v4340_v47 = vpop.eup %4339 }
 0x207   :  { %v252_v50 = vadd.f32 %v3436_v44, %v242_v46  ;;  %v233_v51 = vmul.f32 %v4340_v47, %v4600_v57 }
 0x209   :  { %v257_v52 = vpack.c.bf16 %v252_v50, %v251_v48  ;;  %v243_v54 = vmul.f32 %v3435_v40, %v233_v51 }
 0x20a   :  { %v4342_v53 = vpop.eup %4341 }
 0x20b   :  { %3779 = vmatmul.mubr.msk.bf16.vlgmr.msra.gmra.mxu1 %vm157_vm2, %v257_v52  ;;  %3811 = vmatmul.mubr.msk.bf16.vlgmr.msra.gmra.mxu0 %vm157_vm2, %v257_v52  ;;  %v234_v49 = vmul.f32 %v4342_v53, %v4606_v62  ;;  %v4344_v58 = vpop.eup %4343  ;;  %v253_v61 = vadd.f32 %v3436_v44, %v243_v54 }
 0x20c   :  { %3791 = vmatpush3.bf16.msra.mxu1 %v4301_v45  ;;  %3782 = vmatprep.mubr.msk.bf16.mxu1 %vm4464_vm0, %v6098_v0  ;;  %v235_v62 = vmul.f32 %v4344_v58, %v4597_v56  ;;  %v21_v56 = vlaneseq }
 0x20d   :  { %3814 = vmatprep.mubr.msk.bf16.mxu0 %vm4464_vm0, %v6098_v0  ;;  %3792 = vmatprep.subr.bf16.mxu1 %v6098_v0  ;;  %v244_v59 = vmul.f32 %v3435_v40, %v234_v49 }
 0x20e   :  { %v4346_v57 = vpop.eup %4345  ;;  %v245_v3 = vmul.f32 %v3435_v40, %v235_v62  ;;  %v22_v7 = vand.u32 127, %v21_v56 }
 0x20f   :  { %v236_v60 = vmul.f32 %v4346_v57, %v4614_v5  ;;  %v254_v63 = vadd.f32 %v3436_v44, %v244_v59 }
 0x210   :  { %3793 = vmatpush3.bf16.msra.mxu1 %v4302_v55  ;;  %v255_v5 = vadd.f32 %v3436_v44, %v245_v3  ;;  %vm33_vm3 = vcmp.ge.s32.totalorder %v22_v7, 16  ;;  %vm34_vm4 = vcmp.lt.s32.totalorder %v22_v7, 24  ;;  %vm38_vm5 = vcmp.ge.s32.totalorder %v22_v7, 24 }
 0x211   :  { %3822 = vmatprep.subr.bf16.mxu1 %v6098_v0  ;;  %v258_v1 = vpack.c.bf16 %v254_v63, %v253_v61  ;;  %v246_v2 = vmul.f32 %v3435_v40, %v236_v60  ;;  %vm39_vm6 = vcmp.lt.s32.totalorder %v22_v7, 32  ;;  %vm28_vm7 = vcmp.ge.s32.totalorder %v22_v7, 8  ;;  %vm35_vm9 = vmand %vm33_vm3, %vm34_vm4 }
 0x212   :  { %vm29_vm8 = vcmp.lt.s32.totalorder %v22_v7, 16  ;;  %vm40_vm10 = vmand %vm38_vm5, %vm39_vm6  ;;  %vm24_vm11 = vcmp.lt.s32.totalorder %v22_v7, 8  ;;  %v4698_v15 = vsel %vm35_vm9, 1.0, %v6098_v0 }
 0x213   :  { %3783 = vmatmul.mubr.msk.bf16.gmra.mxu1 %vm157_vm2, %v258_v1  ;;  %3815 = vmatmul.mubr.msk.bf16.gmra.mxu0 %vm157_vm2, %v258_v1  ;;  %v256_v4 = vadd.f32 %v3436_v44, %v246_v2  ;;  %vm30_vm12 = vmand %vm28_vm7, %vm29_vm8  ;;  %v4701_v17 = vsel %vm40_vm10, 1.0, %v6098_v0  ;;  %v4705_v19 = vsel %vm24_vm11, 1.0, %v6098_v0 }
 0x214   :  { %3786 = vmatprep.mubr.msk.bf16.mxu1 %vm4464_vm0, %v6098_v0  ;;  %3818 = vmatprep.mubr.msk.bf16.mxu0 %vm4464_vm0, %v6098_v0  ;;  %6103 = vst [vmem:[#allocation2_spill] sm:$0xff] %v4701_v17  ;;  %v4708_v20 = vsel %vm30_vm12, 1.0, %v6098_v0 }
 0x215   :  { %v259_v6 = vpack.c.bf16 %v256_v4, %v255_v5 }
 0x21b   :  { %3787 = vmatmul.mubr.msk.bf16.gmra.mxu1 %vm157_vm2, %v259_v6  ;;  %3819 = vmatmul.mubr.msk.bf16.gmra.mxu0 %vm157_vm2, %v259_v6 }
 0x21c   :  { %3794 = vmatprep.mubr.msk.bf16.mxu1 %vm4464_vm0, %v6098_v0  ;;  %3846 = vmatprep.mubr.msk.bf16.mxu0 %vm4464_vm0, %v6098_v0 }
 0x223   :  { %3795 = vmatmul.mubr.msk.bf16.vlgmr.msra.gmra.mxu1 %vm157_vm2, %v257_v52 }
 0x224   :  { %3798 = vmatprep.mubr.msk.bf16.mxu1 %vm4464_vm0, %v6098_v0 }
 0x22b   :  { %3799 = vmatmul.mubr.msk.bf16.gmra.mxu1 %vm157_vm2, %v258_v1 }
 0x22c   :  { %3802 = vmatprep.mubr.msk.bf16.mxu1 %vm4464_vm0, %v6098_v0 }
 0x233   :  { %3803 = vmatmul.mubr.msk.bf16.gmra.mxu1 %vm157_vm2, %v259_v6 }
 0x234   :  { %3828 = vmatprep.mubr.msk.bf16.mxu1 %vm4464_vm0, %v6098_v0 }
 0x2cb   :  { %v324_v9 = vpop.f32.mrf.mxu1  ;;  %v480_v11 = vpop.f32.mrf.mxu0 }
 0x2cc   :  { %v4695_v12 = vadd.f32 %v4687_v8, %v324_v9  ;;  %v481_v18 = vadd.f32 %v4692_v10, %v480_v11 }
 0x2cd   :  { %v3780_v13 = vpop.f32.mrf.mxu1  ;;  %v3812_v14 = vpop.f32.mrf.mxu0 }
 0x2ce   :  { %v4716_v27 = vmul.f32 %v4698_v15, %v4695_v12  ;;  %v4720_v28 = vmul.f32 %v4701_v17, %v4695_v12  ;;  %v4723_v32 = vmul.f32 %v4705_v19, %v481_v18  ;;  %v4726_v33 = vmul.f32 %v4708_v20, %v481_v18 }
 0x2cf   :  { %v327_v21 = vpop.f32.mrf.mxu1  ;;  %v483_v22 = vpop.f32.mrf.mxu0  ;;  %v4749_v42 = vmul.f32 %v4698_v15, %v481_v18  ;;  %v4752_v43 = vmul.f32 %v4701_v17, %v481_v18 }
 0x2d0   :  { %v4711_v23 = vadd.f32 %v4687_v8, %v327_v21  ;;  %v484_v26 = vadd.f32 %v4692_v10, %v483_v22 }
 0x2d1   :  { %v3781_v29 = vpop.f32.mrf.mxu1  ;;  %v3813_v30 = vpop.f32.mrf.mxu0 }
 0x2d2   :  { %v4730_v34 = vmul.f32 %v4698_v15, %v4711_v23  ;;  %v4734_v35 = vmul.f32 %v4701_v17, %v4711_v23  ;;  %v4737_v36 = vmul.f32 %v4705_v19, %v484_v26  ;;  %v4740_v37 = vmul.f32 %v4708_v20, %v484_v26 }
 0x2d3   :  { %v4743_v40 = vmul.f32 %v4698_v15, %v484_v26  ;;  %v4746_v41 = vmul.f32 %v4701_v17, %v484_v26  ;;  %v332_v47 = vpop.f32.mrf.mxu1  ;;  %v488_v48 = vpop.f32.mrf.mxu0 }
 0x2d4   :  { %v4767_v54 = vadd.f32 %v4687_v8, %v332_v47  ;;  %v4770_v55 = vadd.f32 %v4692_v10, %v488_v48 }
 0x2d5   :  { %v3784_v51 = vpop.f32.mrf.mxu1  ;;  %v3816_v52 = vpop.f32.mrf.mxu0 }
 0x2d6   :  { %v4784_v1 = vmul.f32 %v4698_v15, %v4767_v54  ;;  %v4788_v2 = vmul.f32 %v4698_v15, %v4770_v55  ;;  %v4808_v14 = vmul.f32 %v4701_v17, %v4767_v54  ;;  %v4812_v18 = vmul.f32 %v4701_v17, %v4770_v55 }
 0x2d7   :  { %v335_v58 = vpop.f32.mrf.mxu1  ;;  %v491_v57 = vpop.f32.mrf.mxu0 }
 0x2d8   :  { %v4773_v59 = vadd.f32 %v4687_v8, %v335_v58  ;;  %v4776_v60 = vadd.f32 %v4692_v10, %v491_v57 }
 0x2d9   :  { %v3785_v61 = vpop.f32.mrf.mxu1  ;;  %v3817_v63 = vpop.f32.mrf.mxu0 }
 0x2da   :  { %v4780_v62 = vmul.f32 %v4698_v15, %v4773_v59  ;;  %v4792_v3 = vmul.f32 %v4698_v15, %v4776_v60  ;;  %v4796_v6 = vmul.f32 %v4701_v17, %v4773_v59  ;;  %v4800_v56 = vmul.f32 %v4701_v17, %v4776_v60 }
 0x2db   :  { %v340_v4 = vpop.f32.mrf.mxu1  ;;  %v496_v5 = vpop.f32.mrf.mxu0 }
 0x2dc   :  { %v4815_v21 = vadd.f32 %v4687_v8, %v340_v4  ;;  %v4818_v22 = vadd.f32 %v4692_v10, %v496_v5 }
 0x2dd   :  { %v3788_v7 = vpop.f32.mrf.mxu1  ;;  %v3820_v9 = vpop.f32.mrf.mxu0 }
 0x2de   :  { %v4830_v57 = vmul.f32 %v4698_v15, %v4815_v21  ;;  %v4846_v63 = vmul.f32 %v4698_v15, %v4818_v22  ;;  %v4856_v9 = vmul.f32 %v4701_v17, %v4818_v22 }
 0x2df   :  { %v343_v26 = vpop.f32.mrf.mxu1  ;;  %v499_v29 = vpop.f32.mrf.mxu0 }
 0x2e0   :  { %v4821_v30 = vadd.f32 %v4687_v8, %v343_v26  ;;  %v500_v47 = vadd.f32 %v4692_v10, %v499_v29  ;;  %v4842_v10 = vmul.f32 %v4701_v17, %v4815_v21 }
 0x2e1   :  { %v3789_v52 = vpop.f32.mrf.mxu1  ;;  %v3821_v58 = vpop.f32.mrf.mxu0 }
 0x2e2   :  { %v4834_v61 = vmul.f32 %v4698_v15, %v4821_v30  ;;  %v4838_v8 = vmul.f32 %v4701_v17, %v4821_v30  ;;  %v4849_v4 = vmul.f32 %v4698_v15, %v500_v47  ;;  %v4852_v5 = vmul.f32 %v4701_v17, %v500_v47 }
 0x2e3   :  { %v402_v7 = vpop.f32.mrf.mxu1 }
 0x2e5   :  { %v3796_v29 = vpop.f32.mrf.mxu1 }
 0x2e6   :  { %v3443_v29 = vld [vmem:[%s6095_s4 + $0x3] ss:$0 sm:$0xff] }
 0x2e7   :  { %v405_v51 = vpop.f32.mrf.mxu1 }
 0x2e9   :  { %v3797_v48 = vpop.f32.mrf.mxu1 }
 0x2ea   :  { %v406_v48 = vadd.f32 %v3443_v29, %v405_v51  ;;  %v520_v51 = vmul.f32 %v4705_v19, %v500_v47 }
 0x2eb   :  { %v410_v46 = vpop.f32.mrf.mxu1 }
 0x2ed   :  { %v3800_v13 = vpop.f32.mrf.mxu1 }
 0x2ee   :  { %v6104_v13 = vmov 0.0  }
 0x2ef   :  { %v413_v44 = vpop.f32.mrf.mxu1 }
 0x2f0   :  { %v414_v17 = vadd.f32 %v3443_v29, %v413_v44 }
 0x2f1   :  { %v3801_v53 = vpop.f32.mrf.mxu1 }
 0x2f2   :  { %v411_v53 = vadd.f32 %v3443_v29, %v410_v46 }
 0x2f3   :  { %v418_v11 = vpop.f32.mrf.mxu1 }
 0x2f4   :  { %v419_v52 = vadd.f32 %v3443_v29, %v418_v11 }
 0x2f5   :  { %v3804_v45 = vpop.f32.mrf.mxu1 }
 0x2f6   :  { %v504_v45 = vpack.c.bf16 %v414_v17, %v411_v53  ;;  %v507_v17 = vmul.f32 %v4705_v19, %v4711_v23 }
 0x2f7   :  { %v421_v26 = vpop.f32.mrf.mxu1 }
 0x2f8   :  { %v422_v50 = vadd.f32 %v3443_v29, %v421_v26  ;;  %v4877_v11 = vsel %vm157_vm2, %v504_v45, 0  ;;  %v506_v26 = vmul.f32 %v4705_v19, %v4695_v12  ;;  %v518_v45 = vmul.f32 %v4705_v19, %v4776_v60 }
 0x2f9   :  { %v3805_v0 = vpop.f32.mrf.mxu1 }
 0x2fa   :  { %v505_v58 = vpack.c.bf16 %v422_v50, %v419_v52  ;;  %v403_v0 = vadd.f32 %v3443_v29, %v402_v7  ;;  %v609_v50 = vmul.f32 %v4708_v20, %v4711_v23  ;;  %v622_v7 = vmul.f32 %v4708_v20, %v500_v47 }
 0x2fb   :  { %v608_v52 = vmul.f32 %v4708_v20, %v4695_v12  ;;  %v621_v23 = vmul.f32 %v4708_v20, %v4818_v22  ;;  %v512_v29 = vpack.c.bf16 %v507_v17, %v506_v26  ;;  %v620_v47 = vmul.f32 %v4708_v20, %v4776_v60 }
 0x2fc   :  { %v4870_v49 = vsel %vm157_vm2, %v505_v58, 0  ;;  %v503_v44 = vpack.c.bf16 %v406_v48, %v403_v0  ;;  %v519_v58 = vmul.f32 %v4705_v19, %v4818_v22  ;;  %v517_v12 = vmul.f32 %v4705_v19, %v4770_v55 }
 0x2fd   :  { %3823 = vmatpush3.bf16.xpose.msra.mxu1 %v4870_v49  ;;  %3841 = vmatpush3.bf16.xpose.msra.mxu0 %v4870_v49  ;;  %v614_v53 = vpack.c.bf16 %v609_v50, %v608_v52  ;;  %v625_v48 = vpack.c.bf16 %v622_v7, %v621_v23  ;;  %v619_v22 = vmul.f32 %v4708_v20, %v4770_v55 }
 0x2fe   :  { %3824 = vmatprep.subr.bf16.mxu1 %v6104_v13  ;;  %3842 = vmatprep.subr.bf16.mxu0 %v6104_v13  ;;  %v4884_v46 = vsel %vm157_vm2, %v503_v44, 0  ;;  %v523_v0 = vpack.c.bf16 %v520_v51, %v519_v58  ;;  %v509_v44 = vmul.f32 %v4705_v19, %v4773_v59  ;;  %v611_v60 = vmul.f32 %v4708_v20, %v4773_v59 }
 0x2ff   :  { %v624_v17 = vpack.c.bf16 %v620_v47, %v619_v22  ;;  %v522_v50 = vpack.c.bf16 %v518_v45, %v517_v12  ;;  %v508_v55 = vmul.f32 %v4705_v19, %v4767_v54  ;;  %v610_v51 = vmul.f32 %v4708_v20, %v4767_v54  ;;  %v4966_v45 = vld [vmem:[%s6096_s2 + $0x8] sm:$0xff] }
 0x300   :  { %v6105_v26 = vpack.c.bf16 %v4740_v37, %v4726_v33  ;;  %v6106_v52 = vpack.c.bf16 %v4737_v36, %v4723_v32  ;;  %v511_v54 = vmul.f32 %v4705_v19, %v4821_v30  ;;  %v613_v58 = vmul.f32 %v4708_v20, %v4821_v30 }
 0x301   :  { %v513_v59 = vpack.c.bf16 %v509_v44, %v508_v55  ;;  %v615_v7 = vpack.c.bf16 %v611_v60, %v610_v51  ;;  %v510_v32 = vmul.f32 %v4705_v19, %v4815_v21  ;;  %v612_v33 = vmul.f32 %v4708_v20, %v4815_v21 }
 0x303   :  { %v514_v36 = vpack.c.bf16 %v511_v54, %v510_v32  ;;  %v616_v37 = vpack.c.bf16 %v613_v58, %v612_v33  ;;  %v4986_v58 = vld [vmem:[%s6096_s2 + $0x18] sm:$0xff] }
 0x305   :  { %3825 = vmatpush3.bf16.xpose.msra.mxu1 %v4877_v11  ;;  %3843 = vmatpush3.bf16.xpose.msra.mxu0 %v4877_v11 }
 0x306   :  { %3826 = vmatprep.subr.bf16.mxu1 %v6104_v13  ;;  %3844 = vmatprep.subr.bf16.mxu0 %v6104_v13 }
 0x30d   :  { %3827 = vmatpush3.bf16.xpose.msra.mxu1 %v4884_v46  ;;  %3845 = vmatpush3.bf16.xpose.msra.mxu0 %v4884_v46 }
 0x30e   :  { %3858 = vmatprep.subr.bf16.mxu1 %v6104_v13  ;;  %3876 = vmatprep.subr.bf16.mxu0 %v6104_v13 }
 0x314   :  { %3829 = vmatmul.mubr.msk.bf16.vlgmr.msra.gmra.mxu1 %vm157_vm2, %v512_v29  ;;  %3847 = vmatmul.mubr.msk.bf16.vlgmr.msra.gmra.mxu0 %vm157_vm2, %v614_v53  ;;  %v4961_v29 = vld [vmem:[%s6096_s2] sm:$0xff] }
 0x315   :  { %3859 = vmatpush3.bf16.msra.mxu1 %v625_v48  ;;  %3877 = vmatpush3.bf16.msra.mxu0 %v523_v0 }
 0x316   :  { %3860 = vmatprep.subr.bf16.mxu1 %v6104_v13  ;;  %3878 = vmatprep.subr.bf16.mxu0 %v6104_v13 }
 0x317   :  { %3832 = vmatprep.mubr.msk.bf16.mxu1 %vm4464_vm0, %v6104_v13  ;;  %3850 = vmatprep.mubr.msk.bf16.mxu0 %vm4464_vm0, %v6104_v13 }
 0x319   :  { %3861 = vmatpush3.bf16.msra.mxu1 %v624_v17  ;;  %3879 = vmatpush3.bf16.msra.mxu0 %v522_v50 }
 0x31a   :  { %3862 = vmatprep.subr.bf16.mxu1 %v6104_v13  ;;  %3880 = vmatprep.subr.bf16.mxu0 %v6104_v13 }
 0x31c   :  { %3833 = vmatmul.mubr.msk.bf16.gmra.mxu1 %vm157_vm2, %v513_v59  ;;  %3851 = vmatmul.mubr.msk.bf16.gmra.mxu0 %vm157_vm2, %v615_v7  ;;  %v4977_v7 = vld [vmem:[%s6096_s2 + $0x10] sm:$0xff] }
 0x31d   :  { %3863 = vmatpush3.bf16.msra.mxu1 %v6105_v26  ;;  %3881 = vmatpush3.bf16.msra.mxu0 %v6106_v52  ;;  %v6107_v26 = vpack.c.bf16 %v4849_v4, %v4846_v63 }
 0x31e   :  { %3836 = vmatprep.mubr.msk.bf16.mxu1 %vm4464_vm0, %v6104_v13  ;;  %3854 = vmatprep.mubr.msk.bf16.mxu0 %vm4464_vm0, %v6104_v13 }
 0x31f   :  { %3894 = vmatprep.subr.bf16.mxu1 %v6104_v13  ;;  %3912 = vmatprep.subr.bf16.mxu0 %v6104_v13 }
 0x324   :  { %3837 = vmatmul.mubr.msk.bf16.gmra.mxu1 %vm157_vm2, %v514_v36  ;;  %3855 = vmatmul.mubr.msk.bf16.gmra.mxu0 %vm157_vm2, %v616_v37 }
 0x325   :  { %3864 = vmatprep.mubr.msk.bf16.mxu1 %vm4464_vm0, %v6104_v13  ;;  %3882 = vmatprep.mubr.msk.bf16.mxu0 %vm4464_vm0, %v6104_v13 }
 0x3d4   :  { %v576_v30 = vpop.f32.mrf.mxu1  ;;  %v669_v23 = vpop.f32.mrf.mxu0 }
 0x3d5   :  { %v599_v0 = vmul.f32 %v576_v30, %v4961_v29  ;;  %v692_v12 = vmul.f32 %v669_v23, %v4961_v29  ;;  %v6108_v30 = vpack.c.bf16 %v4792_v3, %v4788_v2  ;;  %v6109_v2 = vpack.c.bf16 %v4743_v40, %v4749_v42 }
 0x3d6   :  { %v3830_v21 = vpop.f32.mrf.mxu1  ;;  %v3848_v53 = vpop.f32.mrf.mxu0 }
 0x3d8   :  { %v579_v47 = vpop.f32.mrf.mxu1  ;;  %v672_v48 = vpop.f32.mrf.mxu0 }
 0x3d9   :  { %v600_v22 = vmul.f32 %v579_v47, %v4966_v45  ;;  %v693_v44 = vmul.f32 %v672_v48, %v4966_v45 }
 0x3da   :  { %v3831_v60 = vpop.f32.mrf.mxu1  ;;  %v3849_v17 = vpop.f32.mrf.mxu0 }
 0x3db   :  { %v605_v50 = vpack.c.bf16 %v600_v22, %v599_v0  ;;  %v698_v55 = vpack.c.bf16 %v693_v44, %v692_v12  ;;  %v5007_v12 = vld [vmem:[%s6096_s2 + $0x20] sm:$0xff]  ;;  %v5016_v44 = vld [vmem:[%s6096_s2 + $0x28] sm:$0xff] }
 0x3dc   :  { %v584_v51 = vpop.f32.mrf.mxu1  ;;  %v677_v59 = vpop.f32.mrf.mxu0 }
 0x3dd   :  { %3865 = vmatmul.mubr.msk.bf16.vlgmr.msra.gmra.mxu1 %vm88_vm1, %v698_v55  ;;  %3883 = vmatmul.mubr.msk.bf16.vlgmr.msra.gmra.mxu0 %vm88_vm1, %v605_v50  ;;  %v601_v63 = vmul.f32 %v584_v51, %v4977_v7  ;;  %v694_v4 = vmul.f32 %v677_v59, %v4977_v7 }
 0x3de   :  { %3895 = vmatpush3.bf16.xpose.msra.mxu1 %v4870_v49  ;;  %3913 = vmatpush3.bf16.msra.mxu0 %v6107_v26  ;;  %v3834_v52 = vpop.f32.mrf.mxu1  ;;  %v3852_v54 = vpop.f32.mrf.mxu0 }
 0x3df   :  { %3914 = vmatprep.subr.bf16.mxu0 %v6104_v13  ;;  %3868 = vmatprep.mubr.msk.bf16.mxu1 %vm4464_vm0, %v6104_v13  ;;  %v6110_v54 = vpack.c.bf16 %v4730_v34, %v4716_v27  ;;  %v6112_v27 = vpack.c.bf16 %v4834_v61, %v4830_v57  ;;  %v6113_v34 = vpack.c.bf16 %v4734_v35, %v4720_v28 }
 0x3e0   :  { %v587_v32 = vpop.f32.mrf.mxu1  ;;  %v680_v33 = vpop.f32.mrf.mxu0  ;;  %3886 = vmatprep.mubr.msk.bf16.mxu0 %vm4464_vm0, %v6104_v13  ;;  %3896 = vmatprep.subr.bf16.mxu1 %v6104_v13 }
 0x3e1   :  { %v602_v36 = vmul.f32 %v587_v32, %v4986_v58  ;;  %v695_v37 = vmul.f32 %v680_v33, %v4986_v58  ;;  %v6111_v32 = vpack.c.bf16 %v4780_v62, %v4784_v1  ;;  %v6115_v62 = vpack.c.bf16 %v4838_v8, %v4842_v10 }
 0x3e2   :  { %3915 = vmatpush3.bf16.msra.mxu0 %v6108_v30  ;;  %v3835_v23 = vpop.f32.mrf.mxu1  ;;  %v3853_v21 = vpop.f32.mrf.mxu0 }
 0x3e3   :  { %v606_v53 = vpack.c.bf16 %v602_v36, %v601_v63  ;;  %v699_v47 = vpack.c.bf16 %v695_v37, %v694_v4  ;;  %3916 = vmatprep.subr.bf16.mxu0 %v6104_v13 }
 0x3e4   :  { %v592_v48 = vpop.f32.mrf.mxu1  ;;  %v685_v0 = vpop.f32.mrf.mxu0 }
 0x3e5   :  { %3869 = vmatmul.mubr.msk.bf16.gmra.mxu1 %vm88_vm1, %v699_v47  ;;  %3887 = vmatmul.mubr.msk.bf16.gmra.mxu0 %vm88_vm1, %v606_v53  ;;  %v603_v40 = vmul.f32 %v592_v48, %v5007_v12  ;;  %v696_v42 = vmul.f32 %v685_v0, %v5007_v12 }
 0x3e6   :  { %3897 = vmatpush3.bf16.xpose.msra.mxu1 %v4877_v11  ;;  %3917 = vmatpush3.bf16.msra.mxu0 %v6109_v2  ;;  %v3838_v3 = vpop.f32.mrf.mxu1  ;;  %v3856_v22 = vpop.f32.mrf.mxu0 }
 0x3e7   :  { %3872 = vmatprep.mubr.msk.bf16.mxu1 %vm4464_vm0, %v6104_v13  ;;  %3890 = vmatprep.mubr.msk.bf16.mxu0 %vm4464_vm0, %v6104_v13 }
 0x3e8   :  { %v595_v60 = vpop.f32.mrf.mxu1  ;;  %v688_v17 = vpop.f32.mrf.mxu0  ;;  %3898 = vmatprep.subr.bf16.mxu1 %v6104_v13  ;;  %3948 = vmatprep.subr.bf16.mxu0 %v6104_v13 }
 0x3e9   :  { %v604_v50 = vmul.f32 %v595_v60, %v5016_v44  ;;  %v697_v55 = vmul.f32 %v688_v17, %v5016_v44 }
 0x3ea   :  { %v3839_v51 = vpop.f32.mrf.mxu1  ;;  %v3857_v59 = vpop.f32.mrf.mxu0 }
 0x3eb   :  { %v607_v26 = vpack.c.bf16 %v604_v50, %v603_v40  ;;  %v700_v52 = vpack.c.bf16 %v697_v55, %v696_v42 }
 0x3ed   :  { %3873 = vmatmul.mubr.msk.bf16.gmra.mxu1 %vm88_vm1, %v700_v52  ;;  %3891 = vmatmul.mubr.msk.bf16.gmra.mxu0 %vm88_vm1, %v607_v26 }
 0x3ee   :  { %3899 = vmatpush3.bf16.xpose.msra.mxu1 %v4884_v46  ;;  %3900 = vmatprep.mubr.msk.bf16.mxu1 %vm4464_vm0, %v6104_v13 }
 0x3ef   :  { %3930 = vmatprep.subr.bf16.mxu1 %v6104_v13  ;;  %3918 = vmatprep.mubr.msk.bf16.mxu0 %vm4464_vm0, %v6104_v13 }
 0x3f5   :  { %3901 = vmatmul.mubr.msk.bf16.vlgmr.msra.gmra.mxu1 %vm157_vm2, %v6110_v54 }
 0x3f6   :  { %3931 = vmatpush3.bf16.xpose.msra.mxu1 %v4870_v49  ;;  %3904 = vmatprep.mubr.msk.bf16.mxu1 %vm4464_vm0, %v6104_v13  ;;  %v6114_v49 = vpack.c.bf16 %v4796_v6, %v4808_v14 }
 0x3f7   :  { %3932 = vmatprep.subr.bf16.mxu1 %v6104_v13 }
 0x3fd   :  { %3905 = vmatmul.mubr.msk.bf16.gmra.mxu1 %vm157_vm2, %v6111_v32 }
 0x3fe   :  { %3933 = vmatpush3.bf16.xpose.msra.mxu1 %v4877_v11  ;;  %3908 = vmatprep.mubr.msk.bf16.mxu1 %vm4464_vm0, %v6104_v13 }
 0x3ff   :  { %3934 = vmatprep.subr.bf16.mxu1 %v6104_v13 }
 0x405   :  { %3909 = vmatmul.mubr.msk.bf16.gmra.mxu1 %vm157_vm2, %v6112_v27  ;;  %v6116_v27 = vpack.c.bf16 %v4852_v5, %v4856_v9  ;;  %v6118_v9 = vpack.c.bf16 %v4746_v41, %v4752_v43 }
 0x406   :  { %3935 = vmatpush3.bf16.xpose.msra.mxu1 %v4884_v46  ;;  %3936 = vmatprep.mubr.msk.bf16.mxu1 %vm4464_vm0, %v6104_v13 }
 0x407   :  { %3966 = vmatprep.subr.bf16.mxu1 %v6104_v13 }
 0x40d   :  { %3937 = vmatmul.mubr.msk.bf16.vlgmr.msra.gmra.mxu1 %vm157_vm2, %v6113_v34 }
 0x40e   :  { %3940 = vmatprep.mubr.msk.bf16.mxu1 %vm4464_vm0, %v6104_v13 }
 0x415   :  { %3941 = vmatmul.mubr.msk.bf16.gmra.mxu1 %vm157_vm2, %v6114_v49 }
 0x416   :  { %3944 = vmatprep.mubr.msk.bf16.mxu1 %vm4464_vm0, %v6104_v13 }
 0x41d   :  { %3945 = vmatmul.mubr.msk.bf16.gmra.mxu1 %vm157_vm2, %v6115_v62 }
 0x41e   :  { %3970 = vmatprep.mubr.msk.bf16.mxu1 %vm4464_vm0, %v6104_v13 }
 0x49d   :  { %v744_v28 = vpop.f32.mrf.mxu1  ;;  %v810_v35 = vpop.f32.mrf.mxu0 }
 0x49e   :  { %v5078_v1 = vadd.f32 %v810_v35, %v744_v28  ;;  %v6117_v35 = vpack.c.bf16 %v4800_v56, %v4812_v18 }
 0x49f   :  { %v3866_v57 = vpop.f32.mrf.mxu1  ;;  %v3884_v61 = vpop.f32.mrf.mxu0 }
 0x4a1   :  { %v747_v6 = vpop.f32.mrf.mxu1  ;;  %v813_v14 = vpop.f32.mrf.mxu0 }
 0x4a2   :  { %v5080_v11 = vadd.f32 %v813_v14, %v747_v6 }
 0x4a3   :  { %v3867_v46 = vpop.f32.mrf.mxu1  ;;  %v3885_v33 = vpop.f32.mrf.mxu0 }
 0x4a5   :  { %v752_v63 = vpop.f32.mrf.mxu1  ;;  %v818_v4 = vpop.f32.mrf.mxu0 }
 0x4a6   :  { %v5082_v8 = vadd.f32 %v818_v4, %v752_v63 }
 0x4a7   :  { %v3870_v10 = vpop.f32.mrf.mxu1  ;;  %v3888_v36 = vpop.f32.mrf.mxu0 }
 0x4a9   :  { %v755_v37 = vpop.f32.mrf.mxu1  ;;  %v821_v30 = vpop.f32.mrf.mxu0 }
 0x4aa   :  { %v5084_v23 = vadd.f32 %v821_v30, %v755_v37 }
 0x4ab   :  { %v3871_v21 = vpop.f32.mrf.mxu1  ;;  %v3889_v53 = vpop.f32.mrf.mxu0 }
 0x4ad   :  { %v760_v47 = vpop.f32.mrf.mxu1  ;;  %v826_v48 = vpop.f32.mrf.mxu0 }
 0x4ae   :  { %v5086_v0 = vadd.f32 %v826_v48, %v760_v47 }
 0x4af   :  { %v3874_v2 = vpop.f32.mrf.mxu1  ;;  %v3892_v3 = vpop.f32.mrf.mxu0 }
 0x4b1   :  { %v763_v22 = vpop.f32.mrf.mxu1  ;;  %v829_v60 = vpop.f32.mrf.mxu0 }
 0x4b2   :  { %v5088_v17 = vadd.f32 %v829_v60, %v763_v22 }
 0x4b3   :  { %v3875_v40 = vpop.f32.mrf.mxu1  ;;  %v3893_v42 = vpop.f32.mrf.mxu0 }
 0x4b5   :  { %v894_v50 = vpop.f32.mrf.mxu1 }
 0x4b6   :  { %v917_v59 = vmul.f32 %v894_v50, %v4961_v29 }
 0x4b7   :  { %v3902_v55 = vpop.f32.mrf.mxu1 }
 0x4b9   :  { %v897_v51 = vpop.f32.mrf.mxu1 }
 0x4ba   :  { %v918_v26 = vmul.f32 %v897_v51, %v4966_v45 }
 0x4bb   :  { %v3903_v52 = vpop.f32.mrf.mxu1 }
 0x4bc   :  { %v923_v54 = vpack.c.bf16 %v918_v26, %v917_v59 }
 0x4bd   :  { %v902_v32 = vpop.f32.mrf.mxu1 }
 0x4be   :  { %3919 = vmatmul.mubr.msk.bf16.vlgmr.msra.gmra.mxu0 %vm88_vm1, %v923_v54  ;;  %v919_v62 = vmul.f32 %v902_v32, %v4977_v7 }
 0x4bf   :  { %3949 = vmatpush3.bf16.msra.mxu0 %v6116_v27  ;;  %v3906_v34 = vpop.f32.mrf.mxu1  ;;  %3922 = vmatprep.mubr.msk.bf16.mxu0 %vm4464_vm0, %v6104_v13 }
 0x4c0   :  { %3950 = vmatprep.subr.bf16.mxu0 %v6104_v13 }
 0x4c1   :  { %v905_v49 = vpop.f32.mrf.mxu1 }
 0x4c2   :  { %v920_v28 = vmul.f32 %v905_v49, %v4986_v58 }
 0x4c3   :  { %3951 = vmatpush3.bf16.msra.mxu0 %v6117_v35  ;;  %v3907_v57 = vpop.f32.mrf.mxu1 }
 0x4c4   :  { %v924_v61 = vpack.c.bf16 %v920_v28, %v919_v62  ;;  %3952 = vmatprep.subr.bf16.mxu0 %v6104_v13 }
 0x4c5   :  { %v910_v5 = vpop.f32.mrf.mxu1 }
 0x4c6   :  { %3923 = vmatmul.mubr.msk.bf16.gmra.mxu0 %vm88_vm1, %v924_v61  ;;  %v921_v56 = vmul.f32 %v910_v5, %v5007_v12 }
 0x4c7   :  { %3953 = vmatpush3.bf16.msra.mxu0 %v6118_v9  ;;  %v3910_v6 = vpop.f32.mrf.mxu1  ;;  %3926 = vmatprep.mubr.msk.bf16.mxu0 %vm4464_vm0, %v6104_v13 }
 0x4c8   :  { %3982 = vmatprep.subr.bf16.mxu0 %v6104_v13 }
 0x4c9   :  { %v913_v14 = vpop.f32.mrf.mxu1 }
 0x4ca   :  { %v922_v18 = vmul.f32 %v913_v14, %v5016_v44 }
 0x4cb   :  { %v3911_v46 = vpop.f32.mrf.mxu1 }
 0x4cc   :  { %v925_v33 = vpack.c.bf16 %v922_v18, %v921_v56 }
 0x4cd   :  { %v1059_v63 = vpop.f32.mrf.mxu1 }
 0x4ce   :  { %3927 = vmatmul.mubr.msk.bf16.gmra.mxu0 %vm88_vm1, %v925_v33  ;;  %v1082_v43 = vmul.f32 %v1059_v63, %v4961_v29 }
 0x4cf   :  { %v3938_v4 = vpop.f32.mrf.mxu1  ;;  %3954 = vmatprep.mubr.msk.bf16.mxu0 %vm4464_vm0, %v6104_v13 }
 0x4d1   :  { %v1062_v41 = vpop.f32.mrf.mxu1 }
 0x4d2   :  { %v1083_v10 = vmul.f32 %v1062_v41, %v4966_v45 }
 0x4d3   :  { %v3939_v36 = vpop.f32.mrf.mxu1 }
 0x4d4   :  { %v1088_v37 = vpack.c.bf16 %v1083_v10, %v1082_v43 }
 0x4d5   :  { %v1067_v30 = vpop.f32.mrf.mxu1 }
 0x4d6   :  { %3955 = vmatmul.mubr.msk.bf16.vlgmr.msra.gmra.mxu0 %vm88_vm1, %v1088_v37  ;;  %v1084_v47 = vmul.f32 %v1067_v30, %v4977_v7 }
 0x4d7   :  { %v3942_v21 = vpop.f32.mrf.mxu1  ;;  %3958 = vmatprep.mubr.msk.bf16.mxu0 %vm4464_vm0, %v6104_v13 }
 0x4d9   :  { %v1070_v53 = vpop.f32.mrf.mxu1 }
 0x4da   :  { %v1085_v48 = vmul.f32 %v1070_v53, %v4986_v58 }
 0x4db   :  { %v3943_v2 = vpop.f32.mrf.mxu1 }
 0x4dc   :  { %v1089_v3 = vpack.c.bf16 %v1085_v48, %v1084_v47 }
 0x4dd   :  { %v1075_v22 = vpop.f32.mrf.mxu1 }
 0x4de   :  { %3959 = vmatmul.mubr.msk.bf16.gmra.mxu0 %vm88_vm1, %v1089_v3  ;;  %v1086_v60 = vmul.f32 %v1075_v22, %v5007_v12 }
 0x4df   :  { %v3946_v29 = vpop.f32.mrf.mxu1  ;;  %3962 = vmatprep.mubr.msk.bf16.mxu0 %vm4464_vm0, %v6104_v13 }
 0x4e1   :  { %v1078_v45 = vpop.f32.mrf.mxu1 }
 0x4e2   :  { %v1087_v40 = vmul.f32 %v1078_v45, %v5016_v44 }
 0x4e3   :  { %v3947_v42 = vpop.f32.mrf.mxu1 }
 0x4e4   :  { %v1090_v50 = vpack.c.bf16 %v1087_v40, %v1086_v60 }
 0x4e6   :  { %3963 = vmatmul.mubr.msk.bf16.gmra.mxu0 %vm88_vm1, %v1090_v50 }
 0x4e7   :  { %3986 = vmatprep.mubr.msk.bf16.mxu0 %vm4464_vm0, %v6104_v13 }
 0x57e   :  { %v969_v7 = vpop.f32.mrf.mxu0 }
 0x57f   :  { %v992_v44 = vadd.f32 %v969_v7, %v5078_v1 }
 0x580   :  { %v3920_v58 = vpop.f32.mrf.mxu0 }
 0x582   :  { %v972_v55 = vpop.f32.mrf.mxu0 }
 0x583   :  { %v993_v35 = vadd.f32 %v972_v55, %v5080_v11 }
 0x584   :  { %v3921_v51 = vpop.f32.mrf.mxu0 }
 0x586   :  { %v977_v59 = vpop.f32.mrf.mxu0 }
 0x587   :  { %v994_v6 = vadd.f32 %v977_v59, %v5082_v8 }
 0x588   :  { %v3924_v26 = vpop.f32.mrf.mxu0 }
 0x58a   :  { %v980_v52 = vpop.f32.mrf.mxu0 }
 0x58b   :  { %v995_v1 = vadd.f32 %v980_v52, %v5084_v23 }
 0x58c   :  { %v3925_v54 = vpop.f32.mrf.mxu0 }
 0x58e   :  { %v985_v32 = vpop.f32.mrf.mxu0 }
 0x58f   :  { %v996_v41 = vadd.f32 %v985_v32, %v5086_v0 }
 0x590   :  { %v3928_v27 = vpop.f32.mrf.mxu0 }
 0x592   :  { %v988_v12 = vpop.f32.mrf.mxu0 }
 0x593   :  { %v997_v37 = vadd.f32 %v988_v12, %v5088_v17 }
 0x594   :  { %v3929_v34 = vpop.f32.mrf.mxu0 }
 0x596   :  { %v1134_v49 = vpop.f32.mrf.mxu0 }
 0x597   :  { %v1157_v62 = vadd.f32 %v1134_v49, %v992_v44 }
 0x598   :  { %v3956_v28 = vpop.f32.mrf.mxu0 }
 0x599   :  { %v1165_v57 = vsel %vm157_vm2, %v1157_v62, 0.0 }
 0x59a   :  { %1166 = vadd.xlane.f32.xlu0 %v1165_v57  ;;  %v1137_v61 = vpop.f32.mrf.mxu0 }
 0x59b   :  { %v1158_v5 = vadd.f32 %v1137_v61, %v993_v35  ;;  %v4303_v61 = vld [vmem:[%s6092_s3 + $0x50] sm:$0xff]  }
 0x59c   :  { %v3957_v9 = vpop.f32.mrf.mxu0  ;;  %3967 = vmatpush3.bf16.msra.mxu1 %v4303_v61 }
 0x59d   :  { %v1168_v14 = vsel %vm157_vm2, %v1158_v5, 0.0  ;;  %3968 = vmatprep.subr.bf16.mxu1 %v6104_v13 }
 0x59e   :  { %1169 = vadd.xlane.f32.xlu1 %v1168_v14  ;;  %v1142_v56 = vpop.f32.mrf.mxu0 }
 0x59f   :  { %v1159_v18 = vadd.f32 %v1142_v56, %v994_v6 }
 0x5a0   :  { %v3960_v46 = vpop.f32.mrf.mxu0 }
 0x5a1   :  { %v1171_v33 = vsel %vm157_vm2, %v1159_v18, 0.0 }
 0x5a2   :  { %1172 = vadd.xlane.f32.xlu0 %v1171_v33  ;;  %v1145_v11 = vpop.f32.mrf.mxu0 }
 0x5a3   :  { %v1160_v63 = vadd.f32 %v1145_v11, %v995_v1 }
 0x5a4   :  { %v3961_v4 = vpop.f32.mrf.mxu0 }
 0x5a5   :  { %v1174_v43 = vsel %vm157_vm2, %v1160_v63, 0.0 }
 0x5a6   :  { %1175 = vadd.xlane.f32.xlu1 %v1174_v43  ;;  %v1150_v8 = vpop.f32.mrf.mxu0 }
 0x5a7   :  { %v1161_v10 = vadd.f32 %v1150_v8, %v996_v41 }
 0x5a8   :  { %v3964_v36 = vpop.f32.mrf.mxu0 }
 0x5a9   :  { %v1177_v30 = vsel %vm157_vm2, %v1161_v10, 0.0  ;;  %v3479_v36 = vld [vmem:[%s6095_s4 + $0x5] ss:$0 sm:$0xff] }
 0x5aa   :  { %1178 = vadd.xlane.f32.xlu0 %v1177_v30  ;;  %v1153_v23 = vpop.f32.mrf.mxu0 }
 0x5ab   :  { %v1162_v21 = vadd.f32 %v1153_v23, %v997_v37  ;;  %v3480_v23 = vld [vmem:[%s6095_s4 + $0x6] ss:$0 sm:$0xff] }
 0x5ac   :  { %v3965_v53 = vpop.f32.mrf.mxu0 }
 0x5ad   :  { %v1180_v47 = vsel %vm157_vm2, %v1162_v21, 0.0 }
 0x5ae   :  { %1181 = vadd.xlane.f32.xlu1 %v1180_v47 }
 0x623   :  { %v1167_v48 = vpop.xlane.xlu0 %1166 }
 0x624   :  { %v1183_v2 = vmul.f32 0.03125, %v1167_v48 }
 0x626   :  { %v1189_v0 = vsub.f32 %v1157_v62, %v1183_v2 }
 0x627   :  { %v1170_v3 = vpop.xlane.xlu1 %1169 }
 0x628   :  { %v1184_v22 = vmul.f32 0.03125, %v1170_v3  ;;  %v1195_v29 = vmul.f32 %v1189_v0, %v1189_v0 }
 0x62a   :  { %v5144_v45 = vsub.f32 %v1158_v5, %v1184_v22  ;;  %v1201_v60 = vsel %vm157_vm2, %v1195_v29, 0.0  ;;  %v4304_v5 = vld [vmem:[%s6092_s3 + $0x48] sm:$0xff]  }
 0x62b   :  { %v1173_v17 = vpop.xlane.xlu0 %1172  ;;  %1202 = vadd.xlane.f32.xlu0 %v1201_v60  ;;  %3969 = vmatpush3.bf16.msra.mxu1 %v4304_v5 }
 0x62c   :  { %v1185_v40 = vmul.f32 0.03125, %v1173_v17  ;;  %v1196_v42 = vmul.f32 %v5144_v45, %v5144_v45  ;;  %3998 = vmatprep.subr.bf16.mxu1 %v6104_v13 }
 0x62e   :  { %v5149_v50 = vsub.f32 %v1159_v18, %v1185_v40  ;;  %v1204_v7 = vsel %vm157_vm2, %v1196_v42, 0.0 }
 0x62f   :  { %v1176_v58 = vpop.xlane.xlu1 %1175  ;;  %1205 = vadd.xlane.f32.xlu1 %v1204_v7 }
 0x630   :  { %v1186_v55 = vmul.f32 0.03125, %v1176_v58  ;;  %v1197_v51 = vmul.f32 %v5149_v50, %v5149_v50 }
 0x632   :  { %v5154_v59 = vsub.f32 %v1160_v63, %v1186_v55  ;;  %v1207_v26 = vsel %vm157_vm2, %v1197_v51, 0.0 }
 0x633   :  { %1208 = vadd.xlane.f32.xlu0 %v1207_v26  ;;  %v1179_v52 = vpop.xlane.xlu0 %1178 }
 0x634   :  { %v1187_v54 = vmul.f32 0.03125, %v1179_v52  ;;  %v1198_v32 = vmul.f32 %v5154_v59, %v5154_v59 }
 0x636   :  { %v5159_v27 = vsub.f32 %v1161_v10, %v1187_v54  ;;  %v1210_v12 = vsel %vm157_vm2, %v1198_v32, 0.0 }
 0x637   :  { %1211 = vadd.xlane.f32.xlu1 %v1210_v12  ;;  %v1182_v34 = vpop.xlane.xlu1 %1181 }
 0x638   :  { %v1188_v44 = vmul.f32 0.03125, %v1182_v34  ;;  %v1199_v49 = vmul.f32 %v5159_v27, %v5159_v27 }
 0x63a   :  { %v5164_v62 = vsub.f32 %v1162_v21, %v1188_v44  ;;  %v1213_v28 = vsel %vm157_vm2, %v1199_v49, 0.0 }
 0x63b   :  { %1214 = vadd.xlane.f32.xlu0 %v1213_v28 }
 0x63c   :  { %v1200_v35 = vmul.f32 %v5164_v62, %v5164_v62 }
 0x63e   :  { %v1216_v57 = vsel %vm157_vm2, %v1200_v35, 0.0 }
 0x63f   :  { %1217 = vadd.xlane.f32.xlu1 %v1216_v57 }
 0x6b4   :  { %v1203_v9 = vpop.xlane.xlu0 %1202 }
 0x6b5   :  { %v1219_v6 = vmul.f32 0.03125, %v1203_v9 }
 0x6b7   :  { %v1225_v14 = vadd.f32 1e-05, %v1219_v6 }
 0x6b8   :  { %v1206_v56 = vpop.xlane.xlu1 %1205 }
 0x6b9   :  { %4347 = vrsqrt.f32 %v1225_v14  ;;  %v1220_v18 = vmul.f32 0.03125, %v1206_v56 }
 0x6bb   :  { %v1226_v46 = vadd.f32 1e-05, %v1220_v18 }
 0x6bc   :  { %v1209_v1 = vpop.xlane.xlu0 %1208 }
 0x6bd   :  { %4349 = vrsqrt.f32 %v1226_v46  ;;  %v1221_v33 = vmul.f32 0.03125, %v1209_v1 }
 0x6bf   :  { %v1227_v11 = vadd.f32 1e-05, %v1221_v33 }
 0x6c0   :  { %v1212_v63 = vpop.xlane.xlu1 %1211 }
 0x6c1   :  { %4351 = vrsqrt.f32 %v1227_v11  ;;  %v1222_v4 = vmul.f32 0.03125, %v1212_v63 }
 0x6c3   :  { %v1228_v41 = vadd.f32 1e-05, %v1222_v4 }
 0x6c4   :  { %v1215_v43 = vpop.xlane.xlu0 %1214 }
 0x6c5   :  { %4353 = vrsqrt.f32 %v1228_v41  ;;  %v1223_v8 = vmul.f32 0.03125, %v1215_v43 }
 0x6c6   :  { %v4348_v10 = vpop.eup %4347 }
 0x6c7   :  { %v1237_v37 = vmul.f32 %v4348_v10, %v1189_v0  ;;  %v1229_v30 = vadd.f32 1e-05, %v1223_v8 }
 0x6c8   :  { %v1218_v21 = vpop.xlane.xlu1 %1217 }
 0x6c9   :  { %v1247_v53 = vmul.f32 %v3479_v36, %v1237_v37  ;;  %4355 = vrsqrt.f32 %v1229_v30  ;;  %v1224_v47 = vmul.f32 0.03125, %v1218_v21 }
 0x6ca   :  { %v4350_v48 = vpop.eup %4349 }
 0x6cb   :  { %v1257_v2 = vadd.f32 %v3480_v23, %v1247_v53  ;;  %v1238_v3 = vmul.f32 %v4350_v48, %v5144_v45  ;;  %v1230_v22 = vadd.f32 1e-05, %v1224_v47 }
 0x6cd   :  { %v1269_v29 = vmul.f32 0.70710677, %v1257_v2  ;;  %v1248_v60 = vmul.f32 %v3479_v36, %v1238_v3  ;;  %4357 = vrsqrt.f32 %v1230_v22  ;;  %v1263_v9 = vmul.f32 0.5, %v1257_v2  ;;  %v3481_v2 = vld [vmem:[%s6095_s4 + $0x7] ss:$0 sm:$0xff] }
 0x6ce   :  { %v4352_v17 = vpop.eup %4351 }
 0x6cf   :  { %4359 = verf.f32 %v1269_v29  ;;  %v1258_v0 = vadd.f32 %v3480_v23, %v1248_v60  ;;  %v1239_v40 = vmul.f32 %v4352_v17, %v5149_v50 }
 0x6d1   :  { %v1270_v42 = vmul.f32 0.70710677, %v1258_v0  ;;  %v1249_v7 = vmul.f32 %v3479_v36, %v1239_v40  ;;  %v1264_v6 = vmul.f32 0.5, %v1258_v0 }
 0x6d2   :  { %v4354_v58 = vpop.eup %4353 }
 0x6d3   :  { %4361 = verf.f32 %v1270_v42  ;;  %v1240_v55 = vmul.f32 %v4354_v58, %v5154_v59  ;;  %v1259_v51 = vadd.f32 %v3480_v23, %v1249_v7 }
 0x6d5   :  { %v1250_v26 = vmul.f32 %v3479_v36, %v1240_v55  ;;  %v1271_v52 = vmul.f32 0.70710677, %v1259_v51  ;;  %v1265_v11 = vmul.f32 0.5, %v1259_v51 }
 0x6d6   :  { %v4356_v54 = vpop.eup %4355 }
 0x6d7   :  { %v1241_v45 = vmul.f32 %v4356_v54, %v5159_v27  ;;  %v1260_v32 = vadd.f32 %v3480_v23, %v1250_v26  ;;  %4363 = verf.f32 %v1271_v52 }
 0x6d9   :  { %v1272_v12 = vmul.f32 0.70710677, %v1260_v32  ;;  %v1251_v34 = vmul.f32 %v3479_v36, %v1241_v45  ;;  %v1266_v63 = vmul.f32 0.5, %v1260_v32 }
 0x6da   :  { %v4358_v44 = vpop.eup %4357 }
 0x6db   :  { %v1242_v49 = vmul.f32 %v4358_v44, %v5164_v62  ;;  %4365 = verf.f32 %v1272_v12  ;;  %v1261_v50 = vadd.f32 %v3480_v23, %v1251_v34 }
 0x6dc   :  { %v4360_v28 = vpop.eup %4359 }
 0x6dd   :  { %v1252_v35 = vmul.f32 %v3479_v36, %v1242_v49  ;;  %v1273_v57 = vmul.f32 0.70710677, %v1261_v50  ;;  %v1281_v61 = vadd.f32 1.0, %v4360_v28  ;;  %v1267_v30 = vmul.f32 0.5, %v1261_v50 }
 0x6df   :  { %v1262_v59 = vadd.f32 %v3480_v23, %v1252_v35  ;;  %4367 = verf.f32 %v1273_v57  ;;  %v1287_v56 = vmul.f32 %v1281_v61, %v1263_v9 }
 0x6e0   :  { %v4362_v5 = vpop.eup %4361 }
 0x6e1   :  { %v1282_v14 = vadd.f32 1.0, %v4362_v5  ;;  %v1274_v27 = vmul.f32 0.70710677, %v1262_v59  ;;  %v1268_v23 = vmul.f32 0.5, %v1262_v59 }
 0x6e3   :  { %v1288_v18 = vmul.f32 %v1282_v14, %v1264_v6  ;;  %4369 = verf.f32 %v1274_v27 }
 0x6e4   :  { %v4364_v46 = vpop.eup %4363 }
 0x6e5   :  { %v1293_v1 = vpack.c.bf16 %v1288_v18, %v1287_v56  ;;  %v1283_v62 = vadd.f32 1.0, %v4364_v46 }
 0x6e7   :  { %3971 = vmatmul.mubr.msk.bf16.vlgmr.msra.gmra.mxu1 %vm157_vm2, %v1293_v1  ;;  %v1289_v41 = vmul.f32 %v1283_v62, %v1265_v11 }
 0x6e8   :  { %v4366_v33 = vpop.eup %4365  ;;  %3974 = vmatprep.mubr.msk.bf16.mxu1 %vm4464_vm0, %v6104_v13 }
 0x6e9   :  { %v1284_v4 = vadd.f32 1.0, %v4366_v33 }
 0x6eb   :  { %v1290_v43 = vmul.f32 %v1284_v4, %v1266_v63 }
 0x6ec   :  { %v4368_v8 = vpop.eup %4367 }
 0x6ed   :  { %v1294_v10 = vpack.c.bf16 %v1290_v43, %v1289_v41  ;;  %v1285_v36 = vadd.f32 1.0, %v4368_v8 }
 0x6ef   :  { %3975 = vmatmul.mubr.msk.bf16.gmra.mxu1 %vm157_vm2, %v1294_v10  ;;  %v1291_v53 = vmul.f32 %v1285_v36, %v1267_v30 }
 0x6f0   :  { %v4370_v37 = vpop.eup %4369  ;;  %3978 = vmatprep.mubr.msk.bf16.mxu1 %vm4464_vm0, %v6104_v13 }
 0x6f1   :  { %v1286_v21 = vadd.f32 1.0, %v4370_v37 }
 0x6f3   :  { %v1292_v47 = vmul.f32 %v1286_v21, %v1268_v23 }
 0x6f5   :  { %v1295_v48 = vpack.c.bf16 %v1292_v47, %v1291_v53 }
 0x6f7   :  { %3979 = vmatmul.mubr.msk.bf16.gmra.mxu1 %vm157_vm2, %v1295_v48 }
 0x6f8   :  { %4014 = vmatprep.mubr.msk.bf16.mxu1 %vm4464_vm0, %v6104_v13 }
 0x7a7   :  { %v1360_v3 = vpop.f32.mrf.mxu1 }
 0x7a8   :  { %v1361_v22 = vadd.f32 %v3481_v2, %v1360_v3  ;;  %v4305_v3 = vld [vmem:[%s6092_s3 + $0x60] sm:$0xff]  }
 0x7a9   :  { %v3972_v29 = vpop.f32.mrf.mxu1  ;;  %3983 = vmatpush3.bf16.msra.mxu0 %v4305_v3  ;;  %v4312_v3 = vld [vmem:[%s6092_s3 + $0x78] sm:$0xff]  }
 0x7aa   :  { %v5202_v60 = vadd.f32 %v1361_v22, %v4546_v16  ;;  %v4306_v22 = vld [vmem:[%s6092_s3 + $0x58] sm:$0xff]   ;;  %3984 = vmatprep.subr.bf16.mxu0 %v6104_v13  ;;  %v4307_v29 = vld [vmem:[%s6092_s3 + $0xa0] sm:$0xff]  }
 0x7ab   :  { %v1363_v17 = vpop.f32.mrf.mxu1  ;;  %3999 = vmatpush3.bf16.msra.mxu1 %v4307_v29  ;;  %v4314_v29 = vld [vmem:[%s6092_s3 + $0x68] sm:$0xff]  }
 0x7ac   :  { %v1364_v0 = vadd.f32 %v3481_v2, %v1363_v17  ;;  %v1391_v40 = vsel %vm157_vm2, %v5202_v60, 0.0  ;;  %4000 = vmatprep.subr.bf16.mxu1 %v6104_v13 }
 0x7ad   :  { %1392 = vadd.xlane.f32.xlu0 %v1391_v40  ;;  %v3973_v42 = vpop.f32.mrf.mxu1  ;;  %3985 = vmatpush3.bf16.msra.mxu0 %v4306_v22  ;;  %v4313_v22 = vld [vmem:[%s6092_s3 + $0x70] sm:$0xff]  }
 0x7ae   :  { %v5207_v7 = vadd.f32 %v1364_v0, %v4556_v24  ;;  %4026 = vmatprep.subr.bf16.mxu0 %v6104_v13 }
 0x7af   :  { %v1368_v58 = vpop.f32.mrf.mxu1 }
 0x7b0   :  { %v1369_v55 = vadd.f32 %v3481_v2, %v1368_v58  ;;  %v1394_v51 = vsel %vm157_vm2, %v5207_v7, 0.0 }
 0x7b1   :  { %1395 = vadd.xlane.f32.xlu1 %v1394_v51  ;;  %v3976_v26 = vpop.f32.mrf.mxu1 }
 0x7b2   :  { %v5212_v16 = vadd.f32 %v1369_v55, %v4565_v31 }
 0x7b3   :  { %v1371_v52 = vpop.f32.mrf.mxu1 }
 0x7b4   :  { %v1372_v54 = vadd.f32 %v3481_v2, %v1371_v52  ;;  %v1397_v45 = vsel %vm157_vm2, %v5212_v16, 0.0 }
 0x7b5   :  { %1398 = vadd.xlane.f32.xlu0 %v1397_v45  ;;  %v3977_v32 = vpop.f32.mrf.mxu1 }
 0x7b6   :  { %v5217_v24 = vadd.f32 %v1372_v54, %v4577_v38 }
 0x7b7   :  { %v1376_v12 = vpop.f32.mrf.mxu1 }
 0x7b8   :  { %v1377_v34 = vadd.f32 %v3481_v2, %v1376_v12  ;;  %v1400_v44 = vsel %vm157_vm2, %v5217_v24, 0.0 }
 0x7b9   :  { %1401 = vadd.xlane.f32.xlu1 %v1400_v44  ;;  %v3980_v49 = vpop.f32.mrf.mxu1 }
 0x7ba   :  { %v5222_v31 = vadd.f32 %v1377_v34, %v4558_v25 }
 0x7bb   :  { %v1379_v50 = vpop.f32.mrf.mxu1 }
 0x7bc   :  { %v1380_v28 = vadd.f32 %v3481_v2, %v1379_v50  ;;  %v1403_v35 = vsel %vm157_vm2, %v5222_v31, 0.0 }
 0x7bd   :  { %1404 = vadd.xlane.f32.xlu0 %v1403_v35  ;;  %v3981_v57 = vpop.f32.mrf.mxu1 }
 0x7be   :  { %v5227_v38 = vadd.f32 %v1380_v28, %v4579_v39  ;;  %v3487_v28 = vld [vmem:[%s6095_s4 + $0x8] ss:$0 sm:$0xff] }
 0x7c0   :  { %v1406_v61 = vsel %vm157_vm2, %v5227_v38, 0.0 }
 0x7c1   :  { %1407 = vadd.xlane.f32.xlu1 %v1406_v61 }
 0x836   :  { %v1393_v59 = vpop.xlane.xlu0 %1392 }
 0x837   :  { %v1409_v5 = vmul.f32 0.03125, %v1393_v59 }
 0x839   :  { %v1415_v9 = vsub.f32 %v5202_v60, %v1409_v5 }
 0x83a   :  { %v1396_v25 = vpop.xlane.xlu1 %1395 }
 0x83b   :  { %v1410_v6 = vmul.f32 0.03125, %v1396_v25  ;;  %v1421_v14 = vmul.f32 %v1415_v9, %v1415_v9 }
 0x83d   :  { %v5233_v27 = vsub.f32 %v5207_v7, %v1410_v6  ;;  %v1427_v56 = vsel %vm157_vm2, %v1421_v14, 0.0  ;;  %v3488_v6 = vld [vmem:[%s6095_s4 + $0x9] ss:$0 sm:$0xff] }
 0x83e   :  { %v1399_v18 = vpop.xlane.xlu0 %1398  ;;  %1428 = vadd.xlane.f32.xlu0 %v1427_v56 }
 0x83f   :  { %v1411_v39 = vmul.f32 0.03125, %v1399_v18  ;;  %v1422_v46 = vmul.f32 %v5233_v27, %v5233_v27 }
 0x841   :  { %v5239_v1 = vsub.f32 %v5212_v16, %v1411_v39  ;;  %v1430_v62 = vsel %vm157_vm2, %v1422_v46, 0.0 }
 0x842   :  { %1431 = vadd.xlane.f32.xlu1 %v1430_v62  ;;  %v1402_v33 = vpop.xlane.xlu1 %1401 }
 0x843   :  { %v1412_v11 = vmul.f32 0.03125, %v1402_v33  ;;  %v1423_v63 = vmul.f32 %v5239_v1, %v5239_v1 }
 0x845   :  { %v5245_v4 = vsub.f32 %v5217_v24, %v1412_v11  ;;  %v1433_v41 = vsel %vm157_vm2, %v1423_v63, 0.0 }
 0x846   :  { %1434 = vadd.xlane.f32.xlu0 %v1433_v41  ;;  %v1405_v43 = vpop.xlane.xlu0 %1404 }
 0x847   :  { %v1413_v8 = vmul.f32 0.03125, %v1405_v43  ;;  %v1424_v10 = vmul.f32 %v5245_v4, %v5245_v4 }
 0x849   :  { %v5251_v36 = vsub.f32 %v5222_v31, %v1413_v8  ;;  %v1436_v37 = vsel %vm157_vm2, %v1424_v10, 0.0 }
 0x84a   :  { %1437 = vadd.xlane.f32.xlu1 %v1436_v37  ;;  %v1408_v30 = vpop.xlane.xlu1 %1407 }
 0x84b   :  { %v1414_v23 = vmul.f32 0.03125, %v1408_v30  ;;  %v1425_v21 = vmul.f32 %v5251_v36, %v5251_v36 }
 0x84d   :  { %v5257_v53 = vsub.f32 %v5227_v38, %v1414_v23  ;;  %v1439_v47 = vsel %vm157_vm2, %v1425_v21, 0.0 }
 0x84e   :  { %1440 = vadd.xlane.f32.xlu0 %v1439_v47 }
 0x84f   :  { %v1426_v48 = vmul.f32 %v5257_v53, %v5257_v53 }
 0x851   :  { %v1442_v2 = vsel %vm157_vm2, %v1426_v48, 0.0  ;;  %v4310_v48 = vld [vmem:[%s6092_s3 + $0x88] sm:$0xff]  }
 0x852   :  { %1443 = vadd.xlane.f32.xlu1 %v1442_v2  ;;  %v4311_v2 = vld [vmem:[%s6092_s3 + $0x80] sm:$0xff]  }
 0x8c7   :  { %v1429_v17 = vpop.xlane.xlu0 %1428 }
 0x8c8   :  { %v1445_v0 = vmul.f32 0.03125, %v1429_v17  ;;  %v3489_v17 = vld [vmem:[%s6095_s4 + $0xa] ss:$0 sm:$0xff] }
 0x8ca   :  { %v1451_v40 = vadd.f32 1e-05, %v1445_v0 }
 0x8cb   :  { %v1432_v42 = vpop.xlane.xlu1 %1431 }
 0x8cc   :  { %4371 = vrsqrt.f32 %v1451_v40  ;;  %v1446_v58 = vmul.f32 0.03125, %v1432_v42 }
 0x8ce   :  { %v1452_v55 = vadd.f32 1e-05, %v1446_v58 }
 0x8cf   :  { %v1435_v51 = vpop.xlane.xlu0 %1434 }
 0x8d0   :  { %4373 = vrsqrt.f32 %v1452_v55  ;;  %v1447_v26 = vmul.f32 0.03125, %v1435_v51 }
 0x8d2   :  { %v1453_v52 = vadd.f32 1e-05, %v1447_v26 }
 0x8d3   :  { %v1438_v54 = vpop.xlane.xlu1 %1437 }
 0x8d4   :  { %4375 = vrsqrt.f32 %v1453_v52  ;;  %v1448_v45 = vmul.f32 0.03125, %v1438_v54 }
 0x8d6   :  { %v1454_v32 = vadd.f32 1e-05, %v1448_v45 }
 0x8d7   :  { %v1441_v12 = vpop.xlane.xlu0 %1440 }
 0x8d8   :  { %4377 = vrsqrt.f32 %v1454_v32  ;;  %v1449_v34 = vmul.f32 0.03125, %v1441_v12 }
 0x8d9   :  { %v4372_v44 = vpop.eup %4371 }
 0x8da   :  { %v1463_v49 = vmul.f32 %v4372_v44, %v1415_v9  ;;  %v1455_v50 = vadd.f32 1e-05, %v1449_v34 }
 0x8db   :  { %v1444_v35 = vpop.xlane.xlu1 %1443 }
 0x8dc   :  { %4379 = vrsqrt.f32 %v1455_v50  ;;  %v1450_v57 = vmul.f32 0.03125, %v1444_v35  ;;  %v1473_v59 = vmul.f32 %v3487_v28, %v1463_v49 }
 0x8dd   :  { %v4374_v61 = vpop.eup %4373 }
 0x8de   :  { %v1464_v5 = vmul.f32 %v4374_v61, %v5233_v27  ;;  %v1456_v25 = vadd.f32 1e-05, %v1450_v57  ;;  %v1483_v56 = vadd.f32 %v3488_v6, %v1473_v59 }
 0x8e0   :  { %v1474_v14 = vmul.f32 %v3487_v28, %v1464_v5  ;;  %4381 = vrsqrt.f32 %v1456_v25 }
 0x8e1   :  { %v4376_v9 = vpop.eup %4375 }
 0x8e2   :  { %v1484_v18 = vadd.f32 %v3488_v6, %v1474_v14  ;;  %v1465_v39 = vmul.f32 %v4376_v9, %v5239_v1 }
 0x8e4   :  { %v1489_v46 = vpack.c.bf16 %v1484_v18, %v1483_v56  ;;  %v1475_v11 = vmul.f32 %v3487_v28, %v1465_v39 }
 0x8e5   :  { %v4378_v62 = vpop.eup %4377 }
 0x8e6   :  { %3987 = vmatmul.mubr.msk.bf16.vlgmr.msra.gmra.mxu0 %vm157_vm2, %v1489_v46  ;;  %v1466_v33 = vmul.f32 %v4378_v62, %v5245_v4  ;;  %v1485_v41 = vadd.f32 %v3488_v6, %v1475_v11 }
 0x8e7   :  { %3990 = vmatprep.mubr.msk.bf16.mxu0 %vm4464_vm0, %v6104_v13 }
 0x8e8   :  { %v1476_v27 = vmul.f32 %v3487_v28, %v1466_v33 }
 0x8e9   :  { %v4380_v63 = vpop.eup %4379 }
 0x8ea   :  { %v1486_v43 = vadd.f32 %v3488_v6, %v1476_v27  ;;  %v1467_v8 = vmul.f32 %v4380_v63, %v5251_v36  ;;  %v4308_v36 = vld [vmem:[%s6092_s3 + $0x98] sm:$0xff]  }
 0x8eb   :  { %4001 = vmatpush3.bf16.msra.mxu1 %v4308_v36 }
 0x8ec   :  { %v1490_v10 = vpack.c.bf16 %v1486_v43, %v1485_v41  ;;  %v1477_v30 = vmul.f32 %v3487_v28, %v1467_v8  ;;  %4002 = vmatprep.subr.bf16.mxu1 %v6104_v13 }
 0x8ed   :  { %v4382_v37 = vpop.eup %4381 }
 0x8ee   :  { %3991 = vmatmul.mubr.msk.bf16.gmra.mxu0 %vm157_vm2, %v1490_v10  ;;  %v1468_v1 = vmul.f32 %v4382_v37, %v5257_v53  ;;  %v1487_v23 = vadd.f32 %v3488_v6, %v1477_v30  ;;  %v4309_v53 = vld [vmem:[%s6092_s3 + $0x90] sm:$0xff]  }
 0x8ef   :  { %3994 = vmatprep.mubr.msk.bf16.mxu0 %vm4464_vm0, %v6104_v13  ;;  %4003 = vmatpush3.bf16.msra.mxu1 %v4309_v53 }
 0x8f0   :  { %v1478_v4 = vmul.f32 %v3487_v28, %v1468_v1  ;;  %4004 = vmatprep.subr.bf16.mxu1 %v6104_v13 }
 0x8f2   :  { %v1488_v21 = vadd.f32 %v3488_v6, %v1478_v4 }
 0x8f3   :  { %4005 = vmatpush3.bf16.msra.mxu1 %v4310_v48 }
 0x8f4   :  { %v1491_v47 = vpack.c.bf16 %v1488_v21, %v1487_v23  ;;  %4006 = vmatprep.subr.bf16.mxu1 %v6104_v13 }
 0x8f6   :  { %3995 = vmatmul.mubr.msk.bf16.gmra.mxu0 %vm157_vm2, %v1491_v47 }
 0x8f7   :  { %4030 = vmatprep.mubr.msk.bf16.mxu0 %vm4464_vm0, %v6104_v13  ;;  %4007 = vmatpush3.bf16.msra.mxu1 %v4311_v2 }
 0x8f8   :  { %4008 = vmatprep.subr.bf16.mxu1 %v6104_v13 }
 0x8fb   :  { %4009 = vmatpush3.bf16.msra.mxu1 %v4312_v3 }
 0x8fc   :  { %4010 = vmatprep.subr.bf16.mxu1 %v6104_v13 }
 0x8ff   :  { %4011 = vmatpush3.bf16.msra.mxu1 %v4313_v22  ;;  %v3495_v22 = vld [vmem:[%s6095_s4 + $0xb] ss:$0 sm:$0xff] }
 0x900   :  { %4012 = vmatprep.subr.bf16.mxu1 %v6104_v13 }
 0x903   :  { %4013 = vmatpush3.bf16.msra.mxu1 %v4314_v29 }
 0x904   :  { %4058 = vmatprep.subr.bf16.mxu1 %v6104_v13 }
 0x9a6   :  { %v1556_v0 = vpop.f32.mrf.mxu0 }
 0x9a7   :  { %v1557_v40 = vadd.f32 %v3489_v17, %v1556_v0 }
 0x9a8   :  { %v3988_v42 = vpop.f32.mrf.mxu0 }
 0x9a9   :  { %v1585_v58 = vmul.f32 0.70710677, %v1557_v40  ;;  %v1579_v56 = vmul.f32 0.5, %v1557_v40 }
 0x9aa   :  { %v1559_v55 = vpop.f32.mrf.mxu0 }
 0x9ab   :  { %4383 = verf.f32 %v1585_v58  ;;  %v1560_v51 = vadd.f32 %v3489_v17, %v1559_v55 }
 0x9ac   :  { %v3989_v26 = vpop.f32.mrf.mxu0 }
 0x9ad   :  { %v1586_v52 = vmul.f32 0.70710677, %v1560_v51  ;;  %v1580_v18 = vmul.f32 0.5, %v1560_v51 }
 0x9ae   :  { %v1564_v54 = vpop.f32.mrf.mxu0 }
 0x9af   :  { %4385 = verf.f32 %v1586_v52  ;;  %v1565_v45 = vadd.f32 %v3489_v17, %v1564_v54 }
 0x9b0   :  { %v3992_v32 = vpop.f32.mrf.mxu0 }
 0x9b1   :  { %v1587_v12 = vmul.f32 0.70710677, %v1565_v45  ;;  %v1581_v43 = vmul.f32 0.5, %v1565_v45 }
 0x9b2   :  { %v1567_v34 = vpop.f32.mrf.mxu0 }
 0x9b3   :  { %4387 = verf.f32 %v1587_v12  ;;  %v1568_v44 = vadd.f32 %v3489_v17, %v1567_v34 }
 0x9b4   :  { %v3993_v49 = vpop.f32.mrf.mxu0 }
 0x9b5   :  { %v1588_v50 = vmul.f32 0.70710677, %v1568_v44  ;;  %v1582_v8 = vmul.f32 0.5, %v1568_v44 }
 0x9b6   :  { %v1572_v28 = vpop.f32.mrf.mxu0 }
 0x9b7   :  { %4389 = verf.f32 %v1588_v50  ;;  %v1573_v35 = vadd.f32 %v3489_v17, %v1572_v28 }
 0x9b8   :  { %v4384_v57 = vpop.eup %4383  ;;  %v3996_v61 = vpop.f32.mrf.mxu0 }
 0x9b9   :  { %v1589_v59 = vmul.f32 0.70710677, %v1573_v35  ;;  %v1597_v25 = vadd.f32 1.0, %v4384_v57  ;;  %v1583_v47 = vmul.f32 0.5, %v1573_v35 }
 0x9ba   :  { %v1575_v5 = vpop.f32.mrf.mxu0 }
 0x9bb   :  { %4391 = verf.f32 %v1589_v59  ;;  %v1576_v6 = vadd.f32 %v3489_v17, %v1575_v5  ;;  %v1603_v62 = vmul.f32 %v1597_v25, %v1579_v56 }
 0x9bc   :  { %v4386_v14 = vpop.eup %4385  ;;  %v3997_v9 = vpop.f32.mrf.mxu0 }
 0x9bd   :  { %v1598_v39 = vadd.f32 1.0, %v4386_v14  ;;  %v1590_v46 = vmul.f32 0.70710677, %v1576_v6  ;;  %v1584_v36 = vmul.f32 0.5, %v1576_v6 }
 0x9bf   :  { %v1604_v33 = vmul.f32 %v1598_v39, %v1580_v18  ;;  %4393 = verf.f32 %v1590_v46 }
 0x9c0   :  { %v4388_v11 = vpop.eup %4387 }
 0x9c1   :  { %v1609_v27 = vpack.c.bf16 %v1604_v33, %v1603_v62  ;;  %v1599_v63 = vadd.f32 1.0, %v4388_v11 }
 0x9c3   :  { %4015 = vmatmul.mubr.bf16.vlgmr.msra.gmra.mxu1 %v1609_v27  ;;  %v1605_v37 = vmul.f32 %v1599_v63, %v1581_v43 }
 0x9c4   :  { %v4390_v41 = vpop.eup %4389  ;;  %4018 = vmatprep.mubr.msk.bf16.mxu1 %vm4464_vm0, %v6104_v13 }
 0x9c5   :  { %v1600_v10 = vadd.f32 1.0, %v4390_v41 }
 0x9c7   :  { %v1606_v1 = vmul.f32 %v1600_v10, %v1582_v8 }
 0x9c8   :  { %v4392_v30 = vpop.eup %4391 }
 0x9c9   :  { %v1610_v4 = vpack.c.bf16 %v1606_v1, %v1605_v37  ;;  %v1601_v23 = vadd.f32 1.0, %v4392_v30 }
 0x9cb   :  { %4019 = vmatmul.mubr.bf16.gmra.mxu1 %v1610_v4  ;;  %v1607_v48 = vmul.f32 %v1601_v23, %v1583_v47 }
 0x9cc   :  { %v4394_v21 = vpop.eup %4393  ;;  %4022 = vmatprep.mubr.msk.bf16.mxu1 %vm4464_vm0, %v6104_v13 }
 0x9cd   :  { %v1602_v53 = vadd.f32 1.0, %v4394_v21 }
 0x9cf   :  { %v1608_v2 = vmul.f32 %v1602_v53, %v1584_v36 }
 0x9d1   :  { %v1611_v3 = vpack.c.bf16 %v1608_v2, %v1607_v48 }
 0x9d3   :  { %4023 = vmatmul.mubr.bf16.gmra.mxu1 %v1611_v3 }
 0x9d4   :  { %4062 = vmatprep.mubr.msk.bf16.mxu1 %vm4464_vm0, %v6104_v13 }
 0xa83   :  { %v1715_v29 = vpop.f32.mrf.mxu1 }
 0xa84   :  { %v1716_v17 = vadd.f32 %v3495_v22, %v1715_v29  ;;  %v4315_v29 = vld [vmem:[%s6092_s3 + $0xb0] sm:$0xff]  }
 0xa85   :  { %v4016_v0 = vpop.f32.mrf.mxu1  ;;  %4027 = vmatpush3.bf16.msra.mxu0 %v4315_v29 }
 0xa86   :  { %v5336_v40 = vadd.f32 %v1716_v17, %v5202_v60  ;;  %v4317_v17 = vld [vmem:[%s6092_s3 + $0xd0] sm:$0xff]   ;;  %v4316_v0 = vld [vmem:[%s6092_s3 + $0xa8] sm:$0xff]   ;;  %4028 = vmatprep.subr.bf16.mxu0 %v6104_v13 }
 0xa87   :  { %v1718_v42 = vpop.f32.mrf.mxu1  ;;  %4059 = vmatpush3.bf16.msra.mxu1 %v4317_v17  ;;  %v3518_v17 = vld [vmem:[%s6095_s4 + $0x10] ss:$0 sm:$0xff] }
 0xa88   :  { %v1719_v58 = vadd.f32 %v3495_v22, %v1718_v42  ;;  %v1746_v55 = vsel %vm157_vm2, %v5336_v40, 0.0  ;;  %v4318_v42 = vld [vmem:[%s6092_s3 + $0xc8] sm:$0xff]   ;;  %4060 = vmatprep.subr.bf16.mxu1 %v6104_v13 }
 0xa89   :  { %1747 = vadd.xlane.f32.xlu0 %v1746_v55  ;;  %v4017_v51 = vpop.f32.mrf.mxu1  ;;  %4029 = vmatpush3.bf16.msra.mxu0 %v4316_v0 }
 0xa8a   :  { %v5341_v26 = vadd.f32 %v1719_v58, %v5207_v7  ;;  %4042 = vmatprep.subr.bf16.mxu0 %v6104_v13 }
 0xa8b   :  { %v1723_v52 = vpop.f32.mrf.mxu1  ;;  %4061 = vmatpush3.bf16.msra.mxu1 %v4318_v42 }
 0xa8c   :  { %v1724_v54 = vadd.f32 %v3495_v22, %v1723_v52  ;;  %v1749_v45 = vsel %vm157_vm2, %v5341_v26, 0.0  ;;  %4092 = vmatprep.subr.bf16.mxu1 %v6104_v13 }
 0xa8d   :  { %1750 = vadd.xlane.f32.xlu1 %v1749_v45  ;;  %v4020_v32 = vpop.f32.mrf.mxu1 }
 0xa8e   :  { %v5346_v60 = vadd.f32 %v1724_v54, %v5212_v16 }
 0xa8f   :  { %v1726_v12 = vpop.f32.mrf.mxu1 }
 0xa90   :  { %v1727_v34 = vadd.f32 %v3495_v22, %v1726_v12  ;;  %v1752_v44 = vsel %vm157_vm2, %v5346_v60, 0.0 }
 0xa91   :  { %1753 = vadd.xlane.f32.xlu0 %v1752_v44  ;;  %v4021_v49 = vpop.f32.mrf.mxu1 }
 0xa92   :  { %v5351_v7 = vadd.f32 %v1727_v34, %v5217_v24 }
 0xa93   :  { %v1731_v50 = vpop.f32.mrf.mxu1 }
 0xa94   :  { %v1732_v28 = vadd.f32 %v3495_v22, %v1731_v50  ;;  %v1755_v35 = vsel %vm157_vm2, %v5351_v7, 0.0 }
 0xa95   :  { %1756 = vadd.xlane.f32.xlu1 %v1755_v35  ;;  %v4024_v57 = vpop.f32.mrf.mxu1 }
 0xa96   :  { %v5356_v16 = vadd.f32 %v1732_v28, %v5222_v31 }
 0xa97   :  { %v1734_v61 = vpop.f32.mrf.mxu1 }
 0xa98   :  { %v1735_v59 = vadd.f32 %v3495_v22, %v1734_v61  ;;  %v1758_v5 = vsel %vm157_vm2, %v5356_v16, 0.0 }
 0xa99   :  { %1759 = vadd.xlane.f32.xlu0 %v1758_v5  ;;  %v4025_v25 = vpop.f32.mrf.mxu1  ;;  %v3504_v5 = vld [vmem:[%s6095_s4 + $0xc] ss:$0 sm:$0xff] }
 0xa9a   :  { %v5361_v24 = vadd.f32 %v1735_v59, %v5227_v38 }
 0xa9c   :  { %6119 = vst [vmem:[#allocation3_spill] sm:$0xff] %v5361_v24  ;;  %v1761_v6 = vsel %vm157_vm2, %v5361_v24, 0.0 }
 0xa9d   :  { %1762 = vadd.xlane.f32.xlu1 %v1761_v6 }
 0xb12   :  { %v1748_v14 = vpop.xlane.xlu0 %1747 }
 0xb13   :  { %v1764_v9 = vmul.f32 0.03125, %v1748_v14 }
 0xb15   :  { %v5366_v56 = vsub.f32 %v5336_v40, %v1764_v9 }
 0xb16   :  { %v1751_v31 = vpop.xlane.xlu1 %1750 }
 0xb17   :  { %v1765_v18 = vmul.f32 0.03125, %v1751_v31  ;;  %v1776_v39 = vmul.f32 %v5366_v56, %v5366_v56 }
 0xb19   :  { %v5371_v46 = vsub.f32 %v5341_v26, %v1765_v18  ;;  %v1782_v38 = vsel %vm157_vm2, %v1776_v39, 0.0  ;;  %v3505_v39 = vld [vmem:[%s6095_s4 + $0xd] ss:$0 sm:$0xff] }
 0xb1a   :  { %v1754_v62 = vpop.xlane.xlu0 %1753  ;;  %1783 = vadd.xlane.f32.xlu0 %v1782_v38 }
 0xb1b   :  { %v1766_v33 = vmul.f32 0.03125, %v1754_v62  ;;  %v1777_v11 = vmul.f32 %v5371_v46, %v5371_v46 }
 0xb1d   :  { %v5377_v27 = vsub.f32 %v5346_v60, %v1766_v33  ;;  %v1785_v63 = vsel %vm157_vm2, %v1777_v11, 0.0 }
 0xb1e   :  { %v1757_v41 = vpop.xlane.xlu1 %1756  ;;  %1786 = vadd.xlane.f32.xlu1 %v1785_v63  ;;  %v4319_v63 = vld [vmem:[%s6092_s3 + $0xc0] sm:$0xff]  }
 0xb1f   :  { %v1767_v43 = vmul.f32 0.03125, %v1757_v41  ;;  %v1778_v8 = vmul.f32 %v5377_v27, %v5377_v27 }
 0xb21   :  { %v5383_v10 = vsub.f32 %v5351_v7, %v1767_v43  ;;  %v1788_v37 = vsel %vm157_vm2, %v1778_v8, 0.0 }
 0xb22   :  { %1789 = vadd.xlane.f32.xlu0 %v1788_v37  ;;  %v1760_v1 = vpop.xlane.xlu0 %1759 }
 0xb23   :  { %v1768_v30 = vmul.f32 0.03125, %v1760_v1  ;;  %v1779_v4 = vmul.f32 %v5383_v10, %v5383_v10 }
 0xb25   :  { %v5389_v23 = vsub.f32 %v5356_v16, %v1768_v30  ;;  %v1791_v21 = vsel %vm157_vm2, %v1779_v4, 0.0 }
 0xb26   :  { %1792 = vadd.xlane.f32.xlu1 %v1791_v21  ;;  %v1763_v47 = vpop.xlane.xlu1 %1762 }
 0xb27   :  { %v1769_v36 = vmul.f32 0.03125, %v1763_v47  ;;  %v1780_v53 = vmul.f32 %v5389_v23, %v5389_v23 }
 0xb29   :  { %v5395_v48 = vsub.f32 %v5361_v24, %v1769_v36  ;;  %v1794_v2 = vsel %vm157_vm2, %v1780_v53, 0.0 }
 0xb2a   :  { %1795 = vadd.xlane.f32.xlu0 %v1794_v2 }
 0xb2b   :  { %v1781_v3 = vmul.f32 %v5395_v48, %v5395_v48 }
 0xb2d   :  { %v1797_v22 = vsel %vm157_vm2, %v1781_v3, 0.0 }
 0xb2e   :  { %1798 = vadd.xlane.f32.xlu1 %v1797_v22 }
 0xba3   :  { %v1784_v58 = vpop.xlane.xlu0 %1783 }
 0xba4   :  { %v1800_v55 = vmul.f32 0.03125, %v1784_v58 }
 0xba6   :  { %v1806_v51 = vadd.f32 1e-05, %v1800_v55 }
 0xba7   :  { %v1787_v52 = vpop.xlane.xlu1 %1786 }
 0xba8   :  { %4395 = vrsqrt.f32 %v1806_v51  ;;  %v1801_v54 = vmul.f32 0.03125, %v1787_v52 }
 0xbaa   :  { %v1807_v45 = vadd.f32 1e-05, %v1801_v54 }
 0xbab   :  { %v1790_v32 = vpop.xlane.xlu0 %1789 }
 0xbac   :  { %4397 = vrsqrt.f32 %v1807_v45  ;;  %v1802_v12 = vmul.f32 0.03125, %v1790_v32 }
 0xbae   :  { %v1808_v34 = vadd.f32 1e-05, %v1802_v12 }
 0xbaf   :  { %v1793_v44 = vpop.xlane.xlu1 %1792 }
 0xbb0   :  { %4399 = vrsqrt.f32 %v1808_v34  ;;  %v1803_v49 = vmul.f32 0.03125, %v1793_v44  ;;  %v6120_v34 = vld [vmem:[#allocation2_spill] sm:$0xff] }
 0xbb2   :  { %v1809_v50 = vadd.f32 1e-05, %v1803_v49 }
 0xbb3   :  { %v1796_v28 = vpop.xlane.xlu0 %1795 }
 0xbb4   :  { %4401 = vrsqrt.f32 %v1809_v50  ;;  %v1804_v35 = vmul.f32 0.03125, %v1796_v28 }
 0xbb5   :  { %v4396_v57 = vpop.eup %4395 }
 0xbb6   :  { %v1818_v61 = vmul.f32 %v4396_v57, %v5366_v56  ;;  %v1810_v59 = vadd.f32 1e-05, %v1804_v35 }
 0xbb7   :  { %v1799_v25 = vpop.xlane.xlu1 %1798 }
 0xbb8   :  { %4403 = vrsqrt.f32 %v1810_v59  ;;  %v1805_v6 = vmul.f32 0.03125, %v1799_v25  ;;  %v1828_v9 = vmul.f32 %v3504_v5, %v1818_v61 }
 0xbb9   :  { %v4398_v14 = vpop.eup %4397 }
 0xbba   :  { %v1819_v31 = vmul.f32 %v4398_v14, %v5371_v46  ;;  %v1811_v18 = vadd.f32 1e-05, %v1805_v6  ;;  %v1838_v62 = vadd.f32 %v3505_v39, %v1828_v9 }
 0xbbc   :  { %v1829_v38 = vmul.f32 %v3504_v5, %v1819_v31  ;;  %4405 = vrsqrt.f32 %v1811_v18 }
 0xbbd   :  { %v4400_v56 = vpop.eup %4399 }
 0xbbe   :  { %v1839_v33 = vadd.f32 %v3505_v39, %v1829_v38  ;;  %v1820_v11 = vmul.f32 %v4400_v56, %v5377_v27  ;;  %v4320_v27 = vld [vmem:[%s6092_s3 + $0xb8] sm:$0xff]  }
 0xbc0   :  { %v1844_v41 = vpack.c.bf16 %v1839_v33, %v1838_v62  ;;  %v1830_v8 = vmul.f32 %v3504_v5, %v1820_v11 }
 0xbc1   :  { %v4402_v43 = vpop.eup %4401 }
 0xbc2   :  { %4031 = vmatmul.mubr.msk.bf16.vlgmr.msra.gmra.mxu0 %vm157_vm2, %v1844_v41  ;;  %4063 = vmatmul.mubr.msk.bf16.vlgmr.msra.gmra.mxu1 %vm157_vm2, %v1844_v41  ;;  %v1821_v46 = vmul.f32 %v4402_v43, %v5383_v10  ;;  %v1840_v30 = vadd.f32 %v3505_v39, %v1830_v8 }
 0xbc3   :  { %4043 = vmatpush3.bf16.msra.mxu0 %v4319_v63  ;;  %4034 = vmatprep.mubr.msk.bf16.mxu0 %vm4464_vm0, %v6104_v13 }
 0xbc4   :  { %4066 = vmatprep.mubr.msk.bf16.mxu1 %vm4464_vm0, %v6104_v13  ;;  %v1831_v37 = vmul.f32 %v3504_v5, %v1821_v46  ;;  %4044 = vmatprep.subr.bf16.mxu0 %v6104_v13 }
 0xbc5   :  { %v4404_v1 = vpop.eup %4403 }
 0xbc6   :  { %v1841_v4 = vadd.f32 %v3505_v39, %v1831_v37  ;;  %v1822_v10 = vmul.f32 %v4404_v1, %v5389_v23 }
 0xbc7   :  { %4045 = vmatpush3.bf16.msra.mxu0 %v4320_v27 }
 0xbc8   :  { %v1845_v21 = vpack.c.bf16 %v1841_v4, %v1840_v30  ;;  %4074 = vmatprep.subr.bf16.mxu0 %v6104_v13  ;;  %v1832_v53 = vmul.f32 %v3504_v5, %v1822_v10 }
 0xbc9   :  { %v4406_v47 = vpop.eup %4405 }
 0xbca   :  { %4035 = vmatmul.mubr.msk.bf16.gmra.mxu0 %vm157_vm2, %v1845_v21  ;;  %4067 = vmatmul.mubr.msk.bf16.gmra.mxu1 %vm157_vm2, %v1845_v21  ;;  %v1823_v36 = vmul.f32 %v4406_v47, %v5395_v48  ;;  %v1842_v23 = vadd.f32 %v3505_v39, %v1832_v53  ;;  %v3506_v48 = vld [vmem:[%s6095_s4 + $0xe] ss:$0 sm:$0xff] }
 0xbcb   :  { %4038 = vmatprep.mubr.msk.bf16.mxu0 %vm4464_vm0, %v6104_v13  ;;  %4070 = vmatprep.mubr.msk.bf16.mxu1 %vm4464_vm0, %v6104_v13 }
 0xbcc   :  { %v1833_v2 = vmul.f32 %v3504_v5, %v1823_v36 }
 0xbce   :  { %v1843_v3 = vadd.f32 %v3505_v39, %v1833_v2 }
 0xbd0   :  { %v1846_v22 = vpack.c.bf16 %v1843_v3, %v1842_v23 }
 0xbd2   :  { %4039 = vmatmul.mubr.msk.bf16.gmra.mxu0 %vm157_vm2, %v1846_v22  ;;  %4071 = vmatmul.mubr.msk.bf16.gmra.mxu1 %vm157_vm2, %v1846_v22 }
 0xbd3   :  { %4046 = vmatprep.mubr.msk.bf16.mxu0 %vm4464_vm0, %v6104_v13  ;;  %4098 = vmatprep.mubr.msk.bf16.mxu1 %vm4464_vm0, %v6104_v13 }
 0xbda   :  { %4047 = vmatmul.mubr.msk.bf16.vlgmr.msra.gmra.mxu0 %vm157_vm2, %v1844_v41 }
 0xbdb   :  { %4050 = vmatprep.mubr.msk.bf16.mxu0 %vm4464_vm0, %v6104_v13 }
 0xbe2   :  { %4051 = vmatmul.mubr.msk.bf16.gmra.mxu0 %vm157_vm2, %v1845_v21 }
 0xbe3   :  { %4054 = vmatprep.mubr.msk.bf16.mxu0 %vm4464_vm0, %v6104_v13 }
 0xbea   :  { %4055 = vmatmul.mubr.msk.bf16.gmra.mxu0 %vm157_vm2, %v1846_v22 }
 0xbeb   :  { %4080 = vmatprep.mubr.msk.bf16.mxu0 %vm4464_vm0, %v6104_v13 }
 0xc82   :  { %v1911_v29 = vpop.f32.mrf.mxu0  ;;  %v2067_v0 = vpop.f32.mrf.mxu1 }
 0xc83   :  { %v5470_v42 = vadd.f32 %v3506_v48, %v1911_v29  ;;  %v2068_v51 = vadd.f32 %v3518_v17, %v2067_v0 }
 0xc84   :  { %v4032_v58 = vpop.f32.mrf.mxu0  ;;  %v4064_v55 = vpop.f32.mrf.mxu1 }
 0xc85   :  { %v5476_v12 = vmul.f32 %v4698_v15, %v5470_v42  ;;  %v5480_v44 = vmul.f32 %v6120_v34, %v5470_v42  ;;  %v5483_v28 = vmul.f32 %v4705_v19, %v2068_v51  ;;  %v5486_v35 = vmul.f32 %v4708_v20, %v2068_v51 }
 0xc86   :  { %v1914_v52 = vpop.f32.mrf.mxu0  ;;  %v2070_v54 = vpop.f32.mrf.mxu1  ;;  %v5509_v31 = vmul.f32 %v4698_v15, %v2068_v51  ;;  %v5512_v18 = vmul.f32 %v6120_v34, %v2068_v51 }
 0xc87   :  { %v5472_v45 = vadd.f32 %v3506_v48, %v1914_v52  ;;  %v2071_v32 = vadd.f32 %v3518_v17, %v2070_v54 }
 0xc88   :  { %v4033_v49 = vpop.f32.mrf.mxu0  ;;  %v4065_v50 = vpop.f32.mrf.mxu1 }
 0xc89   :  { %v5490_v57 = vmul.f32 %v4698_v15, %v5472_v45  ;;  %v5494_v61 = vmul.f32 %v6120_v34, %v5472_v45  ;;  %v5497_v59 = vmul.f32 %v4705_v19, %v2071_v32  ;;  %v5500_v5 = vmul.f32 %v4708_v20, %v2071_v32 }
 0xc8a   :  { %v5503_v25 = vmul.f32 %v4698_v15, %v2071_v32  ;;  %v5506_v6 = vmul.f32 %v6120_v34, %v2071_v32  ;;  %v1919_v14 = vpop.f32.mrf.mxu0  ;;  %v2075_v9 = vpop.f32.mrf.mxu1 }
 0xc8b   :  { %v5526_v43 = vadd.f32 %v3506_v48, %v1919_v14  ;;  %v5532_v4 = vadd.f32 %v3518_v17, %v2075_v9 }
 0xc8c   :  { %v4036_v56 = vpop.f32.mrf.mxu0  ;;  %v4068_v62 = vpop.f32.mrf.mxu1 }
 0xc8d   :  { %v5536_v10 = vmul.f32 %v4698_v15, %v5526_v43  ;;  %v5540_v21 = vmul.f32 %v6120_v34, %v5526_v43  ;;  %v5564_v55 = vmul.f32 %v4698_v15, %v5532_v4  ;;  %v5568_v51 = vmul.f32 %v6120_v34, %v5532_v4 }
 0xc8e   :  { %v1922_v46 = vpop.f32.mrf.mxu0  ;;  %v2078_v8 = vpop.f32.mrf.mxu1 }
 0xc8f   :  { %v5528_v27 = vadd.f32 %v3506_v48, %v1922_v46  ;;  %v5530_v37 = vadd.f32 %v3518_v17, %v2078_v8 }
 0xc90   :  { %v4037_v1 = vpop.f32.mrf.mxu0  ;;  %v4069_v30 = vpop.f32.mrf.mxu1 }
 0xc91   :  { %v5544_v47 = vmul.f32 %v4698_v15, %v5528_v27  ;;  %v5548_v36 = vmul.f32 %v6120_v34, %v5528_v27  ;;  %v5556_v22 = vmul.f32 %v4698_v15, %v5530_v37  ;;  %v5560_v29 = vmul.f32 %v6120_v34, %v5530_v37 }
 0xc92   :  { %v1927_v53 = vpop.f32.mrf.mxu0  ;;  %v2083_v2 = vpop.f32.mrf.mxu1 }
 0xc93   :  { %v5570_v52 = vadd.f32 %v3506_v48, %v1927_v53  ;;  %v5572_v49 = vadd.f32 %v3518_v17, %v2083_v2 }
 0xc94   :  { %v4040_v0 = vpop.f32.mrf.mxu0  ;;  %v4072_v58 = vpop.f32.mrf.mxu1 }
 0xc95   :  { %v5582_v8 = vmul.f32 %v4698_v15, %v5570_v52  ;;  %v5586_v1 = vmul.f32 %v6120_v34, %v5570_v52  ;;  %v5598_v53 = vmul.f32 %v4698_v15, %v5572_v49  ;;  %v5608_v58 = vmul.f32 %v6120_v34, %v5572_v49 }
 0xc96   :  { %v1930_v54 = vpop.f32.mrf.mxu0  ;;  %v2086_v32 = vpop.f32.mrf.mxu1 }
 0xc97   :  { %v5574_v50 = vadd.f32 %v3506_v48, %v1930_v54  ;;  %v2087_v14 = vadd.f32 %v3518_v17, %v2086_v32  ;;  %v3512_v54 = vld [vmem:[%s6095_s4 + $0xf] ss:$0 sm:$0xff] }
 0xc98   :  { %v4041_v9 = vpop.f32.mrf.mxu0  ;;  %v4073_v56 = vpop.f32.mrf.mxu1 }
 0xc99   :  { %v5590_v48 = vmul.f32 %v4698_v15, %v5574_v50  ;;  %v5594_v17 = vmul.f32 %v6120_v34, %v5574_v50  ;;  %v5601_v2 = vmul.f32 %v4698_v15, %v2087_v14  ;;  %v5604_v0 = vmul.f32 %v6120_v34, %v2087_v14 }
 0xc9a   :  { %v1989_v30 = vpop.f32.mrf.mxu0 }
 0xc9b   :  { %v2602_v15 = vpack.c.bf16 %v5604_v0, %v5608_v58  ;;  %v6133_v58 = vpack.c.bf16 %v5506_v6, %v5512_v18 }
 0xc9c   :  { %v4048_v9 = vpop.f32.mrf.mxu0 }
 0xc9e   :  { %v1992_v41 = vpop.f32.mrf.mxu0 }
 0xca0   :  { %v4049_v46 = vpop.f32.mrf.mxu0 }
 0xca1   :  { %v1993_v46 = vadd.f32 %v3512_v54, %v1992_v41  ;;  %v2196_v41 = vmul.f32 %v4708_v20, %v5472_v45 }
 0xca2   :  { %v1997_v3 = vpop.f32.mrf.mxu0 }
 0xca4   :  { %v4052_v38 = vpop.f32.mrf.mxu0 }
 0xca5   :  { %v1998_v38 = vadd.f32 %v3512_v54, %v1997_v3 }
 0xca6   :  { %v2000_v23 = vpop.f32.mrf.mxu0 }
 0xca7   :  { %v2001_v33 = vadd.f32 %v3512_v54, %v2000_v23 }
 0xca8   :  { %v4053_v34 = vpop.f32.mrf.mxu0 }
 0xcaa   :  { %v2005_v39 = vpop.f32.mrf.mxu0 }
 0xcab   :  { %v2006_v9 = vadd.f32 %v3512_v54, %v2005_v39 }
 0xcac   :  { %v4056_v63 = vpop.f32.mrf.mxu0 }
 0xcad   :  { %v2091_v63 = vpack.c.bf16 %v2001_v33, %v1998_v38  ;;  %v2094_v33 = vmul.f32 %v4705_v19, %v5472_v45  ;;  %v2208_v45 = vmul.f32 %v4708_v20, %v5572_v49  ;;  %v2105_v38 = vmul.f32 %v4705_v19, %v5530_v37 }
 0xcae   :  { %v2008_v32 = vpop.f32.mrf.mxu0 }
 0xcaf   :  { %v2009_v62 = vadd.f32 %v3512_v54, %v2008_v32  ;;  %v5629_v39 = vsel %vm157_vm2, %v2091_v63, 0  ;;  %v2195_v32 = vmul.f32 %v4708_v20, %v5470_v42 }
 0xcb0   :  { %v4057_v11 = vpop.f32.mrf.mxu0 }
 0xcb1   :  { %v2092_v56 = vpack.c.bf16 %v2009_v62, %v2006_v9  ;;  %v1990_v11 = vadd.f32 %v3512_v54, %v1989_v30  ;;  %v2107_v62 = vmul.f32 %v4705_v19, %v2087_v14  ;;  %v2209_v30 = vmul.f32 %v4708_v20, %v2087_v14 }
 0xcb2   :  { %v2093_v54 = vmul.f32 %v4705_v19, %v5470_v42  ;;  %v2201_v9 = vpack.c.bf16 %v2196_v41, %v2195_v32  ;;  %v2207_v14 = vmul.f32 %v4708_v20, %v5530_v37  ;;  %v2104_v42 = vmul.f32 %v4705_v19, %v5532_v4 }
 0xcb3   :  { %v5622_v24 = vsel %vm157_vm2, %v2092_v56, 0  ;;  %v2090_v23 = vpack.c.bf16 %v1993_v46, %v1990_v11  ;;  %v2106_v56 = vmul.f32 %v4705_v19, %v5572_v49  ;;  %v2212_v63 = vpack.c.bf16 %v2209_v30, %v2208_v45 }
 0xcb4   :  { %4075 = vmatpush3.bf16.xpose.msra.mxu0 %v5622_v24  ;;  %4093 = vmatpush3.bf16.xpose.msra.mxu1 %v5622_v24  ;;  %v2099_v34 = vpack.c.bf16 %v2094_v33, %v2093_v54  ;;  %v2206_v49 = vmul.f32 %v4708_v20, %v5532_v4  ;;  %v2096_v11 = vmul.f32 %v4705_v19, %v5528_v27 }
 0xcb5   :  { %4076 = vmatprep.subr.bf16.mxu0 %v6104_v13  ;;  %4094 = vmatprep.subr.bf16.mxu1 %v6104_v13  ;;  %v5636_v3 = vsel %vm157_vm2, %v2090_v23, 0  ;;  %v2110_v46 = vpack.c.bf16 %v2107_v62, %v2106_v56  ;;  %v2198_v37 = vmul.f32 %v4708_v20, %v5528_v27  ;;  %v2109_v33 = vpack.c.bf16 %v2105_v38, %v2104_v42 }
 0xcb6   :  { %v2211_v23 = vpack.c.bf16 %v2207_v14, %v2206_v49  ;;  %v2095_v4 = vmul.f32 %v4705_v19, %v5526_v43  ;;  %v2197_v41 = vmul.f32 %v4708_v20, %v5526_v43  ;;  %v6121_v30 = vpack.c.bf16 %v5500_v5, %v5486_v35  ;;  %v5720_v14 = vld [vmem:[%s6096_s2 + $0x8] sm:$0xff] }
 0xcb7   :  { %v6122_v54 = vpack.c.bf16 %v5497_v59, %v5483_v28  ;;  %v2098_v43 = vmul.f32 %v4705_v19, %v5574_v50  ;;  %v2200_v32 = vmul.f32 %v4708_v20, %v5574_v50  ;;  %v2097_v28 = vmul.f32 %v4705_v19, %v5570_v52 }
 0xcb8   :  { %v2202_v27 = vpack.c.bf16 %v2198_v37, %v2197_v41  ;;  %v2100_v62 = vpack.c.bf16 %v2096_v11, %v2095_v4  ;;  %v2199_v35 = vmul.f32 %v4708_v20, %v5570_v52  ;;  %v5713_v20 = vld [vmem:[%s6096_s2] sm:$0xff]  ;;  %v6123_v4 = vpack.c.bf16 %v5601_v2, %v5598_v53 }
 0xcb9   :  { %v2101_v59 = vpack.c.bf16 %v2098_v43, %v2097_v28  ;;  %v5746_v43 = vld [vmem:[%s6096_s2 + $0x18] sm:$0xff] }
 0xcba   :  { %v2203_v5 = vpack.c.bf16 %v2200_v32, %v2199_v35  ;;  %v6124_v35 = vpack.c.bf16 %v5556_v22, %v5564_v55 }
 0xcbc   :  { %4077 = vmatpush3.bf16.xpose.msra.mxu0 %v5629_v39  ;;  %4095 = vmatpush3.bf16.xpose.msra.mxu1 %v5629_v39 }
 0xcbd   :  { %4078 = vmatprep.subr.bf16.mxu0 %v6104_v13  ;;  %4096 = vmatprep.subr.bf16.mxu1 %v6104_v13 }
 0xcc4   :  { %4079 = vmatpush3.bf16.xpose.msra.mxu0 %v5636_v3  ;;  %4097 = vmatpush3.bf16.xpose.msra.mxu1 %v5636_v3 }
 0xcc5   :  { %4110 = vmatprep.subr.bf16.mxu0 %v6104_v13  ;;  %4128 = vmatprep.subr.bf16.mxu1 %v6104_v13 }
 0xccb   :  { %4081 = vmatmul.mubr.msk.bf16.vlgmr.msra.gmra.mxu0 %vm157_vm2, %v2099_v34  ;;  %4099 = vmatmul.mubr.msk.bf16.vlgmr.msra.gmra.mxu1 %vm157_vm2, %v2201_v9 }
 0xccc   :  { %4111 = vmatpush3.bf16.msra.mxu0 %v2212_v63  ;;  %4129 = vmatpush3.bf16.msra.mxu1 %v2110_v46 }
 0xccd   :  { %4112 = vmatprep.subr.bf16.mxu0 %v6104_v13  ;;  %4130 = vmatprep.subr.bf16.mxu1 %v6104_v13 }
 0xcce   :  { %4084 = vmatprep.mubr.msk.bf16.mxu0 %vm4464_vm0, %v6104_v13  ;;  %4102 = vmatprep.mubr.msk.bf16.mxu1 %vm4464_vm0, %v6104_v13 }
 0xcd0   :  { %4113 = vmatpush3.bf16.msra.mxu0 %v2211_v23  ;;  %4131 = vmatpush3.bf16.msra.mxu1 %v2109_v33 }
 0xcd1   :  { %4114 = vmatprep.subr.bf16.mxu0 %v6104_v13  ;;  %4132 = vmatprep.subr.bf16.mxu1 %v6104_v13 }
 0xcd3   :  { %4085 = vmatmul.mubr.msk.bf16.gmra.mxu0 %vm157_vm2, %v2100_v62  ;;  %4103 = vmatmul.mubr.msk.bf16.gmra.mxu1 %vm157_vm2, %v2202_v27 }
 0xcd4   :  { %4115 = vmatpush3.bf16.msra.mxu0 %v6121_v30  ;;  %4133 = vmatpush3.bf16.msra.mxu1 %v6122_v54  ;;  %v5739_v54 = vld [vmem:[%s6096_s2 + $0x10] sm:$0xff] }
 0xcd5   :  { %4088 = vmatprep.mubr.msk.bf16.mxu0 %vm4464_vm0, %v6104_v13  ;;  %4106 = vmatprep.mubr.msk.bf16.mxu1 %vm4464_vm0, %v6104_v13 }
 0xcd6   :  { %4146 = vmatprep.subr.bf16.mxu0 %v6104_v13  ;;  %4164 = vmatprep.subr.bf16.mxu1 %v6104_v13 }
 0xcdb   :  { %4089 = vmatmul.mubr.msk.bf16.gmra.mxu0 %vm157_vm2, %v2101_v59  ;;  %4107 = vmatmul.mubr.msk.bf16.gmra.mxu1 %vm157_vm2, %v2203_v5 }
 0xcdc   :  { %4116 = vmatprep.mubr.msk.bf16.mxu0 %vm4464_vm0, %v6104_v13  ;;  %4134 = vmatprep.mubr.msk.bf16.mxu1 %vm4464_vm0, %v6104_v13 }
 0xd8b   :  { %v2163_v50 = vpop.f32.mrf.mxu0  ;;  %v2256_v56 = vpop.f32.mrf.mxu1 }
 0xd8c   :  { %v2186_v52 = vmul.f32 %v5713_v20, %v2163_v50  ;;  %v2279_v38 = vmul.f32 %v5713_v20, %v2256_v56 }
 0xd8d   :  { %v4082_v45 = vpop.f32.mrf.mxu0  ;;  %v4100_v34 = vpop.f32.mrf.mxu1 }
 0xd8f   :  { %v2166_v19 = vpop.f32.mrf.mxu0  ;;  %v2259_v9 = vpop.f32.mrf.mxu1 }
 0xd90   :  { %v2187_v63 = vmul.f32 %v5720_v14, %v2166_v19  ;;  %v2280_v46 = vmul.f32 %v5720_v14, %v2259_v9  ;;  %v6125_v19 = vpack.c.bf16 %v5503_v25, %v5509_v31 }
 0xd91   :  { %v4083_v42 = vpop.f32.mrf.mxu0  ;;  %v4101_v49 = vpop.f32.mrf.mxu1 }
 0xd92   :  { %v2192_v11 = vpack.c.bf16 %v2187_v63, %v2186_v52  ;;  %v2285_v37 = vpack.c.bf16 %v2280_v46, %v2279_v38  ;;  %v5769_v38 = vld [vmem:[%s6096_s2 + $0x20] sm:$0xff]  ;;  %v5776_v63 = vld [vmem:[%s6096_s2 + $0x28] sm:$0xff] }
 0xd93   :  { %v2171_v23 = vpop.f32.mrf.mxu0  ;;  %v2264_v33 = vpop.f32.mrf.mxu1 }
 0xd94   :  { %4117 = vmatmul.mubr.msk.bf16.vlgmr.msra.gmra.mxu0 %vm88_vm1, %v2285_v37  ;;  %4135 = vmatmul.mubr.msk.bf16.vlgmr.msra.gmra.mxu1 %vm88_vm1, %v2192_v11  ;;  %v2188_v53 = vmul.f32 %v5739_v54, %v2171_v23  ;;  %v2281_v2 = vmul.f32 %v5739_v54, %v2264_v33  ;;  %v6126_v33 = vpack.c.bf16 %v5490_v57, %v5476_v12 }
 0xd95   :  { %4147 = vmatpush3.bf16.xpose.msra.mxu0 %v5622_v24  ;;  %4165 = vmatpush3.bf16.msra.mxu1 %v6123_v4  ;;  %v4086_v41 = vpop.f32.mrf.mxu0  ;;  %v4104_v27 = vpop.f32.mrf.mxu1  ;;  %v6127_v4 = vpack.c.bf16 %v5544_v47, %v5536_v10  ;;  %v6129_v12 = vpack.c.bf16 %v5494_v61, %v5480_v44  ;;  %v6130_v57 = vpack.c.bf16 %v5548_v36, %v5540_v21 }
 0xd96   :  { %4166 = vmatprep.subr.bf16.mxu1 %v6104_v13  ;;  %4120 = vmatprep.mubr.msk.bf16.mxu0 %vm4464_vm0, %v6104_v13  ;;  %v6131_v10 = vpack.c.bf16 %v5594_v17, %v5586_v1 }
 0xd97   :  { %v2174_v62 = vpop.f32.mrf.mxu0  ;;  %v2267_v30 = vpop.f32.mrf.mxu1  ;;  %4138 = vmatprep.mubr.msk.bf16.mxu1 %vm4464_vm0, %v6104_v13  ;;  %4148 = vmatprep.subr.bf16.mxu0 %v6104_v13 }
 0xd98   :  { %v2189_v32 = vmul.f32 %v5746_v43, %v2174_v62  ;;  %v2282_v28 = vmul.f32 %v5746_v43, %v2267_v30 }
 0xd99   :  { %4167 = vmatpush3.bf16.msra.mxu1 %v6124_v35  ;;  %v4087_v59 = vpop.f32.mrf.mxu0  ;;  %v4105_v5 = vpop.f32.mrf.mxu1 }
 0xd9a   :  { %v2193_v50 = vpack.c.bf16 %v2189_v32, %v2188_v53  ;;  %v2286_v56 = vpack.c.bf16 %v2282_v28, %v2281_v2  ;;  %4168 = vmatprep.subr.bf16.mxu1 %v6104_v13 }
 0xd9b   :  { %v2179_v45 = vpop.f32.mrf.mxu0  ;;  %v2272_v34 = vpop.f32.mrf.mxu1 }
 0xd9c   :  { %4121 = vmatmul.mubr.msk.bf16.gmra.mxu0 %vm88_vm1, %v2286_v56  ;;  %4139 = vmatmul.mubr.msk.bf16.gmra.mxu1 %vm88_vm1, %v2193_v50  ;;  %v2190_v25 = vmul.f32 %v5769_v38, %v2179_v45  ;;  %v2283_v31 = vmul.f32 %v5769_v38, %v2272_v34 }
 0xd9d   :  { %4149 = vmatpush3.bf16.xpose.msra.mxu0 %v5629_v39  ;;  %4169 = vmatpush3.bf16.msra.mxu1 %v6125_v19  ;;  %v4090_v22 = vpop.f32.mrf.mxu0  ;;  %v4108_v55 = vpop.f32.mrf.mxu1 }
 0xd9e   :  { %4124 = vmatprep.mubr.msk.bf16.mxu0 %vm4464_vm0, %v6104_v13  ;;  %4142 = vmatprep.mubr.msk.bf16.mxu1 %vm4464_vm0, %v6104_v13 }
 0xd9f   :  { %v2182_v9 = vpop.f32.mrf.mxu0  ;;  %v2275_v52 = vpop.f32.mrf.mxu1  ;;  %4150 = vmatprep.subr.bf16.mxu0 %v6104_v13  ;;  %4200 = vmatprep.subr.bf16.mxu1 %v6104_v13 }
 0xda0   :  { %v2191_v46 = vmul.f32 %v5776_v63, %v2182_v9  ;;  %v2284_v42 = vmul.f32 %v5776_v63, %v2275_v52 }
 0xda1   :  { %v4091_v49 = vpop.f32.mrf.mxu0  ;;  %v4109_v11 = vpop.f32.mrf.mxu1 }
 0xda2   :  { %v2194_v37 = vpack.c.bf16 %v2191_v46, %v2190_v25  ;;  %v2287_v23 = vpack.c.bf16 %v2284_v42, %v2283_v31 }
 0xda4   :  { %4125 = vmatmul.mubr.msk.bf16.gmra.mxu0 %vm88_vm1, %v2287_v23  ;;  %4143 = vmatmul.mubr.msk.bf16.gmra.mxu1 %vm88_vm1, %v2194_v37 }
 0xda5   :  { %4151 = vmatpush3.bf16.xpose.msra.mxu0 %v5636_v3  ;;  %4152 = vmatprep.mubr.msk.bf16.mxu0 %vm4464_vm0, %v6104_v13 }
 0xda6   :  { %4182 = vmatprep.subr.bf16.mxu0 %v6104_v13  ;;  %4170 = vmatprep.mubr.msk.bf16.mxu1 %vm4464_vm0, %v6104_v13 }
 0xdac   :  { %4153 = vmatmul.mubr.msk.bf16.vlgmr.msra.gmra.mxu0 %vm157_vm2, %v6126_v33 }
 0xdad   :  { %4183 = vmatpush3.bf16.xpose.msra.mxu0 %v5622_v24  ;;  %4156 = vmatprep.mubr.msk.bf16.mxu0 %vm4464_vm0, %v6104_v13  ;;  %v6128_v24 = vpack.c.bf16 %v5590_v48, %v5582_v8 }
 0xdae   :  { %4184 = vmatprep.subr.bf16.mxu0 %v6104_v13 }
 0xdb4   :  { %4157 = vmatmul.mubr.msk.bf16.gmra.mxu0 %vm157_vm2, %v6127_v4 }
 0xdb5   :  { %4185 = vmatpush3.bf16.xpose.msra.mxu0 %v5629_v39  ;;  %4160 = vmatprep.mubr.msk.bf16.mxu0 %vm4464_vm0, %v6104_v13 }
 0xdb6   :  { %4186 = vmatprep.subr.bf16.mxu0 %v6104_v13 }
 0xdbc   :  { %4161 = vmatmul.mubr.msk.bf16.gmra.mxu0 %vm157_vm2, %v6128_v24 }
 0xdbd   :  { %4187 = vmatpush3.bf16.xpose.msra.mxu0 %v5636_v3  ;;  %4188 = vmatprep.mubr.msk.bf16.mxu0 %vm4464_vm0, %v6104_v13 }
 0xdbe   :  { %4218 = vmatprep.subr.bf16.mxu0 %v6104_v13 }
 0xdc4   :  { %4189 = vmatmul.mubr.msk.bf16.vlgmr.msra.gmra.mxu0 %vm157_vm2, %v6129_v12  ;;  %v6132_v12 = vpack.c.bf16 %v5560_v29, %v5568_v51 }
 0xdc5   :  { %4192 = vmatprep.mubr.msk.bf16.mxu0 %vm4464_vm0, %v6104_v13 }
 0xdcc   :  { %4193 = vmatmul.mubr.msk.bf16.gmra.mxu0 %vm157_vm2, %v6130_v57 }
 0xdcd   :  { %4196 = vmatprep.mubr.msk.bf16.mxu0 %vm4464_vm0, %v6104_v13 }
 0xdd4   :  { %4197 = vmatmul.mubr.msk.bf16.gmra.mxu0 %vm157_vm2, %v6131_v10 }
 0xdd5   :  { %4222 = vmatprep.mubr.msk.bf16.mxu0 %vm4464_vm0, %v6104_v13 }
 0xe54   :  { %v2331_v44 = vpop.f32.mrf.mxu0  ;;  %v2397_v61 = vpop.f32.mrf.mxu1 }
 0xe55   :  { %v5830_v47 = vadd.f32 %v2397_v61, %v2331_v44 }
 0xe56   :  { %v4118_v8 = vpop.f32.mrf.mxu0  ;;  %v4136_v48 = vpop.f32.mrf.mxu1 }
 0xe58   :  { %v2334_v21 = vpop.f32.mrf.mxu0  ;;  %v2400_v36 = vpop.f32.mrf.mxu1 }
 0xe59   :  { %v5832_v39 = vadd.f32 %v2400_v36, %v2334_v21 }
 0xe5a   :  { %v4119_v3 = vpop.f32.mrf.mxu0  ;;  %v4137_v41 = vpop.f32.mrf.mxu1 }
 0xe5c   :  { %v2339_v27 = vpop.f32.mrf.mxu0  ;;  %v2405_v62 = vpop.f32.mrf.mxu1 }
 0xe5d   :  { %v5834_v1 = vadd.f32 %v2405_v62, %v2339_v27 }
 0xe5e   :  { %v4122_v17 = vpop.f32.mrf.mxu0  ;;  %v4140_v30 = vpop.f32.mrf.mxu1 }
 0xe60   :  { %v2342_v53 = vpop.f32.mrf.mxu0  ;;  %v2408_v2 = vpop.f32.mrf.mxu1 }
 0xe61   :  { %v5836_v32 = vadd.f32 %v2408_v2, %v2342_v53 }
 0xe62   :  { %v4123_v28 = vpop.f32.mrf.mxu0  ;;  %v4141_v35 = vpop.f32.mrf.mxu1 }
 0xe64   :  { %v2347_v59 = vpop.f32.mrf.mxu0  ;;  %v2413_v5 = vpop.f32.mrf.mxu1 }
 0xe65   :  { %v5838_v50 = vadd.f32 %v2413_v5, %v2347_v59 }
 0xe66   :  { %v4126_v56 = vpop.f32.mrf.mxu0  ;;  %v4144_v45 = vpop.f32.mrf.mxu1 }
 0xe68   :  { %v2350_v34 = vpop.f32.mrf.mxu0  ;;  %v2416_v19 = vpop.f32.mrf.mxu1 }
 0xe69   :  { %v5840_v22 = vadd.f32 %v2416_v19, %v2350_v34 }
 0xe6a   :  { %v4127_v55 = vpop.f32.mrf.mxu0  ;;  %v4145_v9 = vpop.f32.mrf.mxu1 }
 0xe6c   :  { %v2481_v52 = vpop.f32.mrf.mxu0 }
 0xe6d   :  { %v2504_v46 = vmul.f32 %v5713_v20, %v2481_v52 }
 0xe6e   :  { %v4154_v25 = vpop.f32.mrf.mxu0 }
 0xe70   :  { %v2484_v31 = vpop.f32.mrf.mxu0 }
 0xe71   :  { %v2505_v42 = vmul.f32 %v5720_v14, %v2484_v31 }
 0xe72   :  { %v4155_v49 = vpop.f32.mrf.mxu0 }
 0xe73   :  { %v2510_v11 = vpack.c.bf16 %v2505_v42, %v2504_v46 }
 0xe74   :  { %v2489_v37 = vpop.f32.mrf.mxu0 }
 0xe75   :  { %4171 = vmatmul.mubr.msk.bf16.vlgmr.msra.gmra.mxu1 %vm88_vm1, %v2510_v11  ;;  %v2506_v4 = vmul.f32 %v5739_v54, %v2489_v37 }
 0xe76   :  { %4201 = vmatpush3.bf16.msra.mxu1 %v2602_v15  ;;  %v4158_v23 = vpop.f32.mrf.mxu0  ;;  %4174 = vmatprep.mubr.msk.bf16.mxu1 %vm4464_vm0, %v6104_v13 }
 0xe77   :  { %4202 = vmatprep.subr.bf16.mxu1 %v6104_v13 }
 0xe78   :  { %v2492_v33 = vpop.f32.mrf.mxu0 }
 0xe79   :  { %v2507_v24 = vmul.f32 %v5746_v43, %v2492_v33 }
 0xe7a   :  { %4203 = vmatpush3.bf16.msra.mxu1 %v6132_v12  ;;  %v4159_v57 = vpop.f32.mrf.mxu0 }
 0xe7b   :  { %v2511_v10 = vpack.c.bf16 %v2507_v24, %v2506_v4  ;;  %4204 = vmatprep.subr.bf16.mxu1 %v6104_v13 }
 0xe7c   :  { %v2497_v0 = vpop.f32.mrf.mxu0 }
 0xe7d   :  { %4175 = vmatmul.mubr.msk.bf16.gmra.mxu1 %vm88_vm1, %v2511_v10  ;;  %v2508_v29 = vmul.f32 %v5769_v38, %v2497_v0 }
 0xe7e   :  { %4205 = vmatpush3.bf16.msra.mxu1 %v6133_v58  ;;  %v4162_v15 = vpop.f32.mrf.mxu0  ;;  %4178 = vmatprep.mubr.msk.bf16.mxu1 %vm4464_vm0, %v6104_v13 }
 0xe7f   :  { %4234 = vmatprep.subr.bf16.mxu1 %v6104_v13 }
 0xe80   :  { %v2500_v44 = vpop.f32.mrf.mxu0 }
 0xe81   :  { %v2509_v51 = vmul.f32 %v5776_v63, %v2500_v44 }
 0xe82   :  { %v4163_v61 = vpop.f32.mrf.mxu0 }
 0xe83   :  { %v2512_v8 = vpack.c.bf16 %v2509_v51, %v2508_v29 }
 0xe84   :  { %v2646_v48 = vpop.f32.mrf.mxu0 }
 0xe85   :  { %4179 = vmatmul.mubr.msk.bf16.gmra.mxu1 %vm88_vm1, %v2512_v8  ;;  %v2669_v18 = vmul.f32 %v5713_v20, %v2646_v48 }
 0xe86   :  { %v4190_v21 = vpop.f32.mrf.mxu0  ;;  %4206 = vmatprep.mubr.msk.bf16.mxu1 %vm4464_vm0, %v6104_v13 }
 0xe88   :  { %v2649_v6 = vpop.f32.mrf.mxu0 }
 0xe89   :  { %v2670_v36 = vmul.f32 %v5720_v14, %v2649_v6 }
 0xe8a   :  { %v4191_v3 = vpop.f32.mrf.mxu0 }
 0xe8b   :  { %v2675_v41 = vpack.c.bf16 %v2670_v36, %v2669_v18 }
 0xe8c   :  { %v2654_v27 = vpop.f32.mrf.mxu0 }
 0xe8d   :  { %4207 = vmatmul.mubr.msk.bf16.vlgmr.msra.gmra.mxu1 %vm88_vm1, %v2675_v41  ;;  %v2671_v30 = vmul.f32 %v5739_v54, %v2654_v27 }
 0xe8e   :  { %v4194_v62 = vpop.f32.mrf.mxu0  ;;  %4210 = vmatprep.mubr.msk.bf16.mxu1 %vm4464_vm0, %v6104_v13 }
 0xe90   :  { %v2657_v17 = vpop.f32.mrf.mxu0 }
 0xe91   :  { %v2672_v53 = vmul.f32 %v5746_v43, %v2657_v17 }
 0xe92   :  { %v4195_v2 = vpop.f32.mrf.mxu0 }
 0xe93   :  { %v2676_v28 = vpack.c.bf16 %v2672_v53, %v2671_v30 }
 0xe94   :  { %v2662_v35 = vpop.f32.mrf.mxu0 }
 0xe95   :  { %4211 = vmatmul.mubr.msk.bf16.gmra.mxu1 %vm88_vm1, %v2676_v28  ;;  %v2673_v59 = vmul.f32 %v5769_v38, %v2662_v35 }
 0xe96   :  { %v4198_v20 = vpop.f32.mrf.mxu0  ;;  %4214 = vmatprep.mubr.msk.bf16.mxu1 %vm4464_vm0, %v6104_v13 }
 0xe98   :  { %v2665_v14 = vpop.f32.mrf.mxu0 }
 0xe99   :  { %v2674_v5 = vmul.f32 %v5776_v63, %v2665_v14 }
 0xe9a   :  { %v4199_v56 = vpop.f32.mrf.mxu0 }
 0xe9b   :  { %v2677_v45 = vpack.c.bf16 %v2674_v5, %v2673_v59 }
 0xe9d   :  { %4215 = vmatmul.mubr.msk.bf16.gmra.mxu1 %vm88_vm1, %v2677_v45 }
 0xe9e   :  { %4238 = vmatprep.mubr.msk.bf16.mxu1 %vm4464_vm0, %v6104_v13 }
 0xf35   :  { %v2556_v54 = vpop.f32.mrf.mxu1 }
 0xf36   :  { %v2579_v63 = vadd.f32 %v2556_v54, %v5830_v47 }
 0xf37   :  { %v4172_v43 = vpop.f32.mrf.mxu1 }
 0xf39   :  { %v2559_v34 = vpop.f32.mrf.mxu1 }
 0xf3a   :  { %v2580_v23 = vadd.f32 %v2559_v34, %v5832_v39 }
 0xf3b   :  { %v4173_v19 = vpop.f32.mrf.mxu1 }
 0xf3d   :  { %v2564_v55 = vpop.f32.mrf.mxu1 }
 0xf3e   :  { %v2581_v57 = vadd.f32 %v2564_v55, %v5834_v1 }
 0xf3f   :  { %v4176_v9 = vpop.f32.mrf.mxu1 }
 0xf41   :  { %v2567_v52 = vpop.f32.mrf.mxu1 }
 0xf42   :  { %v2582_v47 = vadd.f32 %v2567_v52, %v5836_v32 }
 0xf43   :  { %v4177_v25 = vpop.f32.mrf.mxu1 }
 0xf45   :  { %v2572_v31 = vpop.f32.mrf.mxu1 }
 0xf46   :  { %v2583_v61 = vadd.f32 %v2572_v31, %v5838_v50 }
 0xf47   :  { %v4180_v46 = vpop.f32.mrf.mxu1 }
 0xf49   :  { %v2575_v38 = vpop.f32.mrf.mxu1 }
 0xf4a   :  { %v2584_v6 = vadd.f32 %v2575_v38, %v5840_v22 }
 0xf4b   :  { %v4181_v42 = vpop.f32.mrf.mxu1 }
 0xf4d   :  { %v2721_v49 = vpop.f32.mrf.mxu1 }
 0xf4e   :  { %v2744_v11 = vadd.f32 %v2721_v49, %v2579_v63 }
 0xf4f   :  { %v4208_v37 = vpop.f32.mrf.mxu1 }
 0xf50   :  { %v2752_v33 = vsel %vm157_vm2, %v2744_v11, 0.0  ;;  %v4322_v37 = vld [vmem:[%s6092_s3 + $0xd8] sm:$0xff]  }
 0xf51   :  { %2753 = vadd.xlane.f32.xlu0 %v2752_v33  ;;  %v2724_v4 = vpop.f32.mrf.mxu1 }
 0xf52   :  { %v2745_v24 = vadd.f32 %v2724_v4, %v2580_v23 }
 0xf53   :  { %v4209_v12 = vpop.f32.mrf.mxu1 }
 0xf54   :  { %v2755_v10 = vsel %vm157_vm2, %v2745_v24, 0.0 }
 0xf55   :  { %2756 = vadd.xlane.f32.xlu1 %v2755_v10  ;;  %v2729_v0 = vpop.f32.mrf.mxu1 }
 0xf56   :  { %v2746_v58 = vadd.f32 %v2729_v0, %v2581_v57 }
 0xf57   :  { %v4212_v15 = vpop.f32.mrf.mxu1 }
 0xf58   :  { %v2758_v44 = vsel %vm157_vm2, %v2746_v58, 0.0 }
 0xf59   :  { %2759 = vadd.xlane.f32.xlu0 %v2758_v44  ;;  %v2732_v39 = vpop.f32.mrf.mxu1 }
 0xf5a   :  { %v2747_v29 = vadd.f32 %v2732_v39, %v2582_v47 }
 0xf5b   :  { %v4213_v51 = vpop.f32.mrf.mxu1 }
 0xf5c   :  { %v2761_v8 = vsel %vm157_vm2, %v2747_v29, 0.0 }
 0xf5d   :  { %2762 = vadd.xlane.f32.xlu1 %v2761_v8  ;;  %v2737_v1 = vpop.f32.mrf.mxu1 }
 0xf5e   :  { %v2748_v48 = vadd.f32 %v2737_v1, %v2583_v61  ;;  %v3548_v61 = vld [vmem:[%s6095_s4 + $0x11] ss:$0 sm:$0xff] }
 0xf5f   :  { %v4216_v21 = vpop.f32.mrf.mxu1 }
 0xf60   :  { %v2764_v18 = vsel %vm157_vm2, %v2748_v48, 0.0 }
 0xf61   :  { %2765 = vadd.xlane.f32.xlu0 %v2764_v18  ;;  %v2740_v32 = vpop.f32.mrf.mxu1 }
 0xf62   :  { %v2749_v36 = vadd.f32 %v2740_v32, %v2584_v6 }
 0xf63   :  { %v4217_v3 = vpop.f32.mrf.mxu1 }
 0xf64   :  { %v2767_v41 = vsel %vm157_vm2, %v2749_v36, 0.0 }
 0xf65   :  { %2768 = vadd.xlane.f32.xlu1 %v2767_v41 }
 0xfda   :  { %v2754_v27 = vpop.xlane.xlu0 %2753 }
 0xfdb   :  { %v2770_v62 = vmul.f32 0.03125, %v2754_v27 }
 0xfdd   :  { %v2776_v50 = vsub.f32 %v2744_v11, %v2770_v62  ;;  %v4321_v11 = vld [vmem:[%s6092_s3 + $0xe0] sm:$0xff]  }
 0xfde   :  { %v2757_v17 = vpop.xlane.xlu1 %2756  ;;  %4219 = vmatpush3.bf16.msra.mxu0 %v4321_v11 }
 0xfdf   :  { %v2771_v30 = vmul.f32 0.03125, %v2757_v17  ;;  %v2782_v53 = vmul.f32 %v2776_v50, %v2776_v50  ;;  %4220 = vmatprep.subr.bf16.mxu0 %v6104_v13 }
 0xfe1   :  { %v5896_v2 = vsub.f32 %v2745_v24, %v2771_v30  ;;  %v2788_v28 = vsel %vm157_vm2, %v2782_v53, 0.0 }
 0xfe2   :  { %v2760_v22 = vpop.xlane.xlu0 %2759  ;;  %2789 = vadd.xlane.f32.xlu0 %v2788_v28  ;;  %4221 = vmatpush3.bf16.msra.mxu0 %v4322_v37 }
 0xfe3   :  { %v2772_v35 = vmul.f32 0.03125, %v2760_v22  ;;  %v2783_v20 = vmul.f32 %v5896_v2, %v5896_v2  ;;  %4250 = vmatprep.subr.bf16.mxu0 %v6104_v13 }
 0xfe5   :  { %v5901_v14 = vsub.f32 %v2746_v58, %v2772_v35  ;;  %v2791_v59 = vsel %vm157_vm2, %v2783_v20, 0.0 }
 0xfe6   :  { %v2763_v5 = vpop.xlane.xlu1 %2762  ;;  %2792 = vadd.xlane.f32.xlu1 %v2791_v59 }
 0xfe7   :  { %v2773_v56 = vmul.f32 0.03125, %v2763_v5  ;;  %v2784_v45 = vmul.f32 %v5901_v14, %v5901_v14 }
 0xfe9   :  { %v5906_v54 = vsub.f32 %v2747_v29, %v2773_v56  ;;  %v2794_v43 = vsel %vm157_vm2, %v2784_v45, 0.0 }
 0xfea   :  { %2795 = vadd.xlane.f32.xlu0 %v2794_v43  ;;  %v2766_v34 = vpop.xlane.xlu0 %2765 }
 0xfeb   :  { %v2774_v19 = vmul.f32 0.03125, %v2766_v34  ;;  %v2785_v55 = vmul.f32 %v5906_v54, %v5906_v54 }
 0xfed   :  { %v5911_v9 = vsub.f32 %v2748_v48, %v2774_v19  ;;  %v2797_v52 = vsel %vm157_vm2, %v2785_v55, 0.0  ;;  %v3549_v48 = vld [vmem:[%s6095_s4 + $0x12] ss:$0 sm:$0xff] }
 0xfee   :  { %2798 = vadd.xlane.f32.xlu1 %v2797_v52  ;;  %v2769_v25 = vpop.xlane.xlu1 %2768 }
 0xfef   :  { %v2775_v31 = vmul.f32 0.03125, %v2769_v25  ;;  %v2786_v46 = vmul.f32 %v5911_v9, %v5911_v9 }
 0xff1   :  { %v5916_v38 = vsub.f32 %v2749_v36, %v2775_v31  ;;  %v2800_v42 = vsel %vm157_vm2, %v2786_v46, 0.0 }
 0xff2   :  { %2801 = vadd.xlane.f32.xlu0 %v2800_v42 }
 0xff3   :  { %v2787_v63 = vmul.f32 %v5916_v38, %v5916_v38 }
 0xff5   :  { %v2803_v49 = vsel %vm157_vm2, %v2787_v63, 0.0 }
 0xff6   :  { %2804 = vadd.xlane.f32.xlu1 %v2803_v49 }
0x106b   :  { %v2790_v23 = vpop.xlane.xlu0 %2789 }
0x106c   :  { %v2806_v33 = vmul.f32 0.03125, %v2790_v23 }
0x106e   :  { %v2812_v4 = vadd.f32 1e-05, %v2806_v33 }
0x106f   :  { %v2793_v24 = vpop.xlane.xlu1 %2792 }
0x1070   :  { %4407 = vrsqrt.f32 %v2812_v4  ;;  %v2807_v12 = vmul.f32 0.03125, %v2793_v24 }
0x1072   :  { %v2813_v57 = vadd.f32 1e-05, %v2807_v12 }
0x1073   :  { %v2796_v10 = vpop.xlane.xlu0 %2795 }
0x1074   :  { %4409 = vrsqrt.f32 %v2813_v57  ;;  %v2808_v0 = vmul.f32 0.03125, %v2796_v10 }
0x1076   :  { %v2814_v58 = vadd.f32 1e-05, %v2808_v0 }
0x1077   :  { %v2799_v15 = vpop.xlane.xlu1 %2798 }
0x1078   :  { %4411 = vrsqrt.f32 %v2814_v58  ;;  %v2809_v47 = vmul.f32 0.03125, %v2799_v15 }
0x107a   :  { %v2815_v44 = vadd.f32 1e-05, %v2809_v47 }
0x107b   :  { %v2802_v39 = vpop.xlane.xlu0 %2801 }
0x107c   :  { %4413 = vrsqrt.f32 %v2815_v44  ;;  %v2810_v29 = vmul.f32 0.03125, %v2802_v39 }
0x107d   :  { %v4408_v51 = vpop.eup %4407 }
0x107e   :  { %v2824_v8 = vmul.f32 %v4408_v51, %v2776_v50  ;;  %v2816_v1 = vadd.f32 1e-05, %v2810_v29 }
0x107f   :  { %v2805_v21 = vpop.xlane.xlu1 %2804 }
0x1080   :  { %v2834_v6 = vmul.f32 %v3548_v61, %v2824_v8  ;;  %4415 = vrsqrt.f32 %v2816_v1  ;;  %v2811_v18 = vmul.f32 0.03125, %v2805_v21  ;;  %v3550_v21 = vld [vmem:[%s6095_s4 + $0x13] ss:$0 sm:$0xff] }
0x1081   :  { %v4410_v32 = vpop.eup %4409 }
0x1082   :  { %v2844_v36 = vadd.f32 %v3549_v48, %v2834_v6  ;;  %v2825_v3 = vmul.f32 %v4410_v32, %v5896_v2  ;;  %v2817_v41 = vadd.f32 1e-05, %v2811_v18 }
0x1084   :  { %v2856_v27 = vmul.f32 0.70710677, %v2844_v36  ;;  %v2835_v62 = vmul.f32 %v3548_v61, %v2825_v3  ;;  %4417 = vrsqrt.f32 %v2817_v41  ;;  %v2850_v63 = vmul.f32 0.5, %v2844_v36 }
0x1085   :  { %v4412_v17 = vpop.eup %4411 }
0x1086   :  { %4419 = verf.f32 %v2856_v27  ;;  %v2845_v50 = vadd.f32 %v3549_v48, %v2835_v62  ;;  %v2826_v30 = vmul.f32 %v4412_v17, %v5901_v14 }
0x1088   :  { %v2857_v53 = vmul.f32 0.70710677, %v2845_v50  ;;  %v2836_v28 = vmul.f32 %v3548_v61, %v2826_v30  ;;  %v2851_v49 = vmul.f32 0.5, %v2845_v50 }
0x1089   :  { %v4414_v22 = vpop.eup %4413 }
0x108a   :  { %4421 = verf.f32 %v2857_v53  ;;  %v2827_v35 = vmul.f32 %v4414_v22, %v5906_v54  ;;  %v2846_v20 = vadd.f32 %v3549_v48, %v2836_v28 }
0x108c   :  { %v2837_v59 = vmul.f32 %v3548_v61, %v2827_v35  ;;  %v2858_v5 = vmul.f32 0.70710677, %v2846_v20  ;;  %v2852_v12 = vmul.f32 0.5, %v2846_v20 }
0x108d   :  { %v4416_v56 = vpop.eup %4415 }
0x108e   :  { %v2828_v2 = vmul.f32 %v4416_v56, %v5911_v9  ;;  %v2847_v45 = vadd.f32 %v3549_v48, %v2837_v59  ;;  %4423 = verf.f32 %v2858_v5 }
0x1090   :  { %v2838_v43 = vmul.f32 %v3548_v61, %v2828_v2  ;;  %v2859_v34 = vmul.f32 0.70710677, %v2847_v45  ;;  %v2853_v57 = vmul.f32 0.5, %v2847_v45 }
0x1091   :  { %v4418_v19 = vpop.eup %4417 }
0x1092   :  { %v2829_v55 = vmul.f32 %v4418_v19, %v5916_v38  ;;  %4425 = verf.f32 %v2859_v34  ;;  %v2848_v14 = vadd.f32 %v3549_v48, %v2838_v43 }
0x1093   :  { %v4420_v52 = vpop.eup %4419 }
0x1094   :  { %v2839_v25 = vmul.f32 %v3548_v61, %v2829_v55  ;;  %v2860_v31 = vmul.f32 0.70710677, %v2848_v14  ;;  %v2868_v46 = vadd.f32 1.0, %v4420_v52  ;;  %v2854_v29 = vmul.f32 0.5, %v2848_v14  ;;  %v6134_v14 = vld [vmem:[#allocation3_spill] sm:$0xff] }
0x1096   :  { %v2849_v54 = vadd.f32 %v3549_v48, %v2839_v25  ;;  %4427 = verf.f32 %v2860_v31  ;;  %v2874_v37 = vmul.f32 %v2868_v46, %v2850_v63 }
0x1097   :  { %v4422_v42 = vpop.eup %4421 }
0x1098   :  { %v2869_v11 = vadd.f32 1.0, %v4422_v42  ;;  %v2861_v9 = vmul.f32 0.70710677, %v2849_v54  ;;  %v2855_v51 = vmul.f32 0.5, %v2849_v54 }
0x109a   :  { %v2875_v23 = vmul.f32 %v2869_v11, %v2851_v49  ;;  %4429 = verf.f32 %v2861_v9 }
0x109b   :  { %v4424_v33 = vpop.eup %4423 }
0x109c   :  { %v2880_v4 = vpack.c.bf16 %v2875_v23, %v2874_v37  ;;  %v2870_v38 = vadd.f32 1.0, %v4424_v33 }
0x109e   :  { %4223 = vmatmul.mubr.msk.bf16.vlgmr.msra.gmra.mxu0 %vm157_vm2, %v2880_v4  ;;  %v2876_v0 = vmul.f32 %v2870_v38, %v2852_v12 }
0x109f   :  { %v4426_v24 = vpop.eup %4425  ;;  %4226 = vmatprep.mubr.msk.bf16.mxu0 %vm4464_vm0, %v6104_v13 }
0x10a0   :  { %v2871_v10 = vadd.f32 1.0, %v4426_v24 }
0x10a2   :  { %v2877_v58 = vmul.f32 %v2871_v10, %v2853_v57 }
0x10a3   :  { %v4428_v15 = vpop.eup %4427 }
0x10a4   :  { %v2881_v47 = vpack.c.bf16 %v2877_v58, %v2876_v0  ;;  %v2872_v44 = vadd.f32 1.0, %v4428_v15 }
0x10a6   :  { %4227 = vmatmul.mubr.msk.bf16.gmra.mxu0 %vm157_vm2, %v2881_v47  ;;  %v2878_v8 = vmul.f32 %v2872_v44, %v2854_v29 }
0x10a7   :  { %v4430_v39 = vpop.eup %4429  ;;  %4230 = vmatprep.mubr.msk.bf16.mxu0 %vm4464_vm0, %v6104_v13 }
0x10a8   :  { %v2873_v61 = vadd.f32 1.0, %v4430_v39 }
0x10aa   :  { %v2879_v1 = vmul.f32 %v2873_v61, %v2855_v51 }
0x10ac   :  { %v2882_v48 = vpack.c.bf16 %v2879_v1, %v2878_v8 }
0x10ae   :  { %4231 = vmatmul.mubr.msk.bf16.gmra.mxu0 %vm157_vm2, %v2882_v48  ;;  %v4323_v48 = vld [vmem:[%s6092_s3 + $0xf0] sm:$0xff]  }
0x10af   :  { %4266 = vmatprep.mubr.msk.bf16.mxu0 %vm4464_vm0, %v6104_v13  ;;  %4235 = vmatpush3.bf16.msra.mxu1 %v4323_v48 }
0x10b0   :  { %4236 = vmatprep.subr.bf16.mxu1 %v6104_v13 }
0x115e   :  { %v2947_v6 = vpop.f32.mrf.mxu0 }
0x115f   :  { %v2948_v18 = vadd.f32 %v3550_v21, %v2947_v6  ;;  %v4325_v6 = vld [vmem:[%s6092_s3 + $0x130] sm:$0xff]  }
0x1160   :  { %v4224_v32 = vpop.f32.mrf.mxu0  ;;  %4251 = vmatpush3.bf16.msra.mxu0 %v4325_v6 }
0x1161   :  { %v2970_v36 = vadd.f32 %v2948_v18, %v5336_v40  ;;  %4252 = vmatprep.subr.bf16.mxu0 %v6104_v13 }
0x1162   :  { %v2950_v3 = vpop.f32.mrf.mxu0 }
0x1163   :  { %v2951_v41 = vadd.f32 %v3550_v21, %v2950_v3  ;;  %v2978_v27 = vsel %vm157_vm2, %v2970_v36, 0.0 }
0x1164   :  { %2979 = vadd.xlane.f32.xlu0 %v2978_v27  ;;  %v4225_v62 = vpop.f32.mrf.mxu0 }
0x1165   :  { %v2971_v17 = vadd.f32 %v2951_v41, %v5341_v26 }
0x1166   :  { %v2955_v50 = vpop.f32.mrf.mxu0 }
0x1167   :  { %v2956_v30 = vadd.f32 %v3550_v21, %v2955_v50  ;;  %v2981_v53 = vsel %vm157_vm2, %v2971_v17, 0.0 }
0x1168   :  { %2982 = vadd.xlane.f32.xlu1 %v2981_v53  ;;  %v4228_v28 = vpop.f32.mrf.mxu0 }
0x1169   :  { %v5958_v22 = vadd.f32 %v2956_v30, %v5346_v60 }
0x116a   :  { %v2958_v35 = vpop.f32.mrf.mxu0 }
0x116b   :  { %v2959_v20 = vadd.f32 %v3550_v21, %v2958_v35  ;;  %v2984_v40 = vsel %vm157_vm2, %v5958_v22, 0.0 }
0x116c   :  { %2985 = vadd.xlane.f32.xlu0 %v2984_v40  ;;  %v4229_v59 = vpop.f32.mrf.mxu0 }
0x116d   :  { %v2973_v5 = vadd.f32 %v2959_v20, %v5351_v7 }
0x116e   :  { %v2963_v56 = vpop.f32.mrf.mxu0 }
0x116f   :  { %v2964_v26 = vadd.f32 %v3550_v21, %v2963_v56  ;;  %v2987_v2 = vsel %vm157_vm2, %v2973_v5, 0.0  ;;  %v3556_v56 = vld [vmem:[%s6095_s4 + $0x14] ss:$0 sm:$0xff] }
0x1170   :  { %2988 = vadd.xlane.f32.xlu1 %v2987_v2  ;;  %v4232_v45 = vpop.f32.mrf.mxu0 }
0x1171   :  { %v2974_v43 = vadd.f32 %v2964_v26, %v5356_v16 }
0x1172   :  { %v2966_v34 = vpop.f32.mrf.mxu0 }
0x1173   :  { %v2967_v60 = vadd.f32 %v3550_v21, %v2966_v34  ;;  %v2990_v19 = vsel %vm157_vm2, %v2974_v43, 0.0  ;;  %v4324_v21 = vld [vmem:[%s6092_s3 + $0xe8] sm:$0xff]  }
0x1174   :  { %2991 = vadd.xlane.f32.xlu0 %v2990_v19  ;;  %v4233_v55 = vpop.f32.mrf.mxu0  ;;  %4237 = vmatpush3.bf16.msra.mxu1 %v4324_v21  ;;  %v3557_v19 = vld [vmem:[%s6095_s4 + $0x15] ss:$0 sm:$0xff] }
0x1175   :  { %v5967_v52 = vadd.f32 %v2967_v60, %v6134_v14  ;;  %4278 = vmatprep.subr.bf16.mxu1 %v6104_v13 }
0x1177   :  { %v2993_v7 = vsel %vm157_vm2, %v5967_v52, 0.0 }
0x1178   :  { %2994 = vadd.xlane.f32.xlu1 %v2993_v7 }
0x11ed   :  { %v2980_v25 = vpop.xlane.xlu0 %2979 }
0x11ee   :  { %v2996_v31 = vmul.f32 0.03125, %v2980_v25 }
0x11f0   :  { %v3002_v46 = vsub.f32 %v2970_v36, %v2996_v31 }
0x11f1   :  { %v2983_v54 = vpop.xlane.xlu1 %2982 }
0x11f2   :  { %v2997_v42 = vmul.f32 0.03125, %v2983_v54  ;;  %v3008_v63 = vmul.f32 %v3002_v46, %v3002_v46 }
0x11f4   :  { %v5971_v16 = vsub.f32 %v2971_v17, %v2997_v42  ;;  %v3014_v49 = vsel %vm157_vm2, %v3008_v63, 0.0 }
0x11f5   :  { %v2986_v11 = vpop.xlane.xlu0 %2985  ;;  %3015 = vadd.xlane.f32.xlu0 %v3014_v49 }
0x11f6   :  { %v2998_v9 = vmul.f32 0.03125, %v2986_v11  ;;  %v3009_v37 = vmul.f32 %v5971_v16, %v5971_v16 }
0x11f8   :  { %v5977_v23 = vsub.f32 %v5958_v22, %v2998_v9  ;;  %v3017_v33 = vsel %vm157_vm2, %v3009_v37, 0.0 }
0x11f9   :  { %v2989_v4 = vpop.xlane.xlu1 %2988  ;;  %3018 = vadd.xlane.f32.xlu1 %v3017_v33 }
0x11fa   :  { %v2999_v38 = vmul.f32 0.03125, %v2989_v4  ;;  %v3010_v24 = vmul.f32 %v5977_v23, %v5977_v23 }
0x11fc   :  { %v5982_v12 = vsub.f32 %v2973_v5, %v2999_v38  ;;  %v3020_v57 = vsel %vm157_vm2, %v3010_v24, 0.0 }
0x11fd   :  { %3021 = vadd.xlane.f32.xlu0 %v3020_v57  ;;  %v2992_v10 = vpop.xlane.xlu0 %2991 }
0x11fe   :  { %v3000_v0 = vmul.f32 0.03125, %v2992_v10  ;;  %v3011_v58 = vmul.f32 %v5982_v12, %v5982_v12 }
0x1200   :  { %v5987_v15 = vsub.f32 %v2974_v43, %v3000_v0  ;;  %v3023_v47 = vsel %vm157_vm2, %v3011_v58, 0.0  ;;  %v4326_v0 = vld [vmem:[%s6092_s3 + $0x128] sm:$0xff]   ;;  %v4327_v58 = vld [vmem:[%s6092_s3 + $0x120] sm:$0xff]  }
0x1201   :  { %3024 = vadd.xlane.f32.xlu1 %v3023_v47  ;;  %v2995_v44 = vpop.xlane.xlu1 %2994  ;;  %4253 = vmatpush3.bf16.msra.mxu0 %v4326_v0  ;;  %v4329_v47 = vld [vmem:[%s6092_s3 + $0x110] sm:$0xff]  }
0x1202   :  { %v3001_v39 = vmul.f32 0.03125, %v2995_v44  ;;  %v3012_v29 = vmul.f32 %v5987_v15, %v5987_v15  ;;  %4254 = vmatprep.subr.bf16.mxu0 %v6104_v13  ;;  %v4330_v44 = vld [vmem:[%s6092_s3 + $0x108] sm:$0xff]  }
0x1204   :  { %v5993_v51 = vsub.f32 %v5967_v52, %v3001_v39  ;;  %v3026_v61 = vsel %vm157_vm2, %v3012_v29, 0.0  ;;  %v4331_v39 = vld [vmem:[%s6092_s3 + $0x100] sm:$0xff]   ;;  %v4332_v29 = vld [vmem:[%s6092_s3 + $0xf8] sm:$0xff]  }
0x1205   :  { %3027 = vadd.xlane.f32.xlu0 %v3026_v61  ;;  %4255 = vmatpush3.bf16.msra.mxu0 %v4327_v58 }
0x1206   :  { %v3013_v8 = vmul.f32 %v5993_v51, %v5993_v51  ;;  %4256 = vmatprep.subr.bf16.mxu0 %v6104_v13 }
0x1208   :  { %v3029_v1 = vsel %vm157_vm2, %v3013_v8, 0.0 }
0x1209   :  { %3030 = vadd.xlane.f32.xlu1 %v3029_v1 }
0x127e   :  { %v3016_v18 = vpop.xlane.xlu0 %3015 }
0x127f   :  { %v3032_v32 = vmul.f32 0.03125, %v3016_v18 }
0x1281   :  { %v3038_v36 = vadd.f32 1e-05, %v3032_v32 }
0x1282   :  { %v3019_v3 = vpop.xlane.xlu1 %3018 }
0x1283   :  { %4431 = vrsqrt.f32 %v3038_v36  ;;  %v3033_v41 = vmul.f32 0.03125, %v3019_v3 }
0x1285   :  { %v3039_v27 = vadd.f32 1e-05, %v3033_v41 }
0x1286   :  { %v3022_v62 = vpop.xlane.xlu0 %3021 }
0x1287   :  { %4433 = vrsqrt.f32 %v3039_v27  ;;  %v3034_v17 = vmul.f32 0.03125, %v3022_v62 }
0x1289   :  { %v3040_v50 = vadd.f32 1e-05, %v3034_v17 }
0x128a   :  { %v3025_v30 = vpop.xlane.xlu1 %3024 }
0x128b   :  { %4435 = vrsqrt.f32 %v3040_v50  ;;  %v3035_v53 = vmul.f32 0.03125, %v3025_v30 }
0x128d   :  { %v3041_v28 = vadd.f32 1e-05, %v3035_v53 }
0x128e   :  { %v3028_v35 = vpop.xlane.xlu0 %3027 }
0x128f   :  { %4437 = vrsqrt.f32 %v3041_v28  ;;  %v3036_v20 = vmul.f32 0.03125, %v3028_v35 }
0x1290   :  { %v4432_v40 = vpop.eup %4431 }
0x1291   :  { %v3050_v59 = vmul.f32 %v4432_v40, %v3002_v46  ;;  %v3042_v5 = vadd.f32 1e-05, %v3036_v20 }
0x1292   :  { %v3031_v26 = vpop.xlane.xlu1 %3030 }
0x1293   :  { %4439 = vrsqrt.f32 %v3042_v5  ;;  %v3037_v2 = vmul.f32 0.03125, %v3031_v26  ;;  %v3060_v43 = vmul.f32 %v3556_v56, %v3050_v59 }
0x1294   :  { %v4434_v45 = vpop.eup %4433 }
0x1295   :  { %v3051_v34 = vmul.f32 %v4434_v45, %v5971_v16  ;;  %v3043_v60 = vadd.f32 1e-05, %v3037_v2  ;;  %v3070_v7 = vadd.f32 %v3557_v19, %v3060_v43 }
0x1297   :  { %v3061_v55 = vmul.f32 %v3556_v56, %v3051_v34  ;;  %4441 = vrsqrt.f32 %v3043_v60 }
0x1298   :  { %v4436_v14 = vpop.eup %4435 }
0x1299   :  { %v3071_v25 = vadd.f32 %v3557_v19, %v3061_v55  ;;  %v3052_v31 = vmul.f32 %v4436_v14, %v5977_v23 }
0x129b   :  { %v3076_v46 = vpack.c.bf16 %v3071_v25, %v3070_v7  ;;  %v3062_v63 = vmul.f32 %v3556_v56, %v3052_v31 }
0x129c   :  { %v4438_v54 = vpop.eup %4437 }
0x129d   :  { %v3053_v42 = vmul.f32 %v4438_v54, %v5982_v12  ;;  %4239 = vmatmul.mubr.msk.bf16.vlgmr.msra.gmra.mxu1 %vm157_vm2, %v3076_v46  ;;  %v3072_v9 = vadd.f32 %v3557_v19, %v3062_v63 }
0x129e   :  { %4242 = vmatprep.mubr.msk.bf16.mxu1 %vm4464_vm0, %v6104_v13 }
0x129f   :  { %v3063_v16 = vmul.f32 %v3556_v56, %v3053_v42 }
0x12a0   :  { %v4440_v49 = vpop.eup %4439 }
0x12a1   :  { %v3054_v11 = vmul.f32 %v4440_v49, %v5987_v15  ;;  %v3073_v37 = vadd.f32 %v3557_v19, %v3063_v16  ;;  %v4328_v15 = vld [vmem:[%s6092_s3 + $0x118] sm:$0xff]  }
0x12a2   :  { %4257 = vmatpush3.bf16.msra.mxu0 %v4328_v15 }
0x12a3   :  { %v3077_v33 = vpack.c.bf16 %v3073_v37, %v3072_v9  ;;  %v3064_v38 = vmul.f32 %v3556_v56, %v3054_v11  ;;  %4258 = vmatprep.subr.bf16.mxu0 %v6104_v13 }
0x12a4   :  { %v4442_v4 = vpop.eup %4441 }
0x12a5   :  { %v3055_v23 = vmul.f32 %v4442_v4, %v5993_v51  ;;  %4243 = vmatmul.mubr.msk.bf16.gmra.mxu1 %vm157_vm2, %v3077_v33  ;;  %v3074_v12 = vadd.f32 %v3557_v19, %v3064_v38  ;;  %v3558_v51 = vld [vmem:[%s6095_s4 + $0x16] ss:$0 sm:$0xff] }
0x12a6   :  { %4246 = vmatprep.mubr.msk.bf16.mxu1 %vm4464_vm0, %v6104_v13  ;;  %4259 = vmatpush3.bf16.msra.mxu0 %v4329_v47 }
0x12a7   :  { %v3065_v24 = vmul.f32 %v3556_v56, %v3055_v23  ;;  %4260 = vmatprep.subr.bf16.mxu0 %v6104_v13 }
0x12a9   :  { %v3075_v57 = vadd.f32 %v3557_v19, %v3065_v24 }
0x12aa   :  { %4261 = vmatpush3.bf16.msra.mxu0 %v4330_v44 }
0x12ab   :  { %v3078_v10 = vpack.c.bf16 %v3075_v57, %v3074_v12  ;;  %4262 = vmatprep.subr.bf16.mxu0 %v6104_v13 }
0x12ad   :  { %4247 = vmatmul.mubr.msk.bf16.gmra.mxu1 %vm157_vm2, %v3078_v10 }
0x12ae   :  { %4282 = vmatprep.mubr.msk.bf16.mxu1 %vm4464_vm0, %v6104_v13  ;;  %4263 = vmatpush3.bf16.msra.mxu0 %v4331_v39 }
0x12af   :  { %4264 = vmatprep.subr.bf16.mxu0 %v6104_v13 }
0x12b2   :  { %4265 = vmatpush3.bf16.msra.mxu0 %v4332_v29 }
0x135d   :  { %v3143_v61 = vpop.f32.mrf.mxu1 }
0x135e   :  { %v3144_v8 = vadd.f32 %v3558_v51, %v3143_v61 }
0x135f   :  { %v4240_v1 = vpop.f32.mrf.mxu1 }
0x1360   :  { %v3172_v48 = vmul.f32 0.70710677, %v3144_v8  ;;  %v3166_v45 = vmul.f32 0.5, %v3144_v8 }
0x1361   :  { %v3146_v21 = vpop.f32.mrf.mxu1 }
0x1362   :  { %4443 = verf.f32 %v3172_v48  ;;  %v3147_v6 = vadd.f32 %v3558_v51, %v3146_v21 }
0x1363   :  { %v4241_v18 = vpop.f32.mrf.mxu1 }
0x1364   :  { %v3173_v32 = vmul.f32 0.70710677, %v3147_v6  ;;  %v3167_v43 = vmul.f32 0.5, %v3147_v6 }
0x1365   :  { %v3151_v36 = vpop.f32.mrf.mxu1 }
0x1366   :  { %4445 = verf.f32 %v3173_v32  ;;  %v3152_v3 = vadd.f32 %v3558_v51, %v3151_v36 }
0x1367   :  { %v4244_v41 = vpop.f32.mrf.mxu1 }
0x1368   :  { %v3174_v27 = vmul.f32 0.70710677, %v3152_v3  ;;  %v3168_v46 = vmul.f32 0.5, %v3152_v3 }
0x1369   :  { %v3154_v62 = vpop.f32.mrf.mxu1 }
0x136a   :  { %4447 = verf.f32 %v3174_v27  ;;  %v3155_v17 = vadd.f32 %v3558_v51, %v3154_v62 }
0x136b   :  { %v4245_v50 = vpop.f32.mrf.mxu1 }
0x136c   :  { %v3175_v30 = vmul.f32 0.70710677, %v3155_v17  ;;  %v3169_v54 = vmul.f32 0.5, %v3155_v17 }
0x136d   :  { %v3159_v53 = vpop.f32.mrf.mxu1 }
0x136e   :  { %4449 = verf.f32 %v3175_v30  ;;  %v3160_v28 = vadd.f32 %v3558_v51, %v3159_v53 }
0x136f   :  { %v4444_v35 = vpop.eup %4443  ;;  %v4248_v20 = vpop.f32.mrf.mxu1 }
0x1370   :  { %v3176_v40 = vmul.f32 0.70710677, %v3160_v28  ;;  %v3184_v5 = vadd.f32 1.0, %v4444_v35  ;;  %v3170_v33 = vmul.f32 0.5, %v3160_v28 }
0x1371   :  { %v3162_v59 = vpop.f32.mrf.mxu1 }
0x1372   :  { %4451 = verf.f32 %v3176_v40  ;;  %v3163_v56 = vadd.f32 %v3558_v51, %v3162_v59  ;;  %v3190_v19 = vmul.f32 %v3184_v5, %v3166_v45  ;;  %v3564_v51 = vld [vmem:[%s6095_s4 + $0x17] ss:$0 sm:$0xff]  ;;  %v3573_v40 = vld [vmem:[%s6095_s4 + $0x18] ss:$0 sm:$0xff]  ;;  %v3574_v5 = vld [vmem:[%s6095_s4 + $0x19] ss:$0 sm:$0xff] }
0x1373   :  { %v4446_v26 = vpop.eup %4445  ;;  %v4249_v2 = vpop.f32.mrf.mxu1 }
0x1374   :  { %v3185_v34 = vadd.f32 1.0, %v4446_v26  ;;  %v3177_v60 = vmul.f32 0.70710677, %v3163_v56  ;;  %v3171_v4 = vmul.f32 0.5, %v3163_v56 }
0x1376   :  { %v3191_v55 = vmul.f32 %v3185_v34, %v3167_v43  ;;  %4453 = verf.f32 %v3177_v60 }
0x1377   :  { %v4448_v14 = vpop.eup %4447 }
0x1378   :  { %v3196_v7 = vpack.c.bf16 %v3191_v55, %v3190_v19  ;;  %v3186_v25 = vadd.f32 1.0, %v4448_v14 }
0x137a   :  { %4267 = vmatmul.mubr.bf16.vlgmr.msra.gmra.mxu0 %v3196_v7  ;;  %v3192_v63 = vmul.f32 %v3186_v25, %v3168_v46 }
0x137b   :  { %v4450_v31 = vpop.eup %4449  ;;  %4270 = vmatprep.mubr.msk.bf16.mxu0 %vm4464_vm0, %v6104_v13 }
0x137c   :  { %v3187_v42 = vadd.f32 1.0, %v4450_v31 }
0x137e   :  { %v3193_v16 = vmul.f32 %v3187_v42, %v3169_v54 }
0x137f   :  { %v4452_v49 = vpop.eup %4451 }
0x1380   :  { %v3197_v11 = vpack.c.bf16 %v3193_v16, %v3192_v63  ;;  %v3188_v9 = vadd.f32 1.0, %v4452_v49 }
0x1382   :  { %4271 = vmatmul.mubr.bf16.gmra.mxu0 %v3197_v11  ;;  %v3194_v38 = vmul.f32 %v3188_v9, %v3170_v33 }
0x1383   :  { %v4454_v37 = vpop.eup %4453  ;;  %4274 = vmatprep.mubr.msk.bf16.mxu0 %vm4464_vm0, %v6104_v13 }
0x1384   :  { %v3189_v23 = vadd.f32 1.0, %v4454_v37 }
0x1386   :  { %v3195_v24 = vmul.f32 %v3189_v23, %v3171_v4 }
0x1388   :  { %v3198_v12 = vpack.c.bf16 %v3195_v24, %v3194_v38 }
0x138a   :  { %4275 = vmatmul.mubr.bf16.gmra.mxu0 %v3198_v12 }
0x143a   :  { %v3302_v57 = vpop.f32.mrf.mxu0 }
0x143c   :  { %v4268_v10 = vpop.f32.mrf.mxu0 }
0x143e   :  { %v3304_v0 = vpop.f32.mrf.mxu0 }
0x1440   :  { %v4269_v58 = vpop.f32.mrf.mxu0 }
0x1442   :  { %v3308_v15 = vpop.f32.mrf.mxu0 }
0x1443   :  { %v3309_v1 = vadd.f32 %v3564_v51, %v3308_v15 }
0x1444   :  { %v4272_v47 = vpop.f32.mrf.mxu0 }
0x1445   :  { %v3321_v18 = vadd.f32 %v3309_v1, %v5958_v22  ;;  %v4334_v22 = vld [vmem:[%s6092_s3 + $0x138] sm:$0xff]  }
0x1446   :  { %v3311_v44 = vpop.f32.mrf.mxu0 }
0x1448   :  { %v4273_v39 = vpop.f32.mrf.mxu0 }
0x144a   :  { %v3315_v29 = vpop.f32.mrf.mxu0 }
0x144c   :  { %v4276_v61 = vpop.f32.mrf.mxu0 }
0x144e   :  { %v3317_v8 = vpop.f32.mrf.mxu0 }
0x144f   :  { %v3318_v48 = vadd.f32 %v3564_v51, %v3317_v8 }
0x1450   :  { %v4277_v21 = vpop.f32.mrf.mxu0 }
0x1451   :  { %v3322_v6 = vadd.f32 %v3318_v48, %v5967_v52  ;;  %v4333_v52 = vld [vmem:[%s6092_s3 + $0x140] sm:$0xff]  }
0x1452   :  { %4279 = vmatpush3.bf16.msra.mxu1 %v4333_v52 }
0x1453   :  { %v3324_v32 = vrot.slane %v3322_v6, 7  ;;  %4280 = vmatprep.subr.bf16.mxu1 %v6104_v13  ;;  %v3575_v13 = vld [vmem:[%s6095_s4 + $0x1a] ss:$0 sm:$0xff] }
0x1455   :  { %v3327_v36 = vsel %vm3326_vm13, %v3321_v18, %v3324_v32 }
0x1456   :  { %v3329_v3 = vsel %vm3328_vm14, %v3327_v36, 0.0  ;;  %4281 = vmatpush3.bf16.msra.mxu1 %v4334_v22 }
0x1457   :  { %v3332_v41 = vsel %vm157_vm2, %v3329_v3, 0.0 }
0x1458   :  { %3333 = vadd.xlane.f32.xlu0 %v3332_v41 }
0x14e1   :  { %v3334_v27 = vpop.xlane.xlu0 %3333 }
0x14e2   :  { %v3335_v62 = vmul.f32 0.03125, %v3334_v27 }
0x14e4   :  { %v3336_v17 = vsub.f32 %v3329_v3, %v3335_v62 }
0x14e6   :  { %v3337_v50 = vmul.f32 %v3336_v17, %v3336_v17 }
0x14e8   :  { %v3338_v30 = vsel %vm157_vm2, %v3337_v50, 0.0 }
0x14e9   :  { %3339 = vadd.xlane.f32.xlu1 %v3338_v30 }
0x1572   :  { %v3340_v53 = vpop.xlane.xlu1 %3339 }
0x1573   :  { %v3341_v28 = vmul.f32 0.03125, %v3340_v53 }
0x1575   :  { %v3342_v35 = vadd.f32 1e-05, %v3341_v28 }
0x1577   :  { %4455 = vrsqrt.f32 %v3342_v35 }
0x1584   :  { %v4456_v20 = vpop.eup %4455 }
0x1585   :  { %v3344_v59 = vmul.f32 %v4456_v20, %v3336_v17 }
0x1587   :  { %v3349_v56 = vmul.f32 %v3573_v40, %v3344_v59 }
0x1589   :  { %v3354_v26 = vadd.f32 %v3574_v5, %v3349_v56 }
0x158b   :  { %v3355_v2 = vpack.c.bf16 %v3354_v26, %v3354_v26 }
0x158d   :  { %4283 = vmatmul.mubr.msk.bf16.vlgmr.msra.gmra.mxu1 %vm157_vm2, %v3355_v2 }
0x164d   :  { %v3414_v45 = vpop.f32.mrf.mxu1 }
0x164e   :  { %v3415_v43 = vadd.f32 %v3575_v13, %v3414_v45 }
0x164f   :  { %v4284_v34 = vpop.f32.mrf.mxu1 }
0x1650   :  { %3420 = vst [vmem:[%s6097_s5] sm:$0xff] %v3415_v43 }
0x1651   :  { %v3417_v60 = vpop.f32.mrf.mxu1 }
0x1653   :  { %v4285_v19 = vpop.f32.mrf.mxu1 }

</bundles_post_ra>
